<compile_context>
chip_gen: v6e
topology: v6e:2x2x1
jax: 0.10.0
libtpu: 0.0.40
codegen_flags: <defaults>
</compile_context>

<pallas_src>
import functools
import math

import jax
import jax.numpy as jnp
import numpy as np
from jax.experimental import pallas as pl
from jax.experimental.pallas import tpu as pltpu

# Exact f32 matmul paths on both the XLA reference and (via the precision
# attribute threaded into the kernel's dot_generals) the Mosaic matmuls, so
# kernel-vs-reference agreement is limited only by f32 rounding.
jax.config.update("jax_default_matmul_precision", "highest")

# ----------------------------- config (small) -------------------------------
D_MODEL = 32
D_HIDDEN = 64
N_LAYERS = 2
N_HEADS = 4
BATCH = 2
SEQ = 8
EPS = 1e-6


# ------------------------------ Pallas kernel -------------------------------
def transformer_kernel(
    x_ref, pe_ref,
    wqkv_ref, wo_ref, w1_ref, b1_ref, w2_ref, b2_ref,
    g1_ref, beta1_ref, g2_ref, beta2_ref,
    out_ref,
    *, n_layers, n_heads, eps,
):
    B, T, D = x_ref.shape
    dh = D // n_heads

    # Positional-encoding add fused into the kernel; flatten batch*seq rows.
    h = (x_ref[...] + pe_ref[...][None, :, :]).reshape(B * T, D)

    def layer_norm(t, gamma, beta):
        m = jnp.mean(t, axis=-1, keepdims=True)
        c = t - m
        # torch .std() is unbiased -> divide by (D - 1); eps added to std.
        var = jnp.sum(c * c, axis=-1, keepdims=True) * (1.0 / (D - 1))
        return gamma * c / (jnp.sqrt(var) + eps) + beta        # exact divide

    for l in range(n_layers):            # static unroll over layers
        wqkv = wqkv_ref[l]               # (D, 3D), Q columns pre-scaled
        wo = wo_ref[l]                   # (D, D)
        w1, b1 = w1_ref[l], b1_ref[l]    # (D, H), (1, H)
        w2, b2 = w2_ref[l], b2_ref[l]    # (H, D), (1, D)
        g1, be1 = g1_ref[l], beta1_ref[l]
        g2, be2 = g2_ref[l], beta2_ref[l]

        # Fused QKV projection: one (B*T, D) @ (D, 3D) matmul (bias=False).
        # The 1/sqrt(d_model) score scale is already folded into wq columns.
        qkv = jnp.dot(h, wqkv, preferred_element_type=jnp.float32)  # (BT, 3D)
        qkv3 = qkv.reshape(B, T, 3 * D)

        # Per-head attention, batched over B with 3-D einsums; head outputs
        # stay in registers and are joined with a lane concat (no scratch,
        # no masked column stores, no store->load round trip).
        head_outs = []
        for hd in range(n_heads):
            q_h = qkv3[:, :, hd * dh:(hd + 1) * dh]
            k_h = qkv3[:, :, D + hd * dh:D + (hd + 1) * dh]
            v_h = qkv3[:, :, 2 * D + hd * dh:2 * D + (hd + 1) * dh]
            s = jnp.einsum("btd,bsd->bts", q_h, k_h,
                           preferred_element_type=jnp.float32)
            s = s - jnp.max(s, axis=-1, keepdims=True)
            p = jnp.exp(s)
            p = p / jnp.sum(p, axis=-1, keepdims=True)          # exact divide
            head_outs.append(jnp.einsum("bts,bsd->btd", p, v_h,
                                        preferred_element_type=jnp.float32))

        attn_in = jnp.concatenate(head_outs, axis=-1).reshape(B * T, D)
        attn = jnp.dot(attn_in, wo, preferred_element_type=jnp.float32)

        y = layer_norm(h + attn, g1, be1)            # residual + LN

        # Feed-forward: linear -> relu -> linear
        h1 = jnp.maximum(
            jnp.dot(y, w1, preferred_element_type=jnp.float32) + b1, 0.0)
        ff = jnp.dot(h1, w2, preferred_element_type=jnp.float32) + b2

        h = layer_norm(y + ff, g2, be2)              # residual + LN
        out_ref[l] = h.reshape(B, T, D)              # per-layer encoding


# ------------------------------- wrapper -------------------------------------
def positional_encodings(T, D):
    pos = jnp.arange(T, dtype=jnp.float32)[:, None]          # (T, 1)
    ch = jnp.arange(D)
    expo = jnp.where(ch % 2 == 0, ch, ch - 1).astype(jnp.float32) / D
    div = jnp.power(10000.0, expo)                            # (D,)
    angles = pos / div[None, :]
    return jnp.where((ch % 2 == 0)[None, :], jnp.sin(angles), jnp.cos(angles))


def _full_spec(shape):
    return pl.BlockSpec(shape, lambda i: (0,) * len(shape))


def transformer_pallas(x, packed):
    """x: (B, T, D) f32; packed: dict of layer-stacked params (weights (in,out))."""
    B, T, D = x.shape
    L = packed["wqkv"].shape[0]
    H = packed["w1"].shape[-1]

    pe = positional_encodings(T, D)

    kernel = functools.partial(
        transformer_kernel, n_layers=L, n_heads=N_HEADS, eps=EPS)

    in_specs = [
        _full_spec((B, T, D)),        # x
        _full_spec((T, D)),           # positional encodings
        _full_spec((L, D, 3 * D)),    # wq|wk|wv fused (wq pre-scaled)
        _full_spec((L, D, D)),        # wo
        _full_spec((L, D, H)),        # w1
        _full_spec((L, 1, H)),        # b1
        _full_spec((L, H, D)),        # w2
        _full_spec((L, 1, D)),        # b2
        _full_spec((L, 1, D)),        # gamma1
        _full_spec((L, 1, D)),        # beta1
        _full_spec((L, 1, D)),        # gamma2
        _full_spec((L, 1, D)),        # beta2
    ]
    out_spec = _full_spec((L, B, T, D))

    out = pl.pallas_call(
        kernel,
        out_shape=jax.ShapeDtypeStruct((L, B, T, D), jnp.float32),
        grid_spec=pltpu.PrefetchScalarGridSpec(
            num_scalar_prefetch=0,
            grid=(1,),                         # whole problem in one step
            in_specs=in_specs,
            out_specs=out_spec,
        ),
        compiler_params=pltpu.CompilerParams(
            dimension_semantics=("arbitrary",)),
    )(
        x, pe,
        packed["wqkv"], packed["wo"], packed["w1"], packed["b1"],
        packed["w2"], packed["b2"],
        packed["g1"], packed["beta1"], packed["g2"], packed["beta2"],
    )
    encodings = [out[l] for l in range(L)]
    return encodings[-1], encodings           # mirrors Transformer.forward


# ------------------------- param init / packing ------------------------------
def init_params(key, n_layers, d_model, d_hidden):
    params = []
    for li in range(n_layers):
        ks = jax.random.split(jax.random.fold_in(key, li), 6)
        p = {
            # stored (in, out); equivalent to PyTorch weight.T
            "wq": 0.1 * jax.random.normal(ks[0], (d_model, d_model), jnp.float32),
            "wk": 0.1 * jax.random.normal(ks[1], (d_model, d_model), jnp.float32),
            "wv": 0.1 * jax.random.normal(ks[2], (d_model, d_model), jnp.float32),
            "wo": 0.1 * jax.random.normal(ks[3], (d_model, d_model), jnp.float32),
            "w1": 0.1 * jax.random.normal(ks[4], (d_model, d_hidden), jnp.float32),
            "b1": jnp.zeros((d_hidden,), jnp.float32),
            "w2": 0.1 * jax.random.normal(ks[5], (d_hidden, d_model), jnp.float32),
            "b2": jnp.zeros((d_model,), jnp.float32),
            "g1": jnp.ones((d_model,), jnp.float32),
            "beta1": jnp.zeros((d_model,), jnp.float32),
            "g2": jnp.ones((d_model,), jnp.float32),
            "beta2": jnp.zeros((d_model,), jnp.float32),
        }
        params.append(p)
    return params


def pack_params(params):
    # One-time preprocessing: fold 1/sqrt(d_model) into the Q columns so the
    # kernel never multiplies scores by inv_scale.
    d_model = params[0]["wq"].shape[0]
    scale = math.sqrt(d_model)          # d_key = d_model in the torch module
    stack = lambda name: jnp.stack([p[name] for p in params])
    row = lambda name: jnp.stack([p[name].reshape(1, -1) for p in params])
    return {
        "wqkv": jnp.stack([jnp.concatenate(
            [p["wq"] / scale, p["wk"], p["wv"]], axis=1) for p in params]),
        "wo": stack("wo"),
        "w1": stack("w1"), "b1": row("b1"),
        "w2": stack("w2"), "b2": row("b2"),
        "g1": row("g1"), "beta1": row("beta1"),
        "g2": row("g2"), "beta2": row("beta2"),
    }


# --------------------------- pure-JAX reference ------------------------------
def _ref_layer(x, p):
    B, T, D = x.shape
    dh = D // N_HEADS
    scale = math.sqrt(D)
    q = x @ p["wq"]; k = x @ p["wk"]; v = x @ p["wv"]
    outs = []
    for h in range(N_HEADS):
        qh, kh, vh = (t[..., h * dh:(h + 1) * dh] for t in (q, k, v))
        s = jnp.einsum("btd,bsd->bts", qh, kh) / scale
        psm = jax.nn.softmax(s, axis=-1)
        outs.append(jnp.einsum("bts,bsd->btd", psm, vh))
    attn = jnp.concatenate(outs, -1) @ p["wo"]

    def ln(t, g, b):
        m = jnp.mean(t, -1, keepdims=True)
        std = jnp.sqrt(jnp.sum((t - m) ** 2, -1, keepdims=True) / (D - 1))
        return g * (t - m) / (std + EPS) + b

    y = ln(x + attn, p["g1"], p["beta1"])
    ff = jnp.maximum(y @ p["w1"] + p["b1"], 0.0) @ p["w2"] + p["b2"]
    return ln(y + ff, p["g2"], p["beta2"])


def _ref_forward(x, params):
    B, T, D = x.shape
    h = x + positional_encodings(T, D)[None, :, :]
    enc = []
    for p in params:
        h = _ref_layer(h, p)
        enc.append(h)
    return enc[-1], enc


# ----------------------------------- main ------------------------------------
if __name__ == "__main__":
    key = jax.random.PRNGKey(0)
    kx, kp = jax.random.split(key)
    x = jax.random.normal(kx, (BATCH, SEQ, D_MODEL), jnp.float32)
    params = init_params(kp, N_LAYERS, D_MODEL, D_HIDDEN)
    packed = pack_params(params)

    fwd = jax.jit(transformer_pallas)
    out_last, encodings = fwd(x, packed)
    out_last = jax.block_until_ready(out_last)
    for e in encodings:
        jax.block_until_ready(e)

    ref_last, ref_encs = _ref_forward(x, params)
    # Exact divides + full-precision f32 matmuls on both sides -> agreement
    # limited by f32 rounding (tolerance tightened from 5e-3 to 2e-5).
    np.testing.assert_allclose(np.asarray(out_last), np.asarray(ref_last),
                               rtol=2e-5, atol=2e-5)
    for a, b in zip(encodings, ref_encs):
        np.testing.assert_allclose(np.asarray(a), np.asarray(b),
                                   rtol=2e-5, atol=2e-5)

    print("KERNEL_OK")
</pallas_src>

<mosaic_0001>
module attributes {stable_mosaic.version = 11 : i64} {
  func.func @transformer_kernel(%arg0: i32, %arg1: memref<2x8x32xf32, #tpu.memory_space<vmem>>, %arg2: memref<8x32xf32, #tpu.memory_space<vmem>>, %arg3: memref<2x32x96xf32, #tpu.memory_space<vmem>>, %arg4: memref<2x32x32xf32, #tpu.memory_space<vmem>>, %arg5: memref<2x32x64xf32, #tpu.memory_space<vmem>>, %arg6: memref<2x1x64xf32, #tpu.memory_space<vmem>>, %arg7: memref<2x64x32xf32, #tpu.memory_space<vmem>>, %arg8: memref<2x1x32xf32, #tpu.memory_space<vmem>>, %arg9: memref<2x1x32xf32, #tpu.memory_space<vmem>>, %arg10: memref<2x1x32xf32, #tpu.memory_space<vmem>>, %arg11: memref<2x1x32xf32, #tpu.memory_space<vmem>>, %arg12: memref<2x1x32xf32, #tpu.memory_space<vmem>>, %arg13: memref<2x2x8x32xf32, #tpu.memory_space<vmem>>) attributes {dimension_semantics = [#tpu.dimension_semantics<arbitrary>], iteration_bounds = array<i64: 1>, scalar_prefetch = 0 : i64, scratch_operands = 0 : i64, tpu.core_type = #tpu.core_type<tc>, window_params = [{pipeline_mode = #tpu.pipeline_mode<synchronous>, transform_indices = @transform_0, window_bounds = array<i64: 2, 8, 32>}, {pipeline_mode = #tpu.pipeline_mode<synchronous>, transform_indices = @transform_1, window_bounds = array<i64: 8, 32>}, {pipeline_mode = #tpu.pipeline_mode<synchronous>, transform_indices = @transform_2, window_bounds = array<i64: 2, 32, 96>}, {pipeline_mode = #tpu.pipeline_mode<synchronous>, transform_indices = @transform_3, window_bounds = array<i64: 2, 32, 32>}, {pipeline_mode = #tpu.pipeline_mode<synchronous>, transform_indices = @transform_4, window_bounds = array<i64: 2, 32, 64>}, {pipeline_mode = #tpu.pipeline_mode<synchronous>, transform_indices = @transform_5, window_bounds = array<i64: 2, 1, 64>}, {pipeline_mode = #tpu.pipeline_mode<synchronous>, transform_indices = @transform_6, window_bounds = array<i64: 2, 64, 32>}, {pipeline_mode = #tpu.pipeline_mode<synchronous>, transform_indices = @transform_7, window_bounds = array<i64: 2, 1, 32>}, {pipeline_mode = #tpu.pipeline_mode<synchronous>, transform_indices = @transform_8, window_bounds = array<i64: 2, 1, 32>}, {pipeline_mode = #tpu.pipeline_mode<synchronous>, transform_indices = @transform_9, window_bounds = array<i64: 2, 1, 32>}, {pipeline_mode = #tpu.pipeline_mode<synchronous>, transform_indices = @transform_10, window_bounds = array<i64: 2, 1, 32>}, {pipeline_mode = #tpu.pipeline_mode<synchronous>, transform_indices = @transform_11, window_bounds = array<i64: 2, 1, 32>}, {pipeline_mode = #tpu.pipeline_mode<synchronous>, transform_indices = @transform_12, window_bounds = array<i64: 2, 2, 8, 32>}]} {
    %c0 = arith.constant 0 : index
    %c0_0 = arith.constant 0 : index
    %c0_1 = arith.constant 0 : index
    %0 = vector.load %arg1[%c0, %c0_0, %c0_1] : memref<2x8x32xf32, #tpu.memory_space<vmem>>, vector<2x8x32xf32>
    %c0_2 = arith.constant 0 : index
    %c0_3 = arith.constant 0 : index
    %1 = vector.load %arg2[%c0_2, %c0_3] : memref<8x32xf32, #tpu.memory_space<vmem>>, vector<8x32xf32>
    %2 = vector.shape_cast %1 : vector<8x32xf32> to vector<1x8x32xf32>
    %3 = vector.broadcast %2 : vector<1x8x32xf32> to vector<2x8x32xf32>
    %4 = arith.addf %0, %3 : vector<2x8x32xf32>
    %5 = vector.shape_cast %4 : vector<2x8x32xf32> to vector<16x32xf32>
    %c0_4 = arith.constant 0 : index
    %c0_5 = arith.constant 0 : index
    %c0_6 = arith.constant 0 : index
    %6 = vector.load %arg3[%c0_4, %c0_5, %c0_6] : memref<2x32x96xf32, #tpu.memory_space<vmem>>, vector<1x32x96xf32>
    %7 = vector.shape_cast %6 : vector<1x32x96xf32> to vector<32x96xf32>
    %c0_7 = arith.constant 0 : index
    %c0_8 = arith.constant 0 : index
    %c0_9 = arith.constant 0 : index
    %8 = vector.load %arg4[%c0_7, %c0_8, %c0_9] : memref<2x32x32xf32, #tpu.memory_space<vmem>>, vector<1x32x32xf32>
    %9 = vector.shape_cast %8 : vector<1x32x32xf32> to vector<32x32xf32>
    %c0_10 = arith.constant 0 : index
    %c0_11 = arith.constant 0 : index
    %c0_12 = arith.constant 0 : index
    %10 = vector.load %arg5[%c0_10, %c0_11, %c0_12] : memref<2x32x64xf32, #tpu.memory_space<vmem>>, vector<1x32x64xf32>
    %11 = vector.shape_cast %10 : vector<1x32x64xf32> to vector<32x64xf32>
    %c0_13 = arith.constant 0 : index
    %c0_14 = arith.constant 0 : index
    %c0_15 = arith.constant 0 : index
    %12 = vector.load %arg6[%c0_13, %c0_14, %c0_15] : memref<2x1x64xf32, #tpu.memory_space<vmem>>, vector<1x1x64xf32>
    %13 = vector.shape_cast %12 : vector<1x1x64xf32> to vector<1x64xf32>
    %c0_16 = arith.constant 0 : index
    %c0_17 = arith.constant 0 : index
    %c0_18 = arith.constant 0 : index
    %14 = vector.load %arg7[%c0_16, %c0_17, %c0_18] : memref<2x64x32xf32, #tpu.memory_space<vmem>>, vector<1x64x32xf32>
    %15 = vector.shape_cast %14 : vector<1x64x32xf32> to vector<64x32xf32>
    %c0_19 = arith.constant 0 : index
    %c0_20 = arith.constant 0 : index
    %c0_21 = arith.constant 0 : index
    %16 = vector.load %arg8[%c0_19, %c0_20, %c0_21] : memref<2x1x32xf32, #tpu.memory_space<vmem>>, vector<1x1x32xf32>
    %17 = vector.shape_cast %16 : vector<1x1x32xf32> to vector<1x32xf32>
    %c0_22 = arith.constant 0 : index
    %c0_23 = arith.constant 0 : index
    %c0_24 = arith.constant 0 : index
    %18 = vector.load %arg9[%c0_22, %c0_23, %c0_24] : memref<2x1x32xf32, #tpu.memory_space<vmem>>, vector<1x1x32xf32>
    %19 = vector.shape_cast %18 : vector<1x1x32xf32> to vector<1x32xf32>
    %c0_25 = arith.constant 0 : index
    %c0_26 = arith.constant 0 : index
    %c0_27 = arith.constant 0 : index
    %20 = vector.load %arg10[%c0_25, %c0_26, %c0_27] : memref<2x1x32xf32, #tpu.memory_space<vmem>>, vector<1x1x32xf32>
    %21 = vector.shape_cast %20 : vector<1x1x32xf32> to vector<1x32xf32>
    %c0_28 = arith.constant 0 : index
    %c0_29 = arith.constant 0 : index
    %c0_30 = arith.constant 0 : index
    %22 = vector.load %arg11[%c0_28, %c0_29, %c0_30] : memref<2x1x32xf32, #tpu.memory_space<vmem>>, vector<1x1x32xf32>
    %23 = vector.shape_cast %22 : vector<1x1x32xf32> to vector<1x32xf32>
    %c0_31 = arith.constant 0 : index
    %c0_32 = arith.constant 0 : index
    %c0_33 = arith.constant 0 : index
    %24 = vector.load %arg12[%c0_31, %c0_32, %c0_33] : memref<2x1x32xf32, #tpu.memory_space<vmem>>, vector<1x1x32xf32>
    %25 = vector.shape_cast %24 : vector<1x1x32xf32> to vector<1x32xf32>
    %cst = arith.constant dense<0.000000e+00> : vector<16x96xf32>
    %26 = tpu.matmul %5, %7, %cst {dimension_numbers = #tpu.dot_dimension_numbers<[1], [0], [0], [1], [0, 0, 1, 1], [], []>, precision = #tpu.contract_precision<fp32>} : vector<16x32xf32>, vector<32x96xf32>, vector<16x96xf32> -> vector<16x96xf32>
    %27 = vector.shape_cast %26 : vector<16x96xf32> to vector<2x8x96xf32>
    %28 = vector.extract_strided_slice %27 {offsets = [0, 0, 0], sizes = [2, 8, 8], strides = [1, 1, 1]} : vector<2x8x96xf32> to vector<2x8x8xf32>
    %29 = vector.extract_strided_slice %27 {offsets = [0, 0, 32], sizes = [2, 8, 8], strides = [1, 1, 1]} : vector<2x8x96xf32> to vector<2x8x8xf32>
    %30 = vector.extract_strided_slice %27 {offsets = [0, 0, 64], sizes = [2, 8, 8], strides = [1, 1, 1]} : vector<2x8x96xf32> to vector<2x8x8xf32>
    "tpu.trace_start"() <{level = 10 : i32, message = "btd,bsd->bts"}> : () -> ()
    %cst_34 = arith.constant dense<0.000000e+00> : vector<2x8x8xf32>
    %31 = tpu.matmul %28, %29, %cst_34 {dimension_numbers = #tpu.dot_dimension_numbers<[2], [2], [1], [1], [0, 0, 0, 1, 1, 1], [0], [0]>, precision = #tpu.contract_precision<fp32>} : vector<2x8x8xf32>, vector<2x8x8xf32>, vector<2x8x8xf32> -> vector<2x8x8xf32>
    "tpu.trace_stop"() : () -> ()
    %cst_35 = arith.constant dense<0xFF800000> : vector<2x8xf32>
    %32 = vector.multi_reduction <maximumf>, %31, %cst_35 [2] : vector<2x8x8xf32> to vector<2x8xf32>
    %33 = vector.shape_cast %32 : vector<2x8xf32> to vector<2x8x1xf32>
    %34 = vector.broadcast %33 : vector<2x8x1xf32> to vector<2x8x8xf32>
    %35 = arith.subf %31, %34 : vector<2x8x8xf32>
    %36 = math.exp %35 : vector<2x8x8xf32>
    %cst_36 = arith.constant dense<0.000000e+00> : vector<2x8xf32>
    %37 = vector.multi_reduction <add>, %36, %cst_36 [2] : vector<2x8x8xf32> to vector<2x8xf32>
    %38 = vector.shape_cast %37 : vector<2x8xf32> to vector<2x8x1xf32>
    %39 = vector.broadcast %38 : vector<2x8x1xf32> to vector<2x8x8xf32>
    %40 = arith.divf %36, %39 : vector<2x8x8xf32>
    "tpu.trace_start"() <{level = 10 : i32, message = "bts,bsd->btd"}> : () -> ()
    %cst_37 = arith.constant dense<0.000000e+00> : vector<2x8x8xf32>
    %41 = tpu.matmul %40, %30, %cst_37 {dimension_numbers = #tpu.dot_dimension_numbers<[2], [1], [1], [2], [0, 0, 0, 1, 1, 2], [0], [0]>, precision = #tpu.contract_precision<fp32>} : vector<2x8x8xf32>, vector<2x8x8xf32>, vector<2x8x8xf32> -> vector<2x8x8xf32>
    "tpu.trace_stop"() : () -> ()
    %42 = vector.extract_strided_slice %27 {offsets = [0, 0, 8], sizes = [2, 8, 8], strides = [1, 1, 1]} : vector<2x8x96xf32> to vector<2x8x8xf32>
    %43 = vector.extract_strided_slice %27 {offsets = [0, 0, 40], sizes = [2, 8, 8], strides = [1, 1, 1]} : vector<2x8x96xf32> to vector<2x8x8xf32>
    %44 = vector.extract_strided_slice %27 {offsets = [0, 0, 72], sizes = [2, 8, 8], strides = [1, 1, 1]} : vector<2x8x96xf32> to vector<2x8x8xf32>
    "tpu.trace_start"() <{level = 10 : i32, message = "btd,bsd->bts"}> : () -> ()
    %cst_38 = arith.constant dense<0.000000e+00> : vector<2x8x8xf32>
    %45 = tpu.matmul %42, %43, %cst_38 {dimension_numbers = #tpu.dot_dimension_numbers<[2], [2], [1], [1], [0, 0, 0, 1, 1, 1], [0], [0]>, precision = #tpu.contract_precision<fp32>} : vector<2x8x8xf32>, vector<2x8x8xf32>, vector<2x8x8xf32> -> vector<2x8x8xf32>
    "tpu.trace_stop"() : () -> ()
    %cst_39 = arith.constant dense<0xFF800000> : vector<2x8xf32>
    %46 = vector.multi_reduction <maximumf>, %45, %cst_39 [2] : vector<2x8x8xf32> to vector<2x8xf32>
    %47 = vector.shape_cast %46 : vector<2x8xf32> to vector<2x8x1xf32>
    %48 = vector.broadcast %47 : vector<2x8x1xf32> to vector<2x8x8xf32>
    %49 = arith.subf %45, %48 : vector<2x8x8xf32>
    %50 = math.exp %49 : vector<2x8x8xf32>
    %cst_40 = arith.constant dense<0.000000e+00> : vector<2x8xf32>
    %51 = vector.multi_reduction <add>, %50, %cst_40 [2] : vector<2x8x8xf32> to vector<2x8xf32>
    %52 = vector.shape_cast %51 : vector<2x8xf32> to vector<2x8x1xf32>
    %53 = vector.broadcast %52 : vector<2x8x1xf32> to vector<2x8x8xf32>
    %54 = arith.divf %50, %53 : vector<2x8x8xf32>
    "tpu.trace_start"() <{level = 10 : i32, message = "bts,bsd->btd"}> : () -> ()
    %cst_41 = arith.constant dense<0.000000e+00> : vector<2x8x8xf32>
    %55 = tpu.matmul %54, %44, %cst_41 {dimension_numbers = #tpu.dot_dimension_numbers<[2], [1], [1], [2], [0, 0, 0, 1, 1, 2], [0], [0]>, precision = #tpu.contract_precision<fp32>} : vector<2x8x8xf32>, vector<2x8x8xf32>, vector<2x8x8xf32> -> vector<2x8x8xf32>
    "tpu.trace_stop"() : () -> ()
    %56 = vector.extract_strided_slice %27 {offsets = [0, 0, 16], sizes = [2, 8, 8], strides = [1, 1, 1]} : vector<2x8x96xf32> to vector<2x8x8xf32>
    %57 = vector.extract_strided_slice %27 {offsets = [0, 0, 48], sizes = [2, 8, 8], strides = [1, 1, 1]} : vector<2x8x96xf32> to vector<2x8x8xf32>
    %58 = vector.extract_strided_slice %27 {offsets = [0, 0, 80], sizes = [2, 8, 8], strides = [1, 1, 1]} : vector<2x8x96xf32> to vector<2x8x8xf32>
    "tpu.trace_start"() <{level = 10 : i32, message = "btd,bsd->bts"}> : () -> ()
    %cst_42 = arith.constant dense<0.000000e+00> : vector<2x8x8xf32>
    %59 = tpu.matmul %56, %57, %cst_42 {dimension_numbers = #tpu.dot_dimension_numbers<[2], [2], [1], [1], [0, 0, 0, 1, 1, 1], [0], [0]>, precision = #tpu.contract_precision<fp32>} : vector<2x8x8xf32>, vector<2x8x8xf32>, vector<2x8x8xf32> -> vector<2x8x8xf32>
    "tpu.trace_stop"() : () -> ()
    %cst_43 = arith.constant dense<0xFF800000> : vector<2x8xf32>
    %60 = vector.multi_reduction <maximumf>, %59, %cst_43 [2] : vector<2x8x8xf32> to vector<2x8xf32>
    %61 = vector.shape_cast %60 : vector<2x8xf32> to vector<2x8x1xf32>
    %62 = vector.broadcast %61 : vector<2x8x1xf32> to vector<2x8x8xf32>
    %63 = arith.subf %59, %62 : vector<2x8x8xf32>
    %64 = math.exp %63 : vector<2x8x8xf32>
    %cst_44 = arith.constant dense<0.000000e+00> : vector<2x8xf32>
    %65 = vector.multi_reduction <add>, %64, %cst_44 [2] : vector<2x8x8xf32> to vector<2x8xf32>
    %66 = vector.shape_cast %65 : vector<2x8xf32> to vector<2x8x1xf32>
    %67 = vector.broadcast %66 : vector<2x8x1xf32> to vector<2x8x8xf32>
    %68 = arith.divf %64, %67 : vector<2x8x8xf32>
    "tpu.trace_start"() <{level = 10 : i32, message = "bts,bsd->btd"}> : () -> ()
    %cst_45 = arith.constant dense<0.000000e+00> : vector<2x8x8xf32>
    %69 = tpu.matmul %68, %58, %cst_45 {dimension_numbers = #tpu.dot_dimension_numbers<[2], [1], [1], [2], [0, 0, 0, 1, 1, 2], [0], [0]>, precision = #tpu.contract_precision<fp32>} : vector<2x8x8xf32>, vector<2x8x8xf32>, vector<2x8x8xf32> -> vector<2x8x8xf32>
    "tpu.trace_stop"() : () -> ()
    %70 = vector.extract_strided_slice %27 {offsets = [0, 0, 24], sizes = [2, 8, 8], strides = [1, 1, 1]} : vector<2x8x96xf32> to vector<2x8x8xf32>
    %71 = vector.extract_strided_slice %27 {offsets = [0, 0, 56], sizes = [2, 8, 8], strides = [1, 1, 1]} : vector<2x8x96xf32> to vector<2x8x8xf32>
    %72 = vector.extract_strided_slice %27 {offsets = [0, 0, 88], sizes = [2, 8, 8], strides = [1, 1, 1]} : vector<2x8x96xf32> to vector<2x8x8xf32>
    "tpu.trace_start"() <{level = 10 : i32, message = "btd,bsd->bts"}> : () -> ()
    %cst_46 = arith.constant dense<0.000000e+00> : vector<2x8x8xf32>
    %73 = tpu.matmul %70, %71, %cst_46 {dimension_numbers = #tpu.dot_dimension_numbers<[2], [2], [1], [1], [0, 0, 0, 1, 1, 1], [0], [0]>, precision = #tpu.contract_precision<fp32>} : vector<2x8x8xf32>, vector<2x8x8xf32>, vector<2x8x8xf32> -> vector<2x8x8xf32>
    "tpu.trace_stop"() : () -> ()
    %cst_47 = arith.constant dense<0xFF800000> : vector<2x8xf32>
    %74 = vector.multi_reduction <maximumf>, %73, %cst_47 [2] : vector<2x8x8xf32> to vector<2x8xf32>
    %75 = vector.shape_cast %74 : vector<2x8xf32> to vector<2x8x1xf32>
    %76 = vector.broadcast %75 : vector<2x8x1xf32> to vector<2x8x8xf32>
    %77 = arith.subf %73, %76 : vector<2x8x8xf32>
    %78 = math.exp %77 : vector<2x8x8xf32>
    %cst_48 = arith.constant dense<0.000000e+00> : vector<2x8xf32>
    %79 = vector.multi_reduction <add>, %78, %cst_48 [2] : vector<2x8x8xf32> to vector<2x8xf32>
    %80 = vector.shape_cast %79 : vector<2x8xf32> to vector<2x8x1xf32>
    %81 = vector.broadcast %80 : vector<2x8x1xf32> to vector<2x8x8xf32>
    %82 = arith.divf %78, %81 : vector<2x8x8xf32>
    "tpu.trace_start"() <{level = 10 : i32, message = "bts,bsd->btd"}> : () -> ()
    %cst_49 = arith.constant dense<0.000000e+00> : vector<2x8x8xf32>
    %83 = tpu.matmul %82, %72, %cst_49 {dimension_numbers = #tpu.dot_dimension_numbers<[2], [1], [1], [2], [0, 0, 0, 1, 1, 2], [0], [0]>, precision = #tpu.contract_precision<fp32>} : vector<2x8x8xf32>, vector<2x8x8xf32>, vector<2x8x8xf32> -> vector<2x8x8xf32>
    "tpu.trace_stop"() : () -> ()
    %84 = tpu.concatenate %41, %55, %69, %83 in 2 : vector<2x8x8xf32>, vector<2x8x8xf32>, vector<2x8x8xf32>, vector<2x8x8xf32> -> vector<2x8x32xf32>
    %85 = vector.shape_cast %84 : vector<2x8x32xf32> to vector<16x32xf32>
    %cst_50 = arith.constant dense<0.000000e+00> : vector<16x32xf32>
    %86 = tpu.matmul %85, %9, %cst_50 {dimension_numbers = #tpu.dot_dimension_numbers<[1], [0], [0], [1], [0, 0, 1, 1], [], []>, precision = #tpu.contract_precision<fp32>} : vector<16x32xf32>, vector<32x32xf32>, vector<16x32xf32> -> vector<16x32xf32>
    %87 = arith.addf %5, %86 : vector<16x32xf32>
    %cst_51 = arith.constant dense<0.000000e+00> : vector<16xf32>
    %88 = vector.multi_reduction <add>, %87, %cst_51 [1] : vector<16x32xf32> to vector<16xf32>
    %89 = vector.shape_cast %88 : vector<16xf32> to vector<16x1xf32>
    %cst_52 = arith.constant 3.200000e+01 : f32
    %90 = vector.broadcast %cst_52 : f32 to vector<16x1xf32>
    %91 = arith.divf %89, %90 : vector<16x1xf32>
    %92 = vector.broadcast %91 : vector<16x1xf32> to vector<16x32xf32>
    %93 = arith.subf %87, %92 : vector<16x32xf32>
    %94 = arith.mulf %93, %93 : vector<16x32xf32>
    %cst_53 = arith.constant dense<0.000000e+00> : vector<16xf32>
    %95 = vector.multi_reduction <add>, %94, %cst_53 [1] : vector<16x32xf32> to vector<16xf32>
    %96 = vector.shape_cast %95 : vector<16xf32> to vector<16x1xf32>
    %cst_54 = arith.constant 0.0322580636 : f32
    %97 = vector.broadcast %cst_54 : f32 to vector<16x1xf32>
    %98 = arith.mulf %96, %97 : vector<16x1xf32>
    %99 = vector.broadcast %19 : vector<1x32xf32> to vector<16x32xf32>
    %100 = arith.mulf %99, %93 : vector<16x32xf32>
    %101 = math.sqrt %98 : vector<16x1xf32>
    %cst_55 = arith.constant 9.99999997E-7 : f32
    %102 = vector.broadcast %cst_55 : f32 to vector<16x1xf32>
    %103 = arith.addf %101, %102 : vector<16x1xf32>
    %104 = vector.broadcast %103 : vector<16x1xf32> to vector<16x32xf32>
    %105 = arith.divf %100, %104 : vector<16x32xf32>
    %106 = vector.broadcast %21 : vector<1x32xf32> to vector<16x32xf32>
    %107 = arith.addf %105, %106 : vector<16x32xf32>
    %cst_56 = arith.constant dense<0.000000e+00> : vector<16x64xf32>
    %108 = tpu.matmul %107, %11, %cst_56 {dimension_numbers = #tpu.dot_dimension_numbers<[1], [0], [0], [1], [0, 0, 1, 1], [], []>, precision = #tpu.contract_precision<fp32>} : vector<16x32xf32>, vector<32x64xf32>, vector<16x64xf32> -> vector<16x64xf32>
    %109 = vector.broadcast %13 : vector<1x64xf32> to vector<16x64xf32>
    %110 = arith.addf %108, %109 : vector<16x64xf32>
    %cst_57 = arith.constant 0.000000e+00 : f32
    %111 = vector.broadcast %cst_57 : f32 to vector<16x64xf32>
    %112 = arith.maximumf %110, %111 : vector<16x64xf32>
    %cst_58 = arith.constant dense<0.000000e+00> : vector<16x32xf32>
    %113 = tpu.matmul %112, %15, %cst_58 {dimension_numbers = #tpu.dot_dimension_numbers<[1], [0], [0], [1], [0, 0, 1, 1], [], []>, precision = #tpu.contract_precision<fp32>} : vector<16x64xf32>, vector<64x32xf32>, vector<16x32xf32> -> vector<16x32xf32>
    %114 = vector.broadcast %17 : vector<1x32xf32> to vector<16x32xf32>
    %115 = arith.addf %113, %114 : vector<16x32xf32>
    %116 = arith.addf %107, %115 : vector<16x32xf32>
    %cst_59 = arith.constant dense<0.000000e+00> : vector<16xf32>
    %117 = vector.multi_reduction <add>, %116, %cst_59 [1] : vector<16x32xf32> to vector<16xf32>
    %118 = vector.shape_cast %117 : vector<16xf32> to vector<16x1xf32>
    %cst_60 = arith.constant 3.200000e+01 : f32
    %119 = vector.broadcast %cst_60 : f32 to vector<16x1xf32>
    %120 = arith.divf %118, %119 : vector<16x1xf32>
    %121 = vector.broadcast %120 : vector<16x1xf32> to vector<16x32xf32>
    %122 = arith.subf %116, %121 : vector<16x32xf32>
    %123 = arith.mulf %122, %122 : vector<16x32xf32>
    %cst_61 = arith.constant dense<0.000000e+00> : vector<16xf32>
    %124 = vector.multi_reduction <add>, %123, %cst_61 [1] : vector<16x32xf32> to vector<16xf32>
    %125 = vector.shape_cast %124 : vector<16xf32> to vector<16x1xf32>
    %cst_62 = arith.constant 0.0322580636 : f32
    %126 = vector.broadcast %cst_62 : f32 to vector<16x1xf32>
    %127 = arith.mulf %125, %126 : vector<16x1xf32>
    %128 = vector.broadcast %23 : vector<1x32xf32> to vector<16x32xf32>
    %129 = arith.mulf %128, %122 : vector<16x32xf32>
    %130 = math.sqrt %127 : vector<16x1xf32>
    %cst_63 = arith.constant 9.99999997E-7 : f32
    %131 = vector.broadcast %cst_63 : f32 to vector<16x1xf32>
    %132 = arith.addf %130, %131 : vector<16x1xf32>
    %133 = vector.broadcast %132 : vector<16x1xf32> to vector<16x32xf32>
    %134 = arith.divf %129, %133 : vector<16x32xf32>
    %135 = vector.broadcast %25 : vector<1x32xf32> to vector<16x32xf32>
    %136 = arith.addf %134, %135 : vector<16x32xf32>
    %137 = vector.shape_cast %136 : vector<16x32xf32> to vector<2x8x32xf32>
    %c0_64 = arith.constant 0 : index
    %c0_65 = arith.constant 0 : index
    %c0_66 = arith.constant 0 : index
    %c0_67 = arith.constant 0 : index
    %138 = vector.load %arg13[%c0_64, %c0_65, %c0_66, %c0_67] : memref<2x2x8x32xf32, #tpu.memory_space<vmem>>, vector<1x2x8x32xf32>
    %139 = vector.shape_cast %138 : vector<1x2x8x32xf32> to vector<2x8x32xf32>
    %140 = vector.shape_cast %137 : vector<2x8x32xf32> to vector<1x2x8x32xf32>
    tpu.vector_store %arg13[%c0_64, %c0_65, %c0_66, %c0_67], %140 {strides = array<i32>} : memref<2x2x8x32xf32, #tpu.memory_space<vmem>>, vector<1x2x8x32xf32>,
    %c1 = arith.constant 1 : index
    %c0_68 = arith.constant 0 : index
    %c0_69 = arith.constant 0 : index
    %141 = vector.load %arg3[%c1, %c0_68, %c0_69] : memref<2x32x96xf32, #tpu.memory_space<vmem>>, vector<1x32x96xf32>
    %142 = vector.shape_cast %141 : vector<1x32x96xf32> to vector<32x96xf32>
    %c1_70 = arith.constant 1 : index
    %c0_71 = arith.constant 0 : index
    %c0_72 = arith.constant 0 : index
    %143 = vector.load %arg4[%c1_70, %c0_71, %c0_72] : memref<2x32x32xf32, #tpu.memory_space<vmem>>, vector<1x32x32xf32>
    %144 = vector.shape_cast %143 : vector<1x32x32xf32> to vector<32x32xf32>
    %c1_73 = arith.constant 1 : index
    %c0_74 = arith.constant 0 : index
    %c0_75 = arith.constant 0 : index
    %145 = vector.load %arg5[%c1_73, %c0_74, %c0_75] : memref<2x32x64xf32, #tpu.memory_space<vmem>>, vector<1x32x64xf32>
    %146 = vector.shape_cast %145 : vector<1x32x64xf32> to vector<32x64xf32>
    %c1_76 = arith.constant 1 : index
    %c0_77 = arith.constant 0 : index
    %c0_78 = arith.constant 0 : index
    %147 = vector.load %arg6[%c1_76, %c0_77, %c0_78] : memref<2x1x64xf32, #tpu.memory_space<vmem>>, vector<1x1x64xf32>
    %148 = vector.shape_cast %147 : vector<1x1x64xf32> to vector<1x64xf32>
    %c1_79 = arith.constant 1 : index
    %c0_80 = arith.constant 0 : index
    %c0_81 = arith.constant 0 : index
    %149 = vector.load %arg7[%c1_79, %c0_80, %c0_81] : memref<2x64x32xf32, #tpu.memory_space<vmem>>, vector<1x64x32xf32>
    %150 = vector.shape_cast %149 : vector<1x64x32xf32> to vector<64x32xf32>
    %c1_82 = arith.constant 1 : index
    %c0_83 = arith.constant 0 : index
    %c0_84 = arith.constant 0 : index
    %151 = vector.load %arg8[%c1_82, %c0_83, %c0_84] : memref<2x1x32xf32, #tpu.memory_space<vmem>>, vector<1x1x32xf32>
    %152 = vector.shape_cast %151 : vector<1x1x32xf32> to vector<1x32xf32>
    %c1_85 = arith.constant 1 : index
    %c0_86 = arith.constant 0 : index
    %c0_87 = arith.constant 0 : index
    %153 = vector.load %arg9[%c1_85, %c0_86, %c0_87] : memref<2x1x32xf32, #tpu.memory_space<vmem>>, vector<1x1x32xf32>
    %154 = vector.shape_cast %153 : vector<1x1x32xf32> to vector<1x32xf32>
    %c1_88 = arith.constant 1 : index
    %c0_89 = arith.constant 0 : index
    %c0_90 = arith.constant 0 : index
    %155 = vector.load %arg10[%c1_88, %c0_89, %c0_90] : memref<2x1x32xf32, #tpu.memory_space<vmem>>, vector<1x1x32xf32>
    %156 = vector.shape_cast %155 : vector<1x1x32xf32> to vector<1x32xf32>
    %c1_91 = arith.constant 1 : index
    %c0_92 = arith.constant 0 : index
    %c0_93 = arith.constant 0 : index
    %157 = vector.load %arg11[%c1_91, %c0_92, %c0_93] : memref<2x1x32xf32, #tpu.memory_space<vmem>>, vector<1x1x32xf32>
    %158 = vector.shape_cast %157 : vector<1x1x32xf32> to vector<1x32xf32>
    %c1_94 = arith.constant 1 : index
    %c0_95 = arith.constant 0 : index
    %c0_96 = arith.constant 0 : index
    %159 = vector.load %arg12[%c1_94, %c0_95, %c0_96] : memref<2x1x32xf32, #tpu.memory_space<vmem>>, vector<1x1x32xf32>
    %160 = vector.shape_cast %159 : vector<1x1x32xf32> to vector<1x32xf32>
    %cst_97 = arith.constant dense<0.000000e+00> : vector<16x96xf32>
    %161 = tpu.matmul %136, %142, %cst_97 {dimension_numbers = #tpu.dot_dimension_numbers<[1], [0], [0], [1], [0, 0, 1, 1], [], []>, precision = #tpu.contract_precision<fp32>} : vector<16x32xf32>, vector<32x96xf32>, vector<16x96xf32> -> vector<16x96xf32>
    %162 = vector.shape_cast %161 : vector<16x96xf32> to vector<2x8x96xf32>
    %163 = vector.extract_strided_slice %162 {offsets = [0, 0, 0], sizes = [2, 8, 8], strides = [1, 1, 1]} : vector<2x8x96xf32> to vector<2x8x8xf32>
    %164 = vector.extract_strided_slice %162 {offsets = [0, 0, 32], sizes = [2, 8, 8], strides = [1, 1, 1]} : vector<2x8x96xf32> to vector<2x8x8xf32>
    %165 = vector.extract_strided_slice %162 {offsets = [0, 0, 64], sizes = [2, 8, 8], strides = [1, 1, 1]} : vector<2x8x96xf32> to vector<2x8x8xf32>
    "tpu.trace_start"() <{level = 10 : i32, message = "btd,bsd->bts"}> : () -> ()
    %cst_98 = arith.constant dense<0.000000e+00> : vector<2x8x8xf32>
    %166 = tpu.matmul %163, %164, %cst_98 {dimension_numbers = #tpu.dot_dimension_numbers<[2], [2], [1], [1], [0, 0, 0, 1, 1, 1], [0], [0]>, precision = #tpu.contract_precision<fp32>} : vector<2x8x8xf32>, vector<2x8x8xf32>, vector<2x8x8xf32> -> vector<2x8x8xf32>
    "tpu.trace_stop"() : () -> ()
    %cst_99 = arith.constant dense<0xFF800000> : vector<2x8xf32>
    %167 = vector.multi_reduction <maximumf>, %166, %cst_99 [2] : vector<2x8x8xf32> to vector<2x8xf32>
    %168 = vector.shape_cast %167 : vector<2x8xf32> to vector<2x8x1xf32>
    %169 = vector.broadcast %168 : vector<2x8x1xf32> to vector<2x8x8xf32>
    %170 = arith.subf %166, %169 : vector<2x8x8xf32>
    %171 = math.exp %170 : vector<2x8x8xf32>
    %cst_100 = arith.constant dense<0.000000e+00> : vector<2x8xf32>
    %172 = vector.multi_reduction <add>, %171, %cst_100 [2] : vector<2x8x8xf32> to vector<2x8xf32>
    %173 = vector.shape_cast %172 : vector<2x8xf32> to vector<2x8x1xf32>
    %174 = vector.broadcast %173 : vector<2x8x1xf32> to vector<2x8x8xf32>
    %175 = arith.divf %171, %174 : vector<2x8x8xf32>
    "tpu.trace_start"() <{level = 10 : i32, message = "bts,bsd->btd"}> : () -> ()
    %cst_101 = arith.constant dense<0.000000e+00> : vector<2x8x8xf32>
    %176 = tpu.matmul %175, %165, %cst_101 {dimension_numbers = #tpu.dot_dimension_numbers<[2], [1], [1], [2], [0, 0, 0, 1, 1, 2], [0], [0]>, precision = #tpu.contract_precision<fp32>} : vector<2x8x8xf32>, vector<2x8x8xf32>, vector<2x8x8xf32> -> vector<2x8x8xf32>
    "tpu.trace_stop"() : () -> ()
    %177 = vector.extract_strided_slice %162 {offsets = [0, 0, 8], sizes = [2, 8, 8], strides = [1, 1, 1]} : vector<2x8x96xf32> to vector<2x8x8xf32>
    %178 = vector.extract_strided_slice %162 {offsets = [0, 0, 40], sizes = [2, 8, 8], strides = [1, 1, 1]} : vector<2x8x96xf32> to vector<2x8x8xf32>
    %179 = vector.extract_strided_slice %162 {offsets = [0, 0, 72], sizes = [2, 8, 8], strides = [1, 1, 1]} : vector<2x8x96xf32> to vector<2x8x8xf32>
    "tpu.trace_start"() <{level = 10 : i32, message = "btd,bsd->bts"}> : () -> ()
    %cst_102 = arith.constant dense<0.000000e+00> : vector<2x8x8xf32>
    %180 = tpu.matmul %177, %178, %cst_102 {dimension_numbers = #tpu.dot_dimension_numbers<[2], [2], [1], [1], [0, 0, 0, 1, 1, 1], [0], [0]>, precision = #tpu.contract_precision<fp32>} : vector<2x8x8xf32>, vector<2x8x8xf32>, vector<2x8x8xf32> -> vector<2x8x8xf32>
    "tpu.trace_stop"() : () -> ()
    %cst_103 = arith.constant dense<0xFF800000> : vector<2x8xf32>
    %181 = vector.multi_reduction <maximumf>, %180, %cst_103 [2] : vector<2x8x8xf32> to vector<2x8xf32>
    %182 = vector.shape_cast %181 : vector<2x8xf32> to vector<2x8x1xf32>
    %183 = vector.broadcast %182 : vector<2x8x1xf32> to vector<2x8x8xf32>
    %184 = arith.subf %180, %183 : vector<2x8x8xf32>
    %185 = math.exp %184 : vector<2x8x8xf32>
    %cst_104 = arith.constant dense<0.000000e+00> : vector<2x8xf32>
    %186 = vector.multi_reduction <add>, %185, %cst_104 [2] : vector<2x8x8xf32> to vector<2x8xf32>
    %187 = vector.shape_cast %186 : vector<2x8xf32> to vector<2x8x1xf32>
    %188 = vector.broadcast %187 : vector<2x8x1xf32> to vector<2x8x8xf32>
    %189 = arith.divf %185, %188 : vector<2x8x8xf32>
    "tpu.trace_start"() <{level = 10 : i32, message = "bts,bsd->btd"}> : () -> ()
    %cst_105 = arith.constant dense<0.000000e+00> : vector<2x8x8xf32>
    %190 = tpu.matmul %189, %179, %cst_105 {dimension_numbers = #tpu.dot_dimension_numbers<[2], [1], [1], [2], [0, 0, 0, 1, 1, 2], [0], [0]>, precision = #tpu.contract_precision<fp32>} : vector<2x8x8xf32>, vector<2x8x8xf32>, vector<2x8x8xf32> -> vector<2x8x8xf32>
    "tpu.trace_stop"() : () -> ()
    %191 = vector.extract_strided_slice %162 {offsets = [0, 0, 16], sizes = [2, 8, 8], strides = [1, 1, 1]} : vector<2x8x96xf32> to vector<2x8x8xf32>
    %192 = vector.extract_strided_slice %162 {offsets = [0, 0, 48], sizes = [2, 8, 8], strides = [1, 1, 1]} : vector<2x8x96xf32> to vector<2x8x8xf32>
    %193 = vector.extract_strided_slice %162 {offsets = [0, 0, 80], sizes = [2, 8, 8], strides = [1, 1, 1]} : vector<2x8x96xf32> to vector<2x8x8xf32>
    "tpu.trace_start"() <{level = 10 : i32, message = "btd,bsd->bts"}> : () -> ()
    %cst_106 = arith.constant dense<0.000000e+00> : vector<2x8x8xf32>
    %194 = tpu.matmul %191, %192, %cst_106 {dimension_numbers = #tpu.dot_dimension_numbers<[2], [2], [1], [1], [0, 0, 0, 1, 1, 1], [0], [0]>, precision = #tpu.contract_precision<fp32>} : vector<2x8x8xf32>, vector<2x8x8xf32>, vector<2x8x8xf32> -> vector<2x8x8xf32>
    "tpu.trace_stop"() : () -> ()
    %cst_107 = arith.constant dense<0xFF800000> : vector<2x8xf32>
    %195 = vector.multi_reduction <maximumf>, %194, %cst_107 [2] : vector<2x8x8xf32> to vector<2x8xf32>
    %196 = vector.shape_cast %195 : vector<2x8xf32> to vector<2x8x1xf32>
    %197 = vector.broadcast %196 : vector<2x8x1xf32> to vector<2x8x8xf32>
    %198 = arith.subf %194, %197 : vector<2x8x8xf32>
    %199 = math.exp %198 : vector<2x8x8xf32>
    %cst_108 = arith.constant dense<0.000000e+00> : vector<2x8xf32>
    %200 = vector.multi_reduction <add>, %199, %cst_108 [2] : vector<2x8x8xf32> to vector<2x8xf32>
    %201 = vector.shape_cast %200 : vector<2x8xf32> to vector<2x8x1xf32>
    %202 = vector.broadcast %201 : vector<2x8x1xf32> to vector<2x8x8xf32>
    %203 = arith.divf %199, %202 : vector<2x8x8xf32>
    "tpu.trace_start"() <{level = 10 : i32, message = "bts,bsd->btd"}> : () -> ()
    %cst_109 = arith.constant dense<0.000000e+00> : vector<2x8x8xf32>
    %204 = tpu.matmul %203, %193, %cst_109 {dimension_numbers = #tpu.dot_dimension_numbers<[2], [1], [1], [2], [0, 0, 0, 1, 1, 2], [0], [0]>, precision = #tpu.contract_precision<fp32>} : vector<2x8x8xf32>, vector<2x8x8xf32>, vector<2x8x8xf32> -> vector<2x8x8xf32>
    "tpu.trace_stop"() : () -> ()
    %205 = vector.extract_strided_slice %162 {offsets = [0, 0, 24], sizes = [2, 8, 8], strides = [1, 1, 1]} : vector<2x8x96xf32> to vector<2x8x8xf32>
    %206 = vector.extract_strided_slice %162 {offsets = [0, 0, 56], sizes = [2, 8, 8], strides = [1, 1, 1]} : vector<2x8x96xf32> to vector<2x8x8xf32>
    %207 = vector.extract_strided_slice %162 {offsets = [0, 0, 88], sizes = [2, 8, 8], strides = [1, 1, 1]} : vector<2x8x96xf32> to vector<2x8x8xf32>
    "tpu.trace_start"() <{level = 10 : i32, message = "btd,bsd->bts"}> : () -> ()
    %cst_110 = arith.constant dense<0.000000e+00> : vector<2x8x8xf32>
    %208 = tpu.matmul %205, %206, %cst_110 {dimension_numbers = #tpu.dot_dimension_numbers<[2], [2], [1], [1], [0, 0, 0, 1, 1, 1], [0], [0]>, precision = #tpu.contract_precision<fp32>} : vector<2x8x8xf32>, vector<2x8x8xf32>, vector<2x8x8xf32> -> vector<2x8x8xf32>
    "tpu.trace_stop"() : () -> ()
    %cst_111 = arith.constant dense<0xFF800000> : vector<2x8xf32>
    %209 = vector.multi_reduction <maximumf>, %208, %cst_111 [2] : vector<2x8x8xf32> to vector<2x8xf32>
    %210 = vector.shape_cast %209 : vector<2x8xf32> to vector<2x8x1xf32>
    %211 = vector.broadcast %210 : vector<2x8x1xf32> to vector<2x8x8xf32>
    %212 = arith.subf %208, %211 : vector<2x8x8xf32>
    %213 = math.exp %212 : vector<2x8x8xf32>
    %cst_112 = arith.constant dense<0.000000e+00> : vector<2x8xf32>
    %214 = vector.multi_reduction <add>, %213, %cst_112 [2] : vector<2x8x8xf32> to vector<2x8xf32>
    %215 = vector.shape_cast %214 : vector<2x8xf32> to vector<2x8x1xf32>
    %216 = vector.broadcast %215 : vector<2x8x1xf32> to vector<2x8x8xf32>
    %217 = arith.divf %213, %216 : vector<2x8x8xf32>
    "tpu.trace_start"() <{level = 10 : i32, message = "bts,bsd->btd"}> : () -> ()
    %cst_113 = arith.constant dense<0.000000e+00> : vector<2x8x8xf32>
    %218 = tpu.matmul %217, %207, %cst_113 {dimension_numbers = #tpu.dot_dimension_numbers<[2], [1], [1], [2], [0, 0, 0, 1, 1, 2], [0], [0]>, precision = #tpu.contract_precision<fp32>} : vector<2x8x8xf32>, vector<2x8x8xf32>, vector<2x8x8xf32> -> vector<2x8x8xf32>
    "tpu.trace_stop"() : () -> ()
    %219 = tpu.concatenate %176, %190, %204, %218 in 2 : vector<2x8x8xf32>, vector<2x8x8xf32>, vector<2x8x8xf32>, vector<2x8x8xf32> -> vector<2x8x32xf32>
    %220 = vector.shape_cast %219 : vector<2x8x32xf32> to vector<16x32xf32>
    %cst_114 = arith.constant dense<0.000000e+00> : vector<16x32xf32>
    %221 = tpu.matmul %220, %144, %cst_114 {dimension_numbers = #tpu.dot_dimension_numbers<[1], [0], [0], [1], [0, 0, 1, 1], [], []>, precision = #tpu.contract_precision<fp32>} : vector<16x32xf32>, vector<32x32xf32>, vector<16x32xf32> -> vector<16x32xf32>
    %222 = arith.addf %136, %221 : vector<16x32xf32>
    %cst_115 = arith.constant dense<0.000000e+00> : vector<16xf32>
    %223 = vector.multi_reduction <add>, %222, %cst_115 [1] : vector<16x32xf32> to vector<16xf32>
    %224 = vector.shape_cast %223 : vector<16xf32> to vector<16x1xf32>
    %cst_116 = arith.constant 3.200000e+01 : f32
    %225 = vector.broadcast %cst_116 : f32 to vector<16x1xf32>
    %226 = arith.divf %224, %225 : vector<16x1xf32>
    %227 = vector.broadcast %226 : vector<16x1xf32> to vector<16x32xf32>
    %228 = arith.subf %222, %227 : vector<16x32xf32>
    %229 = arith.mulf %228, %228 : vector<16x32xf32>
    %cst_117 = arith.constant dense<0.000000e+00> : vector<16xf32>
    %230 = vector.multi_reduction <add>, %229, %cst_117 [1] : vector<16x32xf32> to vector<16xf32>
    %231 = vector.shape_cast %230 : vector<16xf32> to vector<16x1xf32>
    %cst_118 = arith.constant 0.0322580636 : f32
    %232 = vector.broadcast %cst_118 : f32 to vector<16x1xf32>
    %233 = arith.mulf %231, %232 : vector<16x1xf32>
    %234 = vector.broadcast %154 : vector<1x32xf32> to vector<16x32xf32>
    %235 = arith.mulf %234, %228 : vector<16x32xf32>
    %236 = math.sqrt %233 : vector<16x1xf32>
    %cst_119 = arith.constant 9.99999997E-7 : f32
    %237 = vector.broadcast %cst_119 : f32 to vector<16x1xf32>
    %238 = arith.addf %236, %237 : vector<16x1xf32>
    %239 = vector.broadcast %238 : vector<16x1xf32> to vector<16x32xf32>
    %240 = arith.divf %235, %239 : vector<16x32xf32>
    %241 = vector.broadcast %156 : vector<1x32xf32> to vector<16x32xf32>
    %242 = arith.addf %240, %241 : vector<16x32xf32>
    %cst_120 = arith.constant dense<0.000000e+00> : vector<16x64xf32>
    %243 = tpu.matmul %242, %146, %cst_120 {dimension_numbers = #tpu.dot_dimension_numbers<[1], [0], [0], [1], [0, 0, 1, 1], [], []>, precision = #tpu.contract_precision<fp32>} : vector<16x32xf32>, vector<32x64xf32>, vector<16x64xf32> -> vector<16x64xf32>
    %244 = vector.broadcast %148 : vector<1x64xf32> to vector<16x64xf32>
    %245 = arith.addf %243, %244 : vector<16x64xf32>
    %cst_121 = arith.constant 0.000000e+00 : f32
    %246 = vector.broadcast %cst_121 : f32 to vector<16x64xf32>
    %247 = arith.maximumf %245, %246 : vector<16x64xf32>
    %cst_122 = arith.constant dense<0.000000e+00> : vector<16x32xf32>
    %248 = tpu.matmul %247, %150, %cst_122 {dimension_numbers = #tpu.dot_dimension_numbers<[1], [0], [0], [1], [0, 0, 1, 1], [], []>, precision = #tpu.contract_precision<fp32>} : vector<16x64xf32>, vector<64x32xf32>, vector<16x32xf32> -> vector<16x32xf32>
    %249 = vector.broadcast %152 : vector<1x32xf32> to vector<16x32xf32>
    %250 = arith.addf %248, %249 : vector<16x32xf32>
    %251 = arith.addf %242, %250 : vector<16x32xf32>
    %cst_123 = arith.constant dense<0.000000e+00> : vector<16xf32>
    %252 = vector.multi_reduction <add>, %251, %cst_123 [1] : vector<16x32xf32> to vector<16xf32>
    %253 = vector.shape_cast %252 : vector<16xf32> to vector<16x1xf32>
    %cst_124 = arith.constant 3.200000e+01 : f32
    %254 = vector.broadcast %cst_124 : f32 to vector<16x1xf32>
    %255 = arith.divf %253, %254 : vector<16x1xf32>
    %256 = vector.broadcast %255 : vector<16x1xf32> to vector<16x32xf32>
    %257 = arith.subf %251, %256 : vector<16x32xf32>
    %258 = arith.mulf %257, %257 : vector<16x32xf32>
    %cst_125 = arith.constant dense<0.000000e+00> : vector<16xf32>
    %259 = vector.multi_reduction <add>, %258, %cst_125 [1] : vector<16x32xf32> to vector<16xf32>
    %260 = vector.shape_cast %259 : vector<16xf32> to vector<16x1xf32>
    %cst_126 = arith.constant 0.0322580636 : f32
    %261 = vector.broadcast %cst_126 : f32 to vector<16x1xf32>
    %262 = arith.mulf %260, %261 : vector<16x1xf32>
    %263 = vector.broadcast %158 : vector<1x32xf32> to vector<16x32xf32>
    %264 = arith.mulf %263, %257 : vector<16x32xf32>
    %265 = math.sqrt %262 : vector<16x1xf32>
    %cst_127 = arith.constant 9.99999997E-7 : f32
    %266 = vector.broadcast %cst_127 : f32 to vector<16x1xf32>
    %267 = arith.addf %265, %266 : vector<16x1xf32>
    %268 = vector.broadcast %267 : vector<16x1xf32> to vector<16x32xf32>
    %269 = arith.divf %264, %268 : vector<16x32xf32>
    %270 = vector.broadcast %160 : vector<1x32xf32> to vector<16x32xf32>
    %271 = arith.addf %269, %270 : vector<16x32xf32>
    %272 = vector.shape_cast %271 : vector<16x32xf32> to vector<2x8x32xf32>
    %c1_128 = arith.constant 1 : index
    %c0_129 = arith.constant 0 : index
    %c0_130 = arith.constant 0 : index
    %c0_131 = arith.constant 0 : index
    %273 = vector.load %arg13[%c1_128, %c0_129, %c0_130, %c0_131] : memref<2x2x8x32xf32, #tpu.memory_space<vmem>>, vector<1x2x8x32xf32>
    %274 = vector.shape_cast %273 : vector<1x2x8x32xf32> to vector<2x8x32xf32>
    %275 = vector.shape_cast %272 : vector<2x8x32xf32> to vector<1x2x8x32xf32>
    tpu.vector_store %arg13[%c1_128, %c0_129, %c0_130, %c0_131], %275 {strides = array<i32>} : memref<2x2x8x32xf32, #tpu.memory_space<vmem>>, vector<1x2x8x32xf32>,
    return
  }
  func.func @transform_0(%arg0: i32) -> (i32, i32, i32) {
    %c0_i32 = arith.constant 0 : i32
    %c0_i32_0 = arith.constant 0 : i32
    %c0_i32_1 = arith.constant 0 : i32
    %c0_i32_2 = arith.constant 0 : i32
    return %c0_i32, %c0_i32_0, %c0_i32_1 : i32, i32, i32
  }
  func.func @transform_1(%arg0: i32) -> (i32, i32) {
    %c0_i32 = arith.constant 0 : i32
    %c0_i32_0 = arith.constant 0 : i32
    %c0_i32_1 = arith.constant 0 : i32
    return %c0_i32, %c0_i32_0 : i32, i32
  }
  func.func @transform_2(%arg0: i32) -> (i32, i32, i32) {
    %c0_i32 = arith.constant 0 : i32
    %c0_i32_0 = arith.constant 0 : i32
    %c0_i32_1 = arith.constant 0 : i32
    %c0_i32_2 = arith.constant 0 : i32
    return %c0_i32, %c0_i32_0, %c0_i32_1 : i32, i32, i32
  }
  func.func @transform_3(%arg0: i32) -> (i32, i32, i32) {
    %c0_i32 = arith.constant 0 : i32
    %c0_i32_0 = arith.constant 0 : i32
    %c0_i32_1 = arith.constant 0 : i32
    %c0_i32_2 = arith.constant 0 : i32
    return %c0_i32, %c0_i32_0, %c0_i32_1 : i32, i32, i32
  }
  func.func @transform_4(%arg0: i32) -> (i32, i32, i32) {
    %c0_i32 = arith.constant 0 : i32
    %c0_i32_0 = arith.constant 0 : i32
    %c0_i32_1 = arith.constant 0 : i32
    %c0_i32_2 = arith.constant 0 : i32
    return %c0_i32, %c0_i32_0, %c0_i32_1 : i32, i32, i32
  }
  func.func @transform_5(%arg0: i32) -> (i32, i32, i32) {
    %c0_i32 = arith.constant 0 : i32
    %c0_i32_0 = arith.constant 0 : i32
    %c0_i32_1 = arith.constant 0 : i32
    %c0_i32_2 = arith.constant 0 : i32
    return %c0_i32, %c0_i32_0, %c0_i32_1 : i32, i32, i32
  }
  func.func @transform_6(%arg0: i32) -> (i32, i32, i32) {
    %c0_i32 = arith.constant 0 : i32
    %c0_i32_0 = arith.constant 0 : i32
    %c0_i32_1 = arith.constant 0 : i32
    %c0_i32_2 = arith.constant 0 : i32
    return %c0_i32, %c0_i32_0, %c0_i32_1 : i32, i32, i32
  }
  func.func @transform_7(%arg0: i32) -> (i32, i32, i32) {
    %c0_i32 = arith.constant 0 : i32
    %c0_i32_0 = arith.constant 0 : i32
    %c0_i32_1 = arith.constant 0 : i32
    %c0_i32_2 = arith.constant 0 : i32
    return %c0_i32, %c0_i32_0, %c0_i32_1 : i32, i32, i32
  }
  func.func @transform_8(%arg0: i32) -> (i32, i32, i32) {
    %c0_i32 = arith.constant 0 : i32
    %c0_i32_0 = arith.constant 0 : i32
    %c0_i32_1 = arith.constant 0 : i32
    %c0_i32_2 = arith.constant 0 : i32
    return %c0_i32, %c0_i32_0, %c0_i32_1 : i32, i32, i32
  }
  func.func @transform_9(%arg0: i32) -> (i32, i32, i32) {
    %c0_i32 = arith.constant 0 : i32
    %c0_i32_0 = arith.constant 0 : i32
    %c0_i32_1 = arith.constant 0 : i32
    %c0_i32_2 = arith.constant 0 : i32
    return %c0_i32, %c0_i32_0, %c0_i32_1 : i32, i32, i32
  }
  func.func @transform_10(%arg0: i32) -> (i32, i32, i32) {
    %c0_i32 = arith.constant 0 : i32
    %c0_i32_0 = arith.constant 0 : i32
    %c0_i32_1 = arith.constant 0 : i32
    %c0_i32_2 = arith.constant 0 : i32
    return %c0_i32, %c0_i32_0, %c0_i32_1 : i32, i32, i32
  }
  func.func @transform_11(%arg0: i32) -> (i32, i32, i32) {
    %c0_i32 = arith.constant 0 : i32
    %c0_i32_0 = arith.constant 0 : i32
    %c0_i32_1 = arith.constant 0 : i32
    %c0_i32_2 = arith.constant 0 : i32
    return %c0_i32, %c0_i32_0, %c0_i32_1 : i32, i32, i32
  }
  func.func @transform_12(%arg0: i32) -> (i32, i32, i32, i32) {
    %c0_i32 = arith.constant 0 : i32
    %c0_i32_0 = arith.constant 0 : i32
    %c0_i32_1 = arith.constant 0 : i32
    %c0_i32_2 = arith.constant 0 : i32
    %c0_i32_3 = arith.constant 0 : i32
    return %c0_i32, %c0_i32_0, %c0_i32_1, %c0_i32_2 : i32, i32, i32, i32
  }
}

</mosaic_0001>

<bundles_post_ra>
// kernel: transformer_pallas.1
= control target key start
LH: loop header
LB: loop body
LE: loop exit
PB: predicated region body
PF: predicated region fallthrough
CT: control target
= control target key end

     0   :  { %17 = vsyncpa [#allocation3], 0  ;;  %s21982_s21 = smov [#allocation2]   ;;  %s24210_s0 = inlined_call_operand.hbm [shape: f32[2,8,32], index: 0, kind: input, shape index: {}]   ;;  %s24211_s1 = inlined_call_operand.vmem [shape: f32[8,32], index: 1, kind: input, shape index: {}]   ;;  %s24212_s2 = inlined_call_operand.vmem [shape: f32[2,32,96], index: 2, kind: input, shape index: {}]   ;;  %s24213_s3 = inlined_call_operand.vmem [shape: f32[2,32,32], index: 3, kind: input, shape index: {}]   ;;  %s24214_s4 = inlined_call_operand.vmem [shape: f32[2,32,64], index: 4, kind: input, shape index: {}]   ;;  %s24215_s5 = inlined_call_operand.vmem [shape: f32[2,1,64], index: 5, kind: input, shape index: {}]   ;;  %s24216_s6 = inlined_call_operand.vmem [shape: f32[2,64,32], index: 6, kind: input, shape index: {}]   ;;  %s24217_s7 = inlined_call_operand.vmem [shape: f32[2,1,32], index: 7, kind: input, shape index: {}]   ;;  %s24218_s8 = inlined_call_operand.vmem [shape: f32[2,1,32], index: 8, kind: input, shape index: {}]   ;;  %s24219_s9 = inlined_call_operand.vmem [shape: f32[2,1,32], index: 9, kind: input, shape index: {}]   ;;  %s24220_s10 = inlined_call_operand.vmem [shape: f32[2,1,32], index: 10, kind: input, shape index: {}]   ;;  %s24221_s11 = inlined_call_operand.vmem [shape: f32[2,1,32], index: 11, kind: input, shape index: {}]   ;;  %s24222_s12 = inlined_call_operand.vmem [shape: f32[2,2,8,32], index: 12, kind: output, shape index: {}]  }
   0x1   :  { %s23_s22 = sshll.u32 %s21982_s21, 4  ;;  %s24_s22 = int_to_ptr.vmem [resolvable:$true] %s23_s22 }
   0x2   :  { %s21968_s23 = scalar_lea.vmem %s24_s22, 256  ;;  %p21973_p1 = scmp.lt.s32.totalorder %s24_s22, %s24_s22 }
   0x3   :  { %p21969_p0 = scmp.ne.s32.totalorder %s24_s22, %s21968_s23  ;;  %p21974_p2 = scmp.lt.s32.totalorder %s21968_s23, %s21968_s23 }
   0x5   :  { %p21975_p3 = por %p21974_p2, %p21973_p1 }
   0x7   :  { %p21976_p4 = pnand %p21975_p3, %p21969_p0 }
   0x9   :  { %21979 = shalt.err (!%p21976_p4)
}
   0xa   :  { %s21983_s24 = smov 128   ;;  %s21984_s25 = smov 8  }
   0xb   :  { %29 = dma.hbm_to_vmem [thread:$0]  %s24210_s0, 256, %s24_s22, [#allocation3], %s21983_s24, %s21983_s24, %s21984_s25  }
   0xc   :  { %21980 = dma.done.wait [#allocation3], 256  }
   0xd   :  { %21981 = vsyncadd [#allocation3], 4294967040  ;;  %v63_v0 = vld [vmem:[%s24212_s2 + $0x18] sm:$0xff]  ;;  %v62_v1 = vld [vmem:[%s24212_s2 + $0x10] sm:$0xff]  ;;  %vm86_vm0 = vcmask 261120   ;;  %v21985_v51 = vmov 0.0  }
   0xe   :  { %v61_v2 = vld [vmem:[%s24212_s2 + $0x8] sm:$0xff]  ;;  %v22078_v3 = vand.u32 4294901760, %v63_v0  ;;  %v22080_v4 = vand.u32 4294901760, %v62_v1  ;;  %v60_v6 = vld [vmem:[%s24212_s2] sm:$0xff]  ;;  %vm21986_vm1 = vmmov 0   ;;  %vm624_vm2 = vcmask 64512  }
   0xf   :  { %v22082_v5 = vand.u32 4294901760, %v61_v2  ;;  %v55_v7 = vld [vmem:[#allocation2] sm:$0xff]  ;;  %v56_v8 = vld [vmem:[#allocation2 + $0x8] sm:$0xff]  ;;  %v22087_v9 = vand.u32 4294901760, %v60_v6  ;;  %s21988_s19 = smov 64   ;;  %s21989_s20 = smov 88  }
  0x10   :  { %v57_v10 = vld [vmem:[%s24211_s1] sm:$0xff]  ;;  %20262 = vmatprep.subr.mxu0 %v22078_v3  ;;  %v208_v11 = vsub.f32 %v63_v0, %v22078_v3  ;;  %v215_v12 = vsub.f32 %v62_v1, %v22080_v4  ;;  %s21987_s1 = smov 96   ;;  %s21990_s21 = smov 120   ;;  %vm7985_vm3 = vcmask 195584   ;;  %vm7982_vm4 = vcmask 130048  }
  0x11   :  { %v22095_v13 = vadd.f32 %v57_v10, %v55_v7  ;;  %v22097_v14 = vadd.f32 %v57_v10, %v56_v8  ;;  %20263 = vmatpush3.msra.mxu0 %v22078_v3  ;;  %v222_v15 = vsub.f32 %v61_v2, %v22082_v5  ;;  %v229_v16 = vsub.f32 %v60_v6, %v22087_v9  ;;  %s21991_s22 = smov 56   ;;  %s21992_s23 = smov 80  }
  0x12   :  { %20264 = vmatprep.subr.mxu0 %v22080_v4  ;;  %v209_v17 = vand.u32 4294901760, %v208_v11  ;;  %v216_v18 = vand.u32 4294901760, %v215_v12  ;;  %s21993_s24 = smov 112   ;;  %s21994_s26 = smov 48   ;;  %vm9129_vm9 = vcmask 523264  }
  0x13   :  { %v88_v19 = vsel %vm86_vm0, %v22095_v13, 0  ;;  %v91_v20 = vsel %vm86_vm0, %v22097_v14, 0  ;;  %20265 = vmatpush3.msra.mxu0 %v22080_v4  ;;  %v223_v23 = vand.u32 4294901760, %v222_v15  ;;  %v230_v24 = vand.u32 4294901760, %v229_v16  ;;  %s21995_s27 = smov 72   ;;  %s21996_s28 = smov 104  }
  0x14   :  { %v22108_v21 = vand.u32 4294901760, %v88_v19  ;;  %v22110_v22 = vand.u32 4294901760, %v91_v20  ;;  %20266 = vmatprep.subr.mxu0 %v22082_v5  ;;  %v210_v25 = vsub.f32 %v208_v11, %v209_v17  ;;  %v217_v26 = vsub.f32 %v215_v12, %v216_v18  ;;  %s21997_s29 = smov 40   ;;  %s24225_s30 = smov 16  }
  0x15   :  { %20267 = vmatpush3.msra.mxu0 %v22082_v5  ;;  %v224_v29 = vsub.f32 %v222_v15, %v223_v23  ;;  %v231_v32 = vsub.f32 %v229_v16, %v230_v24  ;;  %s24223_s14 = smov 24  }
  0x16   :  { %v163_v27 = vsub.f32 %v88_v19, %v22108_v21  ;;  %v173_v28 = vsub.f32 %v91_v20, %v22110_v22  ;;  %v211_v30 = vand.u32 4294901760, %v210_v25  ;;  %20268 = vmatprep.subr.mxu0 %v22087_v9  ;;  %v218_v31 = vand.u32 4294901760, %v217_v26  ;;  %20281 = vmatprep.mubr.f32.mxu1 %v22108_v21 }
  0x17   :  { %20269 = vmatpush3.msra.mxu0 %v22087_v9  ;;  %v225_v35 = vand.u32 4294901760, %v224_v29  ;;  %v232_v38 = vand.u32 4294901760, %v231_v32 }
  0x18   :  { %v164_v33 = vand.u32 4294901760, %v163_v27  ;;  %v174_v34 = vand.u32 4294901760, %v173_v28  ;;  %20273 = vmatprep.subr.mxu1 %v211_v30  ;;  %20284 = vmatprep.subr.mxu0 %v208_v11 }
  0x19   :  { %20274 = vmatpush3.msra.mxu1 %v211_v30 }
  0x1a   :  { %v165_v36 = vsub.f32 %v163_v27, %v164_v33  ;;  %v175_v37 = vsub.f32 %v173_v28, %v174_v34  ;;  %20275 = vmatprep.subr.mxu1 %v218_v31 }
  0x1b   :  { %20276 = vmatpush3.msra.mxu1 %v218_v31 }
  0x1c   :  { %v166_v39 = vand.u32 4294901760, %v165_v36  ;;  %v176_v40 = vand.u32 4294901760, %v175_v37  ;;  %20277 = vmatprep.subr.mxu1 %v225_v35 }
  0x1d   :  { %20278 = vmatpush3.msra.mxu1 %v225_v35 }
  0x1e   :  { %20270 = vmatprep.mubr.f32.mxu0 %v166_v39  ;;  %20279 = vmatprep.subr.mxu1 %v232_v38 }
  0x1f   :  { %20271 = vmatmul.mubr.f32.vlgmr.msra.gmra.mxu0 %v176_v40  ;;  %20280 = vmatpush3.msra.mxu1 %v232_v38 }
  0x20   :  { %20285 = vmatpush3.msra.mxu0 %v208_v11  ;;  %20282 = vmatmul.mubr.f32.vlgmr.msra.gmra.mxu1 %v22110_v22 }
  0x21   :  { %20286 = vmatprep.subr.mxu0 %v215_v12  ;;  %20295 = vmatprep.subr.mxu1 %v22078_v3 }
  0x22   :  { %20287 = vmatpush3.msra.mxu0 %v215_v12  ;;  %20296 = vmatpush3.msra.mxu1 %v22078_v3 }
  0x23   :  { %20288 = vmatprep.subr.mxu0 %v222_v15  ;;  %20292 = vmatprep.mubr.f32.mxu0 %v163_v27 }
  0x24   :  { %20289 = vmatpush3.msra.mxu0 %v222_v15  ;;  %20297 = vmatprep.subr.mxu1 %v22080_v4 }
  0x25   :  { %20290 = vmatprep.subr.mxu0 %v229_v16  ;;  %20298 = vmatpush3.msra.mxu1 %v22080_v4 }
  0x26   :  { %20291 = vmatpush3.msra.mxu0 %v229_v16  ;;  %20299 = vmatprep.subr.mxu1 %v22082_v5 }
  0x27   :  { %20293 = vmatmul.mubr.f32.vlgmr.msra.gmra.mxu0 %v173_v28  ;;  %20306 = vmatprep.subr.mxu0 %v209_v17 }
  0x28   :  { %20307 = vmatpush3.msra.mxu0 %v209_v17  ;;  %20300 = vmatpush3.msra.mxu1 %v22082_v5 }
  0x29   :  { %20308 = vmatprep.subr.mxu0 %v216_v18  ;;  %20301 = vmatprep.subr.mxu1 %v22087_v9 }
  0x2a   :  { %20309 = vmatpush3.msra.mxu0 %v216_v18  ;;  %20302 = vmatpush3.msra.mxu1 %v22087_v9 }
  0x2b   :  { %20303 = vmatprep.mubr.f32.mxu1 %v164_v33  ;;  %20310 = vmatprep.subr.mxu0 %v223_v23 }
  0x2c   :  { %20304 = vmatmul.mubr.f32.vlgmr.msra.gmra.mxu1 %v174_v34  ;;  %20311 = vmatpush3.msra.mxu0 %v223_v23 }
  0x2d   :  { %20317 = vmatprep.subr.mxu1 %v22078_v3  ;;  %20312 = vmatprep.subr.mxu0 %v230_v24 }
  0x2e   :  { %20318 = vmatpush3.msra.mxu1 %v22078_v3  ;;  %20313 = vmatpush3.msra.mxu0 %v230_v24 }
  0x2f   :  { %20314 = vmatprep.mubr.f32.mxu0 %v22108_v21  ;;  %20319 = vmatprep.subr.mxu1 %v22080_v4 }
  0x30   :  { %20315 = vmatmul.mubr.f32.vlgmr.msra.gmra.mxu0 %v22110_v22  ;;  %20320 = vmatpush3.msra.mxu1 %v22080_v4 }
  0x31   :  { %20325 = vmatprep.mubr.f32.mxu1 %v22108_v21  ;;  %20321 = vmatprep.subr.mxu1 %v22082_v5 }
  0x32   :  { %20322 = vmatpush3.msra.mxu1 %v22082_v5  ;;  %20328 = vmatprep.subr.mxu0 %v21985_v51 }
  0x33   :  { %20323 = vmatprep.subr.mxu1 %v22087_v9  ;;  %20330 = vmatprep.mubr.msk.f32.mxu0 %vm21986_vm1, %v21985_v51 }
  0x34   :  { %20324 = vmatpush3.msra.mxu1 %v22087_v9 }
  0x35   :  { %20326 = vmatmul.mubr.f32.vlgmr.msra.gmra.mxu1 %v22110_v22  ;;  %20333 = vmatprep.subr.mxu1 %v21985_v51 }
  0x36   :  { %20335 = vmatprep.mubr.msk.f32.mxu1 %vm21986_vm1, %v21985_v51 }
  0xdf   :  { %v20272_v41 = vpop.f32.mrf.mxu0 }
  0xe0   :  { %v20283_v42 = vpop.f32.mrf.mxu1 }
  0xe1   :  { %v168_v43 = vpop.f32.mrf.mxu0  ;;  %v276_v52 = vadd.f32 %v20283_v42, %v20272_v41 }
  0xe2   :  { %v269_v44 = vpop.f32.mrf.mxu1 }
  0xe3   :  { %v270_v47 = vadd.f32 %v269_v44, %v168_v43 }
  0xe7   :  { %v20294_v45 = vpop.f32.mrf.mxu0 }
  0xe8   :  { %v363_v56 = vadd.f32 %v20294_v45, %v276_v52 }
  0xe9   :  { %v355_v48 = vpop.f32.mrf.mxu0 }
  0xea   :  { %v356_v53 = vadd.f32 %v355_v48, %v270_v47 }
  0xec   :  { %v20305_v46 = vpop.f32.mrf.mxu1 }
  0xed   :  { %v448_v58 = vadd.f32 %v20305_v46, %v363_v56 }
  0xee   :  { %v439_v49 = vpop.f32.mrf.mxu1 }
  0xef   :  { %v440_v54 = vadd.f32 %v439_v49, %v356_v53 }
  0xf0   :  { %v20316_v50 = vpop.f32.mrf.mxu0 }
  0xf1   :  { %v537_v62 = vadd.f32 %v20316_v50, %v448_v58 }
  0xf2   :  { %v530_v55 = vpop.f32.mrf.mxu0 }
  0xf3   :  { %v531_v59 = vadd.f32 %v530_v55, %v440_v54 }
  0xf5   :  { %v20327_v57 = vpop.f32.mrf.mxu1 }
  0xf6   :  { %v22150_v63 = vadd.f32 %v20327_v57, %v537_v62 }
  0xf7   :  { %v611_v60 = vpop.f32.mrf.mxu1 }
  0xf8   :  { %v22146_v61 = vadd.f32 %v611_v60, %v531_v59  ;;  %v1078_v4 = vsel %vm624_vm2, %v22150_v63, 0 }
  0xf9   :  { %v22159_v8 = vand.u32 4294901760, %v1078_v4 }
  0xfa   :  { %622 = vrot.lane.b32.xlu0 %v22146_v61, %s21987_s1  ;;  %v625_v0 = vsel %vm624_vm2, %v22146_v61, 0 }
  0xfb   :  { %v695_v1 = vand.u32 4294901760, %v625_v0  ;;  %v1149_v16 = vsub.f32 %v1078_v4, %v22159_v8 }
  0xfd   :  { %v696_v2 = vsub.f32 %v625_v0, %v695_v1  ;;  %v1150_v20 = vand.u32 4294901760, %v1149_v16 }
  0xfe   :  { %1076 = vrot.lane.b32.xlu0 %v22150_v63, %s21987_s1 }
  0xff   :  { %v697_v3 = vand.u32 4294901760, %v696_v2  ;;  %v1151_v23 = vsub.f32 %v1149_v16, %v1150_v20 }
 0x101   :  { %v698_v7 = vsub.f32 %v696_v2, %v697_v3  ;;  %v1152_v25 = vand.u32 4294901760, %v1151_v23 }
 0x103   :  { %v699_v15 = vand.u32 4294901760, %v698_v7 }
 0x16c   :  { %v623_v5 = vpop.permute.xlu0 %622 }
 0x16d   :  { %v627_v6 = vsel %vm624_vm2, %v623_v5, 0 }
 0x16e   :  { %v660_v9 = vand.u32 4294901760, %v627_v6 }
 0x170   :  { %v737_v10 = vsub.f32 %v627_v6, %v660_v9  ;;  %20329 = vmatpush3.xpose.msra.mxu0 %v660_v9  ;;  %v1077_v11 = vpop.permute.xlu0 %1076 }
 0x171   :  { %v1080_v12 = vsel %vm624_vm2, %v1077_v11, 0  ;;  %20338 = vmatprep.subr.mxu0 %v21985_v51 }
 0x172   :  { %v738_v17 = vand.u32 4294901760, %v737_v10  ;;  %v1113_v18 = vand.u32 4294901760, %v1080_v12 }
 0x173   :  { %20331 = vmatmul.mubr.f32.vlgmr.msra.gmra.mxu0 %v699_v15 }
 0x174   :  { %v739_v19 = vsub.f32 %v737_v10, %v738_v17  ;;  %20339 = vmatpush3.xpose.msra.mxu0 %v737_v10  ;;  %20340 = vmatprep.mubr.msk.f32.mxu0 %vm21986_vm1, %v21985_v51  ;;  %v1190_v22 = vsub.f32 %v1080_v12, %v1113_v18 }
 0x175   :  { %20348 = vmatprep.subr.mxu0 %v21985_v51 }
 0x176   :  { %v740_v21 = vand.u32 4294901760, %v739_v19  ;;  %v1191_v24 = vand.u32 4294901760, %v1190_v22 }
 0x177   :  { %20341 = vmatmul.mubr.f32.vlgmr.msra.gmra.mxu0 %v696_v2 }
 0x178   :  { %20334 = vmatpush3.xpose.msra.mxu1 %v740_v21  ;;  %20349 = vmatpush3.xpose.msra.mxu0 %v738_v17  ;;  %v1192_v26 = vsub.f32 %v1190_v22, %v1191_v24 }
 0x179   :  { %20350 = vmatprep.mubr.msk.f32.mxu0 %vm21986_vm1, %v21985_v51  ;;  %20343 = vmatprep.subr.mxu1 %v21985_v51 }
 0x17a   :  { %20358 = vmatprep.subr.mxu0 %v21985_v51  ;;  %v1193_v27 = vand.u32 4294901760, %v1192_v26 }
 0x17b   :  { %20336 = vmatmul.mubr.f32.vlgmr.msra.gmra.mxu1 %v695_v1  ;;  %20351 = vmatmul.mubr.f32.vlgmr.msra.gmra.mxu0 %v695_v1 }
 0x17c   :  { %20344 = vmatpush3.xpose.msra.mxu1 %v660_v9  ;;  %20359 = vmatpush3.xpose.msra.mxu0 %v1113_v18 }
 0x17d   :  { %20345 = vmatprep.mubr.msk.f32.mxu1 %vm21986_vm1, %v21985_v51  ;;  %20360 = vmatprep.mubr.msk.f32.mxu0 %vm21986_vm1, %v21985_v51 }
 0x17e   :  { %20353 = vmatprep.subr.mxu1 %v21985_v51  ;;  %20368 = vmatprep.subr.mxu0 %v21985_v51 }
 0x17f   :  { %20346 = vmatmul.mubr.f32.vlgmr.msra.gmra.mxu1 %v697_v3  ;;  %20361 = vmatmul.mubr.f32.vlgmr.msra.gmra.mxu0 %v1152_v25 }
 0x180   :  { %20354 = vmatpush3.xpose.msra.mxu1 %v660_v9  ;;  %20369 = vmatpush3.xpose.msra.mxu0 %v1190_v22 }
 0x181   :  { %20355 = vmatprep.mubr.msk.f32.mxu1 %vm21986_vm1, %v21985_v51  ;;  %20370 = vmatprep.mubr.msk.f32.mxu0 %vm21986_vm1, %v21985_v51 }
 0x182   :  { %20363 = vmatprep.subr.mxu1 %v21985_v51  ;;  %20378 = vmatprep.subr.mxu0 %v21985_v51 }
 0x183   :  { %20356 = vmatmul.mubr.f32.vlgmr.msra.gmra.mxu1 %v695_v1  ;;  %20371 = vmatmul.mubr.f32.vlgmr.msra.gmra.mxu0 %v1149_v16 }
 0x184   :  { %20364 = vmatpush3.xpose.msra.mxu1 %v1193_v27  ;;  %20379 = vmatpush3.xpose.msra.mxu0 %v1191_v24 }
 0x185   :  { %20365 = vmatprep.mubr.msk.f32.mxu1 %vm21986_vm1, %v21985_v51  ;;  %20380 = vmatprep.mubr.msk.f32.mxu0 %vm21986_vm1, %v21985_v51 }
 0x186   :  { %20373 = vmatprep.subr.mxu1 %v21985_v51  ;;  %20388 = vmatprep.subr.mxu0 %v21985_v51 }
 0x187   :  { %20366 = vmatmul.mubr.f32.vlgmr.msra.gmra.mxu1 %v22159_v8  ;;  %20381 = vmatmul.mubr.f32.vlgmr.msra.gmra.mxu0 %v22159_v8 }
 0x188   :  { %20374 = vmatpush3.xpose.msra.mxu1 %v1113_v18  ;;  %20375 = vmatprep.mubr.msk.f32.mxu1 %vm21986_vm1, %v21985_v51 }
 0x189   :  { %20383 = vmatprep.subr.mxu1 %v21985_v51  ;;  %20390 = vmatprep.mubr.msk.f32.mxu0 %vm21986_vm1, %v21985_v51 }
 0x18b   :  { %20376 = vmatmul.mubr.f32.vlgmr.msra.gmra.mxu1 %v1150_v20 }
 0x18c   :  { %20384 = vmatpush3.xpose.msra.mxu1 %v1113_v18  ;;  %20385 = vmatprep.mubr.msk.f32.mxu1 %vm21986_vm1, %v21985_v51 }
 0x18d   :  { %20393 = vmatprep.subr.mxu1 %v21985_v51 }
 0x18f   :  { %20386 = vmatmul.mubr.f32.vlgmr.msra.gmra.mxu1 %v22159_v8 }
 0x190   :  { %20395 = vmatprep.mubr.msk.f32.mxu1 %vm21986_vm1, %v21985_v51 }
 0x233   :  { %v701_v28 = vpop.f32.mrf.mxu0 }
 0x235   :  { %v20332_v29 = vpop.f32.mrf.mxu0 }
 0x237   :  { %v851_v30 = vpop.f32.mrf.mxu0 }
 0x239   :  { %v20342_v31 = vpop.f32.mrf.mxu0 }
 0x23b   :  { %v777_v32 = vpop.f32.mrf.mxu1  ;;  %v999_v33 = vpop.f32.mrf.mxu0 }
 0x23c   :  { %v778_v34 = vadd.f32 %v777_v32, %v701_v28 }
 0x23d   :  { %v20337_v35 = vpop.f32.mrf.mxu1  ;;  %v20352_v36 = vpop.f32.mrf.mxu0 }
 0x23e   :  { %v852_v37 = vadd.f32 %v851_v30, %v778_v34 }
 0x23f   :  { %v925_v38 = vpop.f32.mrf.mxu1  ;;  %v1154_v39 = vpop.f32.mrf.mxu0 }
 0x240   :  { %v926_v40 = vadd.f32 %v925_v38, %v852_v37 }
 0x241   :  { %v20347_v41 = vpop.f32.mrf.mxu1  ;;  %v20362_v42 = vpop.f32.mrf.mxu0 }
 0x242   :  { %v1000_v43 = vadd.f32 %v999_v33, %v926_v40 }
 0x243   :  { %v1071_v44 = vpop.f32.mrf.mxu1  ;;  %v1304_v45 = vpop.f32.mrf.mxu0 }
 0x244   :  { %v1072_v46 = vadd.f32 %v1071_v44, %v1000_v43 }
 0x245   :  { %v20357_v47 = vpop.f32.mrf.mxu1  ;;  %v20372_v48 = vpop.f32.mrf.mxu0 }
 0x246   :  { %v1528_v49 = vsel %vm624_vm2, %v1072_v46, -inf }
 0x247   :  { %v1230_v50 = vpop.f32.mrf.mxu1  ;;  %1529 = vmax.xlane.f32.xlu1 %v1528_v49  ;;  %v1452_v52 = vpop.f32.mrf.mxu0 }
 0x248   :  { %v1231_v53 = vadd.f32 %v1230_v50, %v1154_v39 }
 0x249   :  { %v20367_v54 = vpop.f32.mrf.mxu1  ;;  %v20382_v55 = vpop.f32.mrf.mxu0 }
 0x24a   :  { %v1305_v56 = vadd.f32 %v1304_v45, %v1231_v53 }
 0x24b   :  { %v1378_v57 = vpop.f32.mrf.mxu1 }
 0x24c   :  { %v1379_v58 = vadd.f32 %v1378_v57, %v1305_v56 }
 0x24d   :  { %v20377_v59 = vpop.f32.mrf.mxu1 }
 0x24e   :  { %v1453_v60 = vadd.f32 %v1452_v52, %v1379_v58 }
 0x24f   :  { %v1524_v62 = vpop.f32.mrf.mxu1 }
 0x250   :  { %v1525_v0 = vadd.f32 %v1524_v62, %v1453_v60 }
 0x251   :  { %v20387_v1 = vpop.f32.mrf.mxu1 }
 0x252   :  { %v1531_v2 = vsel %vm624_vm2, %v1525_v0, -inf }
 0x253   :  { %1532 = vmax.xlane.f32.xlu1 %v1531_v2 }
 0x264   :  { %1550 = vrot.lane.b32.xlu1 %v22146_v61, %s21988_s19 }
 0x268   :  { %2002 = vrot.lane.b32.xlu1 %v22150_v63, %s21988_s19 }
 0x2d0   :  { %v1530_v3 = vpop.xlane.xlu1 %1529 }
 0x2d1   :  { %v1534_v4 = vsub.f32 %v1072_v46, %v1530_v3 }
 0x2d3   :  { %v1536_v5 = vmul.f32 1.442695, %v1534_v4 }
 0x2d5   :  { %21864 = vpow2.f32 %v1536_v5 }
 0x2dc   :  { %v1533_v6 = vpop.xlane.xlu1 %1532 }
 0x2dd   :  { %v1535_v7 = vsub.f32 %v1525_v0, %v1533_v6 }
 0x2df   :  { %v1538_v8 = vmul.f32 1.442695, %v1535_v7 }
 0x2e0   :  { %v1551_v9 = vpop.permute.xlu1 %1550 }
 0x2e1   :  { %21866 = vpow2.f32 %v1538_v8  ;;  %v1587_v10 = vand.u32 4294901760, %v1551_v9 }
 0x2e2   :  { %v21865_v11 = vpop.eup %21864 }
 0x2e3   :  { %v22208_v12 = vsub.f32 %v1551_v9, %v1587_v10  ;;  %20389 = vmatpush3.msra.mxu0 %v1587_v10  ;;  %v1540_v15 = vsel %vm624_vm2, %v21865_v11, 0.0 }
 0x2e4   :  { %1541 = vadd.xlane.f32.xlu0 %v1540_v15  ;;  %20398 = vmatprep.subr.mxu0 %v21985_v51  ;;  %v2003_v22 = vpop.permute.xlu1 %2002 }
 0x2e5   :  { %v1665_v16 = vand.u32 4294901760, %v22208_v12  ;;  %v2039_v23 = vand.u32 4294901760, %v2003_v22 }
 0x2e7   :  { %v1666_v17 = vsub.f32 %v22208_v12, %v1665_v16  ;;  %v22226_v26 = vsub.f32 %v2003_v22, %v2039_v23 }
 0x2e9   :  { %v1667_v18 = vand.u32 4294901760, %v1666_v17  ;;  %v2117_v31 = vand.u32 4294901760, %v22226_v26 }
 0x2eb   :  { %20394 = vmatpush3.msra.mxu1 %v1667_v18  ;;  %v2118_v36 = vsub.f32 %v22226_v26, %v2117_v31 }
 0x2ec   :  { %20403 = vmatprep.subr.mxu1 %v21985_v51 }
 0x2ed   :  { %v2119_v41 = vand.u32 4294901760, %v2118_v36 }
 0x2ee   :  { %v21867_v19 = vpop.eup %21866 }
 0x2ef   :  { %v1543_v20 = vsel %vm624_vm2, %v21867_v19, 0.0 }
 0x2f0   :  { %1544 = vadd.xlane.f32.xlu1 %v1543_v20 }
 0x2fa   :  { %2910 = vrot.lane.b32.xlu0 %v22150_v63, %s21989_s20 }
 0x301   :  { %2456 = vrot.lane.b32.xlu1 %v22146_v61, %s21989_s20 }
 0x305   :  { %2454 = vrot.lane.b32.xlu1 %v22146_v61, %s21990_s21 }
 0x309   :  { %2908 = vrot.lane.b32.xlu1 %v22150_v63, %s21990_s21 }
 0x36d   :  { %v1542_v21 = vpop.xlane.xlu0 %1541 }
 0x36e   :  { %21868 = vrcp.f32 %v1542_v21 }
 0x371   :  { %v2911_v44 = vpop.permute.xlu0 %2910 }
 0x372   :  { %v2914_v49 = vsel %vm624_vm2, %v2911_v44, 0 }
 0x373   :  { %v22263_v54 = vand.u32 4294901760, %v2914_v49 }
 0x375   :  { %v22276_v59 = vsub.f32 %v2914_v49, %v22263_v54 }
 0x377   :  { %v3025_v1 = vand.u32 4294901760, %v22276_v59 }
 0x379   :  { %v1545_v24 = vpop.xlane.xlu1 %1544  ;;  %v3026_v5 = vsub.f32 %v22276_v59, %v3025_v1 }
 0x37a   :  { %21870 = vrcp.f32 %v1545_v24 }
 0x37b   :  { %v21869_v25 = vpop.eup %21868  ;;  %v3027_v8 = vand.u32 4294901760, %v3026_v5 }
 0x37c   :  { %v1547_v27 = vmul.f32 %v21869_v25, %v21865_v11 }
 0x37d   :  { %v2457_v28 = vpop.permute.xlu1 %2456 }
 0x37e   :  { %v1554_v29 = vsel %vm624_vm2, %v1547_v27, 0  ;;  %v2460_v32 = vsel %vm624_vm2, %v2457_v28, 0 }
 0x37f   :  { %v1622_v30 = vand.u32 4294901760, %v1554_v29  ;;  %v22234_v35 = vand.u32 4294901760, %v2460_v32 }
 0x381   :  { %v1623_v33 = vsub.f32 %v1554_v29, %v1622_v30  ;;  %20396 = vmatmul.mubr.f32.vlgmr.msra.gmra.mxu1 %v1622_v30  ;;  %v22243_v40 = vsub.f32 %v2460_v32, %v22234_v35  ;;  %v2455_v43 = vpop.permute.xlu1 %2454 }
 0x382   :  { %20404 = vmatpush3.msra.mxu1 %v1587_v10  ;;  %20405 = vmatprep.mubr.msk.f32.mxu1 %vm21986_vm1, %v21985_v51  ;;  %v2458_v48 = vsel %vm624_vm2, %v2455_v43, 0 }
 0x383   :  { %20413 = vmatprep.subr.mxu1 %v21985_v51  ;;  %v1624_v34 = vand.u32 4294901760, %v1623_v33  ;;  %v2571_v47 = vand.u32 4294901760, %v22243_v40  ;;  %v22258_v52 = vand.u32 4294901760, %v2458_v48 }
 0x385   :  { %20406 = vmatmul.mubr.f32.vlgmr.msra.gmra.mxu1 %v1624_v34  ;;  %v1625_v37 = vsub.f32 %v1623_v33, %v1624_v34  ;;  %v2572_v55 = vsub.f32 %v22243_v40, %v2571_v47  ;;  %v2529_v57 = vsub.f32 %v2458_v48, %v22258_v52  ;;  %v2909_v62 = vpop.permute.xlu1 %2908 }
 0x386   :  { %20414 = vmatpush3.msra.mxu1 %v1587_v10  ;;  %20415 = vmatprep.mubr.msk.f32.mxu1 %vm21986_vm1, %v21985_v51  ;;  %v2912_v2 = vsel %vm624_vm2, %v2909_v62, 0 }
 0x387   :  { %v21871_v38 = vpop.eup %21870  ;;  %20423 = vmatprep.subr.mxu1 %v21985_v51  ;;  %v1626_v39 = vand.u32 4294901760, %v1625_v37  ;;  %v2573_v60 = vand.u32 4294901760, %v2572_v55  ;;  %v2530_v0 = vand.u32 4294901760, %v2529_v57  ;;  %v2982_v4 = vand.u32 4294901760, %v2912_v2 }
 0x388   :  { %v1549_v42 = vmul.f32 %v21871_v38, %v21867_v19 }
 0x389   :  { %20391 = vmatmul.mubr.f32.vlgmr.msra.gmra.mxu0 %v1626_v39  ;;  %20416 = vmatmul.mubr.f32.vlgmr.msra.gmra.mxu1 %v1622_v30  ;;  %v2531_v3 = vsub.f32 %v2529_v57, %v2530_v0  ;;  %v2983_v7 = vsub.f32 %v2912_v2, %v2982_v4 }
 0x38a   :  { %20399 = vmatpush3.msra.mxu0 %v22208_v12  ;;  %20424 = vmatpush3.msra.mxu1 %v2119_v41  ;;  %v2006_v45 = vsel %vm624_vm2, %v1549_v42, 0 }
 0x38b   :  { %20400 = vmatprep.mubr.msk.f32.mxu0 %vm21986_vm1, %v21985_v51  ;;  %20408 = vmatprep.subr.mxu0 %v21985_v51  ;;  %v2074_v46 = vand.u32 4294901760, %v2006_v45  ;;  %v2532_v6 = vand.u32 4294901760, %v2531_v3  ;;  %v2984_v9 = vand.u32 4294901760, %v2983_v7 }
 0x38c   :  { %20425 = vmatprep.mubr.msk.f32.mxu1 %vm21986_vm1, %v21985_v51  ;;  %20433 = vmatprep.subr.mxu1 %v21985_v51 }
 0x38d   :  { %20401 = vmatmul.mubr.f32.vlgmr.msra.gmra.mxu0 %v1623_v33  ;;  %v2075_v50 = vsub.f32 %v2006_v45, %v2074_v46  ;;  %20426 = vmatmul.mubr.f32.vlgmr.msra.gmra.mxu1 %v2074_v46  ;;  %v2985_v10 = vsub.f32 %v2983_v7, %v2984_v9 }
 0x38e   :  { %20409 = vmatpush3.msra.mxu0 %v1665_v16  ;;  %20434 = vmatpush3.msra.mxu1 %v2039_v23 }
 0x38f   :  { %20410 = vmatprep.mubr.msk.f32.mxu0 %vm21986_vm1, %v21985_v51  ;;  %20418 = vmatprep.subr.mxu0 %v21985_v51  ;;  %v2076_v53 = vand.u32 4294901760, %v2075_v50  ;;  %v2986_v11 = vand.u32 4294901760, %v2985_v10 }
 0x390   :  { %20435 = vmatprep.mubr.msk.f32.mxu1 %vm21986_vm1, %v21985_v51  ;;  %20443 = vmatprep.subr.mxu1 %v21985_v51 }
 0x391   :  { %20411 = vmatmul.mubr.f32.vlgmr.msra.gmra.mxu0 %v1622_v30  ;;  %20436 = vmatmul.mubr.f32.vlgmr.msra.gmra.mxu1 %v2076_v53  ;;  %v2077_v56 = vsub.f32 %v2075_v50, %v2076_v53 }
 0x392   :  { %20419 = vmatpush3.msra.mxu0 %v2039_v23  ;;  %20444 = vmatpush3.msra.mxu1 %v2039_v23 }
 0x393   :  { %20420 = vmatprep.mubr.msk.f32.mxu0 %vm21986_vm1, %v21985_v51  ;;  %20428 = vmatprep.subr.mxu0 %v21985_v51  ;;  %v2078_v58 = vand.u32 4294901760, %v2077_v56 }
 0x394   :  { %20445 = vmatprep.mubr.msk.f32.mxu1 %vm21986_vm1, %v21985_v51  ;;  %20453 = vmatprep.subr.mxu1 %v21985_v51 }
 0x395   :  { %20421 = vmatmul.mubr.f32.vlgmr.msra.gmra.mxu0 %v2078_v58  ;;  %20446 = vmatmul.mubr.f32.vlgmr.msra.gmra.mxu1 %v2074_v46 }
 0x396   :  { %20429 = vmatpush3.msra.mxu0 %v22226_v26  ;;  %20454 = vmatpush3.xpose.msra.mxu1 %v2573_v60 }
 0x397   :  { %20430 = vmatprep.mubr.msk.f32.mxu0 %vm21986_vm1, %v21985_v51  ;;  %20438 = vmatprep.subr.mxu0 %v21985_v51 }
 0x398   :  { %20455 = vmatprep.mubr.msk.f32.mxu1 %vm21986_vm1, %v21985_v51  ;;  %20463 = vmatprep.subr.mxu1 %v21985_v51 }
 0x399   :  { %20431 = vmatmul.mubr.f32.vlgmr.msra.gmra.mxu0 %v2075_v50  ;;  %20456 = vmatmul.mubr.f32.vlgmr.msra.gmra.mxu1 %v22258_v52 }
 0x39a   :  { %20439 = vmatpush3.msra.mxu0 %v2117_v31  ;;  %20464 = vmatpush3.xpose.msra.mxu1 %v22234_v35 }
 0x39b   :  { %20440 = vmatprep.mubr.msk.f32.mxu0 %vm21986_vm1, %v21985_v51  ;;  %20448 = vmatprep.subr.mxu0 %v21985_v51 }
 0x39c   :  { %20465 = vmatprep.mubr.msk.f32.mxu1 %vm21986_vm1, %v21985_v51  ;;  %20473 = vmatprep.subr.mxu1 %v21985_v51 }
 0x39d   :  { %20441 = vmatmul.mubr.f32.vlgmr.msra.gmra.mxu0 %v2074_v46  ;;  %20466 = vmatmul.mubr.f32.vlgmr.msra.gmra.mxu1 %v2530_v0 }
 0x39e   :  { %20449 = vmatpush3.xpose.msra.mxu0 %v22234_v35  ;;  %20474 = vmatpush3.xpose.msra.mxu1 %v22234_v35 }
 0x39f   :  { %20450 = vmatprep.mubr.msk.f32.mxu0 %vm21986_vm1, %v21985_v51  ;;  %20458 = vmatprep.subr.mxu0 %v21985_v51 }
 0x3a0   :  { %20475 = vmatprep.mubr.msk.f32.mxu1 %vm21986_vm1, %v21985_v51  ;;  %20483 = vmatprep.subr.mxu1 %v21985_v51 }
 0x3a1   :  { %20451 = vmatmul.mubr.f32.vlgmr.msra.gmra.mxu0 %v2532_v6  ;;  %20476 = vmatmul.mubr.f32.vlgmr.msra.gmra.mxu1 %v22258_v52 }
 0x3a2   :  { %20459 = vmatpush3.xpose.msra.mxu0 %v22243_v40  ;;  %20484 = vmatpush3.xpose.msra.mxu1 %v3027_v8 }
 0x3a3   :  { %20460 = vmatprep.mubr.msk.f32.mxu0 %vm21986_vm1, %v21985_v51  ;;  %20468 = vmatprep.subr.mxu0 %v21985_v51 }
 0x3a4   :  { %20485 = vmatprep.mubr.msk.f32.mxu1 %vm21986_vm1, %v21985_v51  ;;  %20493 = vmatprep.subr.mxu1 %v21985_v51 }
 0x3a5   :  { %20461 = vmatmul.mubr.f32.vlgmr.msra.gmra.mxu0 %v2529_v57  ;;  %20486 = vmatmul.mubr.f32.vlgmr.msra.gmra.mxu1 %v2982_v4 }
 0x3a6   :  { %20469 = vmatpush3.xpose.msra.mxu0 %v2571_v47  ;;  %20494 = vmatpush3.xpose.msra.mxu1 %v22263_v54 }
 0x3a7   :  { %20470 = vmatprep.mubr.msk.f32.mxu0 %vm21986_vm1, %v21985_v51  ;;  %20478 = vmatprep.subr.mxu0 %v21985_v51 }
 0x3a8   :  { %20495 = vmatprep.mubr.msk.f32.mxu1 %vm21986_vm1, %v21985_v51  ;;  %20503 = vmatprep.subr.mxu1 %v21985_v51 }
 0x3a9   :  { %20471 = vmatmul.mubr.f32.vlgmr.msra.gmra.mxu0 %v22258_v52  ;;  %20496 = vmatmul.mubr.f32.vlgmr.msra.gmra.mxu1 %v2984_v9 }
 0x3aa   :  { %20479 = vmatpush3.xpose.msra.mxu0 %v22263_v54  ;;  %20504 = vmatpush3.xpose.msra.mxu1 %v22263_v54 }
 0x3ab   :  { %20480 = vmatprep.mubr.msk.f32.mxu0 %vm21986_vm1, %v21985_v51  ;;  %20488 = vmatprep.subr.mxu0 %v21985_v51 }
 0x3ac   :  { %20505 = vmatprep.mubr.msk.f32.mxu1 %vm21986_vm1, %v21985_v51  ;;  %20513 = vmatprep.subr.mxu1 %v21985_v51 }
 0x3ad   :  { %20481 = vmatmul.mubr.f32.vlgmr.msra.gmra.mxu0 %v2986_v11  ;;  %20506 = vmatmul.mubr.f32.vlgmr.msra.gmra.mxu1 %v2982_v4 }
 0x3ae   :  { %20489 = vmatpush3.xpose.msra.mxu0 %v22276_v59  ;;  %20490 = vmatprep.mubr.msk.f32.mxu0 %vm21986_vm1, %v21985_v51 }
 0x3af   :  { %20498 = vmatprep.subr.mxu0 %v21985_v51  ;;  %20515 = vmatprep.mubr.msk.f32.mxu1 %vm21986_vm1, %v21985_v51 }
 0x3b1   :  { %20491 = vmatmul.mubr.f32.vlgmr.msra.gmra.mxu0 %v2983_v7 }
 0x3b2   :  { %20499 = vmatpush3.xpose.msra.mxu0 %v3025_v1  ;;  %20500 = vmatprep.mubr.msk.f32.mxu0 %vm21986_vm1, %v21985_v51 }
 0x3b3   :  { %20508 = vmatprep.subr.mxu0 %v21985_v51 }
 0x3b5   :  { %20501 = vmatmul.mubr.f32.vlgmr.msra.gmra.mxu0 %v2982_v4 }
 0x3b6   :  { %20510 = vmatprep.mubr.msk.f32.mxu0 %vm21986_vm1, %v21985_v51 }
 0x441   :  { %v1704_v12 = vpop.f32.mrf.mxu1 }
 0x443   :  { %v20397_v15 = vpop.f32.mrf.mxu1 }
 0x445   :  { %v1852_v16 = vpop.f32.mrf.mxu1 }
 0x447   :  { %v20407_v17 = vpop.f32.mrf.mxu1 }
 0x449   :  { %v1628_v18 = vpop.f32.mrf.mxu0  ;;  %v1998_v19 = vpop.f32.mrf.mxu1 }
 0x44a   :  { %v1705_v20 = vadd.f32 %v1704_v12, %v1628_v18 }
 0x44b   :  { %v20392_v21 = vpop.f32.mrf.mxu0  ;;  %v20417_v22 = vpop.f32.mrf.mxu1 }
 0x44d   :  { %v1778_v23 = vpop.f32.mrf.mxu0  ;;  %v2156_v24 = vpop.f32.mrf.mxu1 }
 0x44e   :  { %v1779_v25 = vadd.f32 %v1778_v23, %v1705_v20 }
 0x44f   :  { %v20402_v26 = vpop.f32.mrf.mxu0  ;;  %v20427_v27 = vpop.f32.mrf.mxu1 }
 0x450   :  { %v1853_v28 = vadd.f32 %v1852_v16, %v1779_v25 }
 0x451   :  { %v1926_v29 = vpop.f32.mrf.mxu0  ;;  %v2304_v30 = vpop.f32.mrf.mxu1 }
 0x452   :  { %v1927_v31 = vadd.f32 %v1926_v29, %v1853_v28 }
 0x453   :  { %v20412_v32 = vpop.f32.mrf.mxu0  ;;  %v20437_v33 = vpop.f32.mrf.mxu1 }
 0x454   :  { %v22346_v34 = vadd.f32 %v1998_v19, %v1927_v31 }
 0x455   :  { %v2080_v35 = vpop.f32.mrf.mxu0  ;;  %v2450_v36 = vpop.f32.mrf.mxu1 }
 0x456   :  { %v2157_v37 = vadd.f32 %v2156_v24, %v2080_v35 }
 0x457   :  { %v20422_v38 = vpop.f32.mrf.mxu0  ;;  %v20447_v39 = vpop.f32.mrf.mxu1 }
 0x459   :  { %v2230_v40 = vpop.f32.mrf.mxu0  ;;  %v2610_v41 = vpop.f32.mrf.mxu1 }
 0x45a   :  { %v2231_v42 = vadd.f32 %v2230_v40, %v2157_v37 }
 0x45b   :  { %v20432_v43 = vpop.f32.mrf.mxu0  ;;  %v20457_v44 = vpop.f32.mrf.mxu1 }
 0x45c   :  { %v2305_v45 = vadd.f32 %v2304_v30, %v2231_v42 }
 0x45d   :  { %v2378_v46 = vpop.f32.mrf.mxu0  ;;  %v2758_v47 = vpop.f32.mrf.mxu1 }
 0x45e   :  { %v2379_v48 = vadd.f32 %v2378_v46, %v2305_v45 }
 0x45f   :  { %v20442_v49 = vpop.f32.mrf.mxu0  ;;  %v20467_v50 = vpop.f32.mrf.mxu1 }
 0x460   :  { %v22348_v52 = vadd.f32 %v2450_v36, %v2379_v48 }
 0x461   :  { %v2534_v53 = vpop.f32.mrf.mxu0  ;;  %v2904_v54 = vpop.f32.mrf.mxu1 }
 0x462   :  { %v2611_v57 = vadd.f32 %v2610_v41, %v2534_v53 }
 0x463   :  { %v20452_v55 = vpop.f32.mrf.mxu0  ;;  %v20477_v56 = vpop.f32.mrf.mxu1 }
 0x465   :  { %v2684_v58 = vpop.f32.mrf.mxu0  ;;  %v3064_v59 = vpop.f32.mrf.mxu1 }
 0x466   :  { %v2685_v60 = vadd.f32 %v2684_v58, %v2611_v57 }
 0x467   :  { %v20462_v62 = vpop.f32.mrf.mxu0  ;;  %v20487_v0 = vpop.f32.mrf.mxu1 }
 0x468   :  { %v2759_v1 = vadd.f32 %v2758_v47, %v2685_v60 }
 0x469   :  { %v2832_v2 = vpop.f32.mrf.mxu0  ;;  %v3212_v3 = vpop.f32.mrf.mxu1 }
 0x46a   :  { %v2833_v4 = vadd.f32 %v2832_v2, %v2759_v1 }
 0x46b   :  { %v20472_v5 = vpop.f32.mrf.mxu0  ;;  %v20497_v6 = vpop.f32.mrf.mxu1 }
 0x46c   :  { %v2905_v7 = vadd.f32 %v2904_v54, %v2833_v4 }
 0x46d   :  { %v2988_v8 = vpop.f32.mrf.mxu0  ;;  %v3358_v9 = vpop.f32.mrf.mxu1 }
 0x46e   :  { %v3362_v10 = vsel %vm624_vm2, %v2905_v7, -inf  ;;  %v3065_v15 = vadd.f32 %v3064_v59, %v2988_v8 }
 0x46f   :  { %v20507_v11 = vpop.f32.mrf.mxu1  ;;  %3363 = vmax.xlane.f32.xlu1 %v3362_v10  ;;  %v20482_v12 = vpop.f32.mrf.mxu0 }
 0x471   :  { %v3138_v16 = vpop.f32.mrf.mxu0 }
 0x472   :  { %v3139_v17 = vadd.f32 %v3138_v16, %v3065_v15 }
 0x473   :  { %v20492_v18 = vpop.f32.mrf.mxu0 }
 0x474   :  { %v3213_v19 = vadd.f32 %v3212_v3, %v3139_v17 }
 0x475   :  { %v3286_v20 = vpop.f32.mrf.mxu0 }
 0x476   :  { %v3287_v21 = vadd.f32 %v3286_v20, %v3213_v19 }
 0x477   :  { %v20502_v22 = vpop.f32.mrf.mxu0 }
 0x478   :  { %v3359_v23 = vadd.f32 %v3358_v9, %v3287_v21 }
 0x47a   :  { %v3365_v24 = vsel %vm624_vm2, %v3359_v23, -inf }
 0x47b   :  { %3366 = vmax.xlane.f32.xlu0 %v3365_v24 }
 0x491   :  { %3836 = vrot.lane.b32.xlu0 %v22150_v63, %s21991_s22 }
 0x495   :  { %4744 = vrot.lane.b32.xlu0 %v22150_v63, %s21992_s23 }
 0x4f8   :  { %v3364_v25 = vpop.xlane.xlu1 %3363 }
 0x4f9   :  { %v3368_v26 = vsub.f32 %v2905_v7, %v3364_v25 }
 0x4fb   :  { %v3370_v27 = vmul.f32 1.442695, %v3368_v26 }
 0x4fd   :  { %21872 = vpow2.f32 %v3370_v27 }
 0x504   :  { %v3367_v30 = vpop.xlane.xlu0 %3366 }
 0x505   :  { %v3369_v31 = vsub.f32 %v3359_v23, %v3367_v30 }
 0x507   :  { %v3372_v32 = vmul.f32 1.442695, %v3369_v31 }
 0x508   :  { %v3837_v40 = vpop.permute.xlu0 %3836 }
 0x509   :  { %21874 = vpow2.f32 %v3372_v32  ;;  %v22370_v42 = vand.u32 4294901760, %v3837_v40 }
 0x50a   :  { %v21873_v28 = vpop.eup %21872 }
 0x50b   :  { %v3374_v29 = vsel %vm624_vm2, %v21873_v28, 0.0  ;;  %v22373_v46 = vsub.f32 %v3837_v40, %v22370_v42 }
 0x50c   :  { %3375 = vadd.xlane.f32.xlu1 %v3374_v29  ;;  %v4745_v5 = vpop.permute.xlu0 %4744 }
 0x50d   :  { %v3951_v50 = vand.u32 4294901760, %v22373_v46  ;;  %v4748_v10 = vsel %vm624_vm2, %v4745_v5, 0 }
 0x50e   :  { %v22414_v16 = vand.u32 4294901760, %v4748_v10 }
 0x50f   :  { %v3952_v55 = vsub.f32 %v22373_v46, %v3951_v50 }
 0x510   :  { %v22425_v21 = vsub.f32 %v4748_v10, %v22414_v16 }
 0x511   :  { %v3953_v58 = vand.u32 4294901760, %v3952_v55 }
 0x512   :  { %v4859_v25 = vand.u32 4294901760, %v22425_v21 }
 0x514   :  { %v4860_v29 = vsub.f32 %v22425_v21, %v4859_v25 }
 0x516   :  { %v22359_v33 = vpop.eup %21874  ;;  %v4861_v32 = vand.u32 4294901760, %v4860_v29 }
 0x517   :  { %v3377_v35 = vsel %vm624_vm2, %v22359_v33, 0.0 }
 0x51d   :  { %3384 = vrot.lane.b32.xlu1 %v22146_v61, %s21991_s22 }
 0x541   :  { %3378 = vadd.xlane.f32.xlu1 %v3377_v35 }
 0x552   :  { %4290 = vrot.lane.b32.xlu1 %v22146_v61, %s21992_s23 }
 0x556   :  { %4288 = vrot.lane.b32.xlu1 %v22146_v61, %s21993_s24 }
 0x55a   :  { %4742 = vrot.lane.b32.xlu1 %v22150_v63, %s21993_s24 }
 0x595   :  { %v3376_v36 = vpop.xlane.xlu1 %3375 }
 0x596   :  { %21876 = vrcp.f32 %v3376_v36 }
 0x599   :  { %v3385_v37 = vpop.permute.xlu1 %3384 }
 0x59a   :  { %v3421_v38 = vand.u32 4294901760, %v3385_v37 }
 0x59c   :  { %v3498_v39 = vsub.f32 %v3385_v37, %v3421_v38  ;;  %20509 = vmatpush3.msra.mxu0 %v3421_v38 }
 0x59d   :  { %20518 = vmatprep.subr.mxu0 %v21985_v51 }
 0x59e   :  { %v3499_v41 = vand.u32 4294901760, %v3498_v39 }
 0x5a0   :  { %v3500_v43 = vsub.f32 %v3498_v39, %v3499_v41 }
 0x5a2   :  { %v3501_v44 = vand.u32 4294901760, %v3500_v43 }
 0x5a3   :  { %v21877_v45 = vpop.eup %21876 }
 0x5a4   :  { %20514 = vmatpush3.msra.mxu1 %v3501_v44  ;;  %v3381_v47 = vmul.f32 %v21877_v45, %v21873_v28 }
 0x5a5   :  { %20523 = vmatprep.subr.mxu1 %v21985_v51 }
 0x5a6   :  { %v3388_v48 = vsel %vm624_vm2, %v3381_v47, 0 }
 0x5a7   :  { %v3456_v49 = vand.u32 4294901760, %v3388_v48 }
 0x5a9   :  { %v3457_v53 = vsub.f32 %v3388_v48, %v3456_v49  ;;  %20516 = vmatmul.mubr.f32.vlgmr.msra.gmra.mxu1 %v3456_v49 }
 0x5aa   :  { %20524 = vmatpush3.msra.mxu1 %v3421_v38  ;;  %20525 = vmatprep.mubr.msk.f32.mxu1 %vm21986_vm1, %v21985_v51 }
 0x5ab   :  { %20533 = vmatprep.subr.mxu1 %v21985_v51  ;;  %v3458_v54 = vand.u32 4294901760, %v3457_v53 }
 0x5ad   :  { %20526 = vmatmul.mubr.f32.vlgmr.msra.gmra.mxu1 %v3458_v54  ;;  %v3459_v56 = vsub.f32 %v3457_v53, %v3458_v54 }
 0x5ae   :  { %20534 = vmatpush3.msra.mxu1 %v3421_v38  ;;  %20535 = vmatprep.mubr.msk.f32.mxu1 %vm21986_vm1, %v21985_v51 }
 0x5af   :  { %20543 = vmatprep.subr.mxu1 %v21985_v51  ;;  %v3460_v57 = vand.u32 4294901760, %v3459_v56 }
 0x5b1   :  { %20511 = vmatmul.mubr.f32.vlgmr.msra.gmra.mxu0 %v3460_v57  ;;  %20536 = vmatmul.mubr.f32.vlgmr.msra.gmra.mxu1 %v3456_v49 }
 0x5b2   :  { %20519 = vmatpush3.msra.mxu0 %v3498_v39  ;;  %20544 = vmatpush3.msra.mxu1 %v3953_v58 }
 0x5b3   :  { %20520 = vmatprep.mubr.msk.f32.mxu0 %vm21986_vm1, %v21985_v51  ;;  %20528 = vmatprep.subr.mxu0 %v21985_v51 }
 0x5b4   :  { %20545 = vmatprep.mubr.msk.f32.mxu1 %vm21986_vm1, %v21985_v51  ;;  %20553 = vmatprep.subr.mxu1 %v21985_v51 }
 0x5b5   :  { %20521 = vmatmul.mubr.f32.vlgmr.msra.gmra.mxu0 %v3457_v53 }
 0x5b6   :  { %20529 = vmatpush3.msra.mxu0 %v3499_v41  ;;  %20530 = vmatprep.mubr.msk.f32.mxu0 %vm21986_vm1, %v21985_v51 }
 0x5b7   :  { %20538 = vmatprep.subr.mxu0 %v21985_v51 }
 0x5b9   :  { %20531 = vmatmul.mubr.f32.vlgmr.msra.gmra.mxu0 %v3456_v49 }
 0x5ba   :  { %20539 = vmatpush3.msra.mxu0 %v22370_v42  ;;  %20540 = vmatprep.mubr.msk.f32.mxu0 %vm21986_vm1, %v21985_v51 }
 0x5bb   :  { %20548 = vmatprep.subr.mxu0 %v21985_v51 }
 0x5ca   :  { %v3379_v59 = vpop.xlane.xlu1 %3378 }
 0x5cb   :  { %21878 = vrcp.f32 %v3379_v59 }
 0x5ce   :  { %v4291_v60 = vpop.permute.xlu1 %4290 }
 0x5cf   :  { %v4294_v62 = vsel %vm624_vm2, %v4291_v60, 0 }
 0x5d0   :  { %v4327_v0 = vand.u32 4294901760, %v4294_v62 }
 0x5d2   :  { %v22401_v2 = vsub.f32 %v4294_v62, %v4327_v0  ;;  %v4289_v4 = vpop.permute.xlu1 %4288 }
 0x5d3   :  { %v4292_v9 = vsel %vm624_vm2, %v4289_v4, 0 }
 0x5d4   :  { %v4405_v8 = vand.u32 4294901760, %v22401_v2  ;;  %v22411_v12 = vand.u32 4294901760, %v4292_v9 }
 0x5d6   :  { %v4406_v17 = vsub.f32 %v22401_v2, %v4405_v8  ;;  %v4363_v19 = vsub.f32 %v4292_v9, %v22411_v12  ;;  %v4743_v23 = vpop.permute.xlu1 %4742 }
 0x5d7   :  { %v4746_v26 = vsel %vm624_vm2, %v4743_v23, 0 }
 0x5d8   :  { %v21879_v1 = vpop.eup %21878  ;;  %v4407_v22 = vand.u32 4294901760, %v4406_v17  ;;  %v4364_v24 = vand.u32 4294901760, %v4363_v19  ;;  %v4816_v28 = vand.u32 4294901760, %v4746_v26 }
 0x5d9   :  { %v3383_v3 = vmul.f32 %v21879_v1, %v22359_v33 }
 0x5da   :  { %v4365_v27 = vsub.f32 %v4363_v19, %v4364_v24  ;;  %v4817_v31 = vsub.f32 %v4746_v26, %v4816_v28 }
 0x5db   :  { %v3840_v6 = vsel %vm624_vm2, %v3383_v3, 0 }
 0x5dc   :  { %v3908_v7 = vand.u32 4294901760, %v3840_v6  ;;  %v4366_v30 = vand.u32 4294901760, %v4365_v27  ;;  %v4818_v33 = vand.u32 4294901760, %v4817_v31 }
 0x5de   :  { %v3909_v11 = vsub.f32 %v3840_v6, %v3908_v7  ;;  %20546 = vmatmul.mubr.f32.vlgmr.msra.gmra.mxu1 %v3908_v7  ;;  %v4819_v35 = vsub.f32 %v4817_v31, %v4818_v33 }
 0x5df   :  { %20554 = vmatpush3.msra.mxu1 %v22370_v42  ;;  %20555 = vmatprep.mubr.msk.f32.mxu1 %vm21986_vm1, %v21985_v51 }
 0x5e0   :  { %20563 = vmatprep.subr.mxu1 %v21985_v51  ;;  %v3910_v15 = vand.u32 4294901760, %v3909_v11  ;;  %v4820_v36 = vand.u32 4294901760, %v4819_v35 }
 0x5e2   :  { %20556 = vmatmul.mubr.f32.vlgmr.msra.gmra.mxu1 %v3910_v15  ;;  %v3911_v18 = vsub.f32 %v3909_v11, %v3910_v15 }
 0x5e3   :  { %20564 = vmatpush3.msra.mxu1 %v22370_v42  ;;  %20565 = vmatprep.mubr.msk.f32.mxu1 %vm21986_vm1, %v21985_v51 }
 0x5e4   :  { %20573 = vmatprep.subr.mxu1 %v21985_v51  ;;  %v3912_v20 = vand.u32 4294901760, %v3911_v18 }
 0x5e6   :  { %20541 = vmatmul.mubr.f32.vlgmr.msra.gmra.mxu0 %v3912_v20  ;;  %20566 = vmatmul.mubr.f32.vlgmr.msra.gmra.mxu1 %v3908_v7 }
 0x5e7   :  { %20549 = vmatpush3.msra.mxu0 %v22373_v46  ;;  %20574 = vmatpush3.xpose.msra.mxu1 %v4407_v22 }
 0x5e8   :  { %20550 = vmatprep.mubr.msk.f32.mxu0 %vm21986_vm1, %v21985_v51  ;;  %20558 = vmatprep.subr.mxu0 %v21985_v51 }
 0x5e9   :  { %20575 = vmatprep.mubr.msk.f32.mxu1 %vm21986_vm1, %v21985_v51  ;;  %20583 = vmatprep.subr.mxu1 %v21985_v51 }
 0x5ea   :  { %20551 = vmatmul.mubr.f32.vlgmr.msra.gmra.mxu0 %v3909_v11  ;;  %20576 = vmatmul.mubr.f32.vlgmr.msra.gmra.mxu1 %v22411_v12 }
 0x5eb   :  { %20559 = vmatpush3.msra.mxu0 %v3951_v50  ;;  %20584 = vmatpush3.xpose.msra.mxu1 %v4327_v0 }
 0x5ec   :  { %20560 = vmatprep.mubr.msk.f32.mxu0 %vm21986_vm1, %v21985_v51  ;;  %20568 = vmatprep.subr.mxu0 %v21985_v51 }
 0x5ed   :  { %20585 = vmatprep.mubr.msk.f32.mxu1 %vm21986_vm1, %v21985_v51  ;;  %20593 = vmatprep.subr.mxu1 %v21985_v51 }
 0x5ee   :  { %20561 = vmatmul.mubr.f32.vlgmr.msra.gmra.mxu0 %v3908_v7  ;;  %20586 = vmatmul.mubr.f32.vlgmr.msra.gmra.mxu1 %v4364_v24 }
 0x5ef   :  { %20569 = vmatpush3.xpose.msra.mxu0 %v4327_v0  ;;  %20594 = vmatpush3.xpose.msra.mxu1 %v4327_v0 }
 0x5f0   :  { %20570 = vmatprep.mubr.msk.f32.mxu0 %vm21986_vm1, %v21985_v51  ;;  %20578 = vmatprep.subr.mxu0 %v21985_v51 }
 0x5f1   :  { %20595 = vmatprep.mubr.msk.f32.mxu1 %vm21986_vm1, %v21985_v51  ;;  %20603 = vmatprep.subr.mxu1 %v21985_v51 }
 0x5f2   :  { %20571 = vmatmul.mubr.f32.vlgmr.msra.gmra.mxu0 %v4366_v30  ;;  %20596 = vmatmul.mubr.f32.vlgmr.msra.gmra.mxu1 %v22411_v12 }
 0x5f3   :  { %20579 = vmatpush3.xpose.msra.mxu0 %v22401_v2  ;;  %20604 = vmatpush3.xpose.msra.mxu1 %v4861_v32 }
 0x5f4   :  { %20580 = vmatprep.mubr.msk.f32.mxu0 %vm21986_vm1, %v21985_v51  ;;  %20588 = vmatprep.subr.mxu0 %v21985_v51 }
 0x5f5   :  { %20605 = vmatprep.mubr.msk.f32.mxu1 %vm21986_vm1, %v21985_v51  ;;  %20613 = vmatprep.subr.mxu1 %v21985_v51 }
 0x5f6   :  { %20581 = vmatmul.mubr.f32.vlgmr.msra.gmra.mxu0 %v4363_v19  ;;  %20606 = vmatmul.mubr.f32.vlgmr.msra.gmra.mxu1 %v4816_v28 }
 0x5f7   :  { %20589 = vmatpush3.xpose.msra.mxu0 %v4405_v8  ;;  %20614 = vmatpush3.xpose.msra.mxu1 %v22414_v16 }
 0x5f8   :  { %20590 = vmatprep.mubr.msk.f32.mxu0 %vm21986_vm1, %v21985_v51  ;;  %20598 = vmatprep.subr.mxu0 %v21985_v51 }
 0x5f9   :  { %20615 = vmatprep.mubr.msk.f32.mxu1 %vm21986_vm1, %v21985_v51  ;;  %20623 = vmatprep.subr.mxu1 %v21985_v51 }
 0x5fa   :  { %20591 = vmatmul.mubr.f32.vlgmr.msra.gmra.mxu0 %v22411_v12  ;;  %20616 = vmatmul.mubr.f32.vlgmr.msra.gmra.mxu1 %v4818_v33 }
 0x5fb   :  { %20599 = vmatpush3.xpose.msra.mxu0 %v22414_v16  ;;  %20624 = vmatpush3.xpose.msra.mxu1 %v22414_v16 }
 0x5fc   :  { %20600 = vmatprep.mubr.msk.f32.mxu0 %vm21986_vm1, %v21985_v51  ;;  %20608 = vmatprep.subr.mxu0 %v21985_v51 }
 0x5fd   :  { %20625 = vmatprep.mubr.msk.f32.mxu1 %vm21986_vm1, %v21985_v51  ;;  %20633 = vmatprep.subr.mxu1 %v21985_v51 }
 0x5fe   :  { %20601 = vmatmul.mubr.f32.vlgmr.msra.gmra.mxu0 %v4820_v36  ;;  %20626 = vmatmul.mubr.f32.vlgmr.msra.gmra.mxu1 %v4816_v28 }
 0x5ff   :  { %20609 = vmatpush3.xpose.msra.mxu0 %v22425_v21  ;;  %20610 = vmatprep.mubr.msk.f32.mxu0 %vm21986_vm1, %v21985_v51 }
 0x600   :  { %20618 = vmatprep.subr.mxu0 %v21985_v51  ;;  %20635 = vmatprep.mubr.msk.f32.mxu1 %vm21986_vm1, %v21985_v51 }
 0x602   :  { %20611 = vmatmul.mubr.f32.vlgmr.msra.gmra.mxu0 %v4817_v31 }
 0x603   :  { %20619 = vmatpush3.xpose.msra.mxu0 %v4859_v25  ;;  %20620 = vmatprep.mubr.msk.f32.mxu0 %vm21986_vm1, %v21985_v51 }
 0x604   :  { %20628 = vmatprep.subr.mxu0 %v21985_v51 }
 0x606   :  { %20621 = vmatmul.mubr.f32.vlgmr.msra.gmra.mxu0 %v4816_v28 }
 0x607   :  { %20630 = vmatprep.mubr.msk.f32.mxu0 %vm21986_vm1, %v21985_v51 }
 0x669   :  { %v3538_v37 = vpop.f32.mrf.mxu1 }
 0x66b   :  { %v20517_v38 = vpop.f32.mrf.mxu1 }
 0x66d   :  { %v3686_v39 = vpop.f32.mrf.mxu1 }
 0x66f   :  { %v20527_v40 = vpop.f32.mrf.mxu1 }
 0x671   :  { %v3462_v41 = vpop.f32.mrf.mxu0  ;;  %v3832_v42 = vpop.f32.mrf.mxu1 }
 0x672   :  { %v3539_v43 = vadd.f32 %v3538_v37, %v3462_v41 }
 0x673   :  { %v20512_v44 = vpop.f32.mrf.mxu0  ;;  %v20537_v45 = vpop.f32.mrf.mxu1 }
 0x675   :  { %v3612_v46 = vpop.f32.mrf.mxu0 }
 0x676   :  { %v3613_v47 = vadd.f32 %v3612_v46, %v3539_v43 }
 0x677   :  { %v20522_v48 = vpop.f32.mrf.mxu0 }
 0x678   :  { %v3687_v49 = vadd.f32 %v3686_v39, %v3613_v47 }
 0x679   :  { %v3760_v50 = vpop.f32.mrf.mxu0 }
 0x67a   :  { %v3761_v53 = vadd.f32 %v3760_v50, %v3687_v49 }
 0x67b   :  { %v20532_v54 = vpop.f32.mrf.mxu0 }
 0x67c   :  { %v22489_v55 = vadd.f32 %v3832_v42, %v3761_v53 }
 0x69e   :  { %v3990_v56 = vpop.f32.mrf.mxu1 }
 0x6a0   :  { %v20547_v57 = vpop.f32.mrf.mxu1 }
 0x6a2   :  { %v4138_v58 = vpop.f32.mrf.mxu1 }
 0x6a4   :  { %v20557_v59 = vpop.f32.mrf.mxu1 }
 0x6a6   :  { %v3914_v60 = vpop.f32.mrf.mxu0  ;;  %v4284_v62 = vpop.f32.mrf.mxu1 }
 0x6a7   :  { %v3991_v0 = vadd.f32 %v3990_v56, %v3914_v60 }
 0x6a8   :  { %v20542_v1 = vpop.f32.mrf.mxu0  ;;  %v20567_v2 = vpop.f32.mrf.mxu1 }
 0x6aa   :  { %v4064_v3 = vpop.f32.mrf.mxu0  ;;  %v4444_v4 = vpop.f32.mrf.mxu1 }
 0x6ab   :  { %v4065_v5 = vadd.f32 %v4064_v3, %v3991_v0 }
 0x6ac   :  { %v20552_v6 = vpop.f32.mrf.mxu0  ;;  %v20577_v7 = vpop.f32.mrf.mxu1 }
 0x6ad   :  { %v4139_v8 = vadd.f32 %v4138_v58, %v4065_v5 }
 0x6ae   :  { %v4212_v9 = vpop.f32.mrf.mxu0  ;;  %v4592_v10 = vpop.f32.mrf.mxu1 }
 0x6af   :  { %v4213_v11 = vadd.f32 %v4212_v9, %v4139_v8 }
 0x6b0   :  { %v20562_v12 = vpop.f32.mrf.mxu0  ;;  %v20587_v15 = vpop.f32.mrf.mxu1 }
 0x6b1   :  { %v22491_v16 = vadd.f32 %v4284_v62, %v4213_v11 }
 0x6b2   :  { %v4368_v17 = vpop.f32.mrf.mxu0  ;;  %v4738_v18 = vpop.f32.mrf.mxu1 }
 0x6b3   :  { %v4445_v21 = vadd.f32 %v4444_v4, %v4368_v17 }
 0x6b4   :  { %v20572_v19 = vpop.f32.mrf.mxu0  ;;  %v20597_v20 = vpop.f32.mrf.mxu1 }
 0x6b6   :  { %v4518_v22 = vpop.f32.mrf.mxu0  ;;  %v4898_v23 = vpop.f32.mrf.mxu1 }
 0x6b7   :  { %v4519_v24 = vadd.f32 %v4518_v22, %v4445_v21 }
 0x6b8   :  { %v20582_v25 = vpop.f32.mrf.mxu0  ;;  %v20607_v26 = vpop.f32.mrf.mxu1 }
 0x6b9   :  { %v4593_v27 = vadd.f32 %v4592_v10, %v4519_v24 }
 0x6ba   :  { %v4666_v28 = vpop.f32.mrf.mxu0  ;;  %v5046_v29 = vpop.f32.mrf.mxu1 }
 0x6bb   :  { %v4667_v30 = vadd.f32 %v4666_v28, %v4593_v27 }
 0x6bc   :  { %v20592_v31 = vpop.f32.mrf.mxu0  ;;  %v20617_v32 = vpop.f32.mrf.mxu1 }
 0x6bd   :  { %v4739_v33 = vadd.f32 %v4738_v18, %v4667_v30 }
 0x6be   :  { %v4822_v35 = vpop.f32.mrf.mxu0  ;;  %v5192_v36 = vpop.f32.mrf.mxu1 }
 0x6bf   :  { %v5196_v37 = vsel %vm624_vm2, %v4739_v33, -inf  ;;  %v4899_v40 = vadd.f32 %v4898_v23, %v4822_v35 }
 0x6c0   :  { %v20627_v38 = vpop.f32.mrf.mxu1  ;;  %5197 = vmax.xlane.f32.xlu0 %v5196_v37  ;;  %v20602_v39 = vpop.f32.mrf.mxu0 }
 0x6c2   :  { %v4972_v41 = vpop.f32.mrf.mxu0 }
 0x6c3   :  { %v4973_v42 = vadd.f32 %v4972_v41, %v4899_v40 }
 0x6c4   :  { %v20612_v43 = vpop.f32.mrf.mxu0 }
 0x6c5   :  { %v5047_v44 = vadd.f32 %v5046_v29, %v4973_v42 }
 0x6c6   :  { %v5120_v45 = vpop.f32.mrf.mxu0 }
 0x6c7   :  { %v5121_v46 = vadd.f32 %v5120_v45, %v5047_v44 }
 0x6c8   :  { %v20622_v47 = vpop.f32.mrf.mxu0 }
 0x6c9   :  { %v5193_v48 = vadd.f32 %v5192_v36, %v5121_v46 }
 0x6cb   :  { %v5199_v49 = vsel %vm624_vm2, %v5193_v48, -inf }
 0x6cc   :  { %5200 = vmax.xlane.f32.xlu1 %v5199_v49 }
 0x6dd   :  { %5218 = vrot.lane.b32.xlu1 %v22146_v61, %s21994_s26 }
 0x6e1   :  { %6124 = vrot.lane.b32.xlu1 %v22146_v61, %s21995_s27 }
 0x6e5   :  { %6122 = vrot.lane.b32.xlu1 %v22146_v61, %s21996_s28 }
 0x6e9   :  { %6576 = vrot.lane.b32.xlu1 %v22150_v63, %s21996_s28 }
 0x749   :  { %v5198_v50 = vpop.xlane.xlu0 %5197 }
 0x74a   :  { %v5202_v53 = vsub.f32 %v4739_v33, %v5198_v50 }
 0x74c   :  { %v5204_v54 = vmul.f32 1.442695, %v5202_v53 }
 0x74e   :  { %21880 = vpow2.f32 %v5204_v54 }
 0x755   :  { %v5201_v56 = vpop.xlane.xlu1 %5200 }
 0x756   :  { %v5203_v57 = vsub.f32 %v5193_v48, %v5201_v56 }
 0x758   :  { %v5206_v58 = vmul.f32 1.442695, %v5203_v57 }
 0x759   :  { %v5219_v59 = vpop.permute.xlu1 %5218 }
 0x75a   :  { %21882 = vpow2.f32 %v5206_v58  ;;  %v5255_v60 = vand.u32 4294901760, %v5219_v59 }
 0x75b   :  { %v21881_v62 = vpop.eup %21880 }
 0x75c   :  { %v22503_v0 = vsub.f32 %v5219_v59, %v5255_v60  ;;  %20629 = vmatpush3.msra.mxu0 %v5255_v60  ;;  %v5208_v1 = vsel %vm624_vm2, %v21881_v62, 0.0 }
 0x75d   :  { %5209 = vadd.xlane.f32.xlu0 %v5208_v1  ;;  %20638 = vmatprep.subr.mxu0 %v21985_v51  ;;  %v6125_v12 = vpop.permute.xlu1 %6124 }
 0x75e   :  { %v5333_v2 = vand.u32 4294901760, %v22503_v0  ;;  %v6128_v20 = vsel %vm624_vm2, %v6125_v12, 0 }
 0x75f   :  { %v22523_v24 = vand.u32 4294901760, %v6128_v20 }
 0x760   :  { %v5334_v3 = vsub.f32 %v22503_v0, %v5333_v2 }
 0x761   :  { %v22532_v30 = vsub.f32 %v6128_v20, %v22523_v24  ;;  %v6123_v32 = vpop.permute.xlu1 %6122 }
 0x762   :  { %v5335_v4 = vand.u32 4294901760, %v5334_v3  ;;  %v6126_v38 = vsel %vm624_vm2, %v6123_v32, 0 }
 0x763   :  { %v6239_v37 = vand.u32 4294901760, %v22532_v30  ;;  %v22545_v41 = vand.u32 4294901760, %v6126_v38 }
 0x764   :  { %20634 = vmatpush3.msra.mxu1 %v5335_v4 }
 0x765   :  { %20643 = vmatprep.subr.mxu1 %v21985_v51  ;;  %v6240_v43 = vsub.f32 %v22532_v30, %v6239_v37  ;;  %v6197_v46 = vsub.f32 %v6126_v38, %v22545_v41  ;;  %v6577_v50 = vpop.permute.xlu1 %6576 }
 0x766   :  { %v6580_v54 = vsel %vm624_vm2, %v6577_v50, 0 }
 0x767   :  { %v21883_v5 = vpop.eup %21882  ;;  %v6241_v48 = vand.u32 4294901760, %v6240_v43  ;;  %v6198_v53 = vand.u32 4294901760, %v6197_v46  ;;  %v6650_v58 = vand.u32 4294901760, %v6580_v54 }
 0x768   :  { %v5211_v6 = vsel %vm624_vm2, %v21883_v5, 0.0 }
 0x769   :  { %5212 = vadd.xlane.f32.xlu0 %v5211_v6  ;;  %v6199_v57 = vsub.f32 %v6197_v46, %v6198_v53 }
 0x77f   :  { %5670 = vrot.lane.b32.xlu0 %v22150_v63, %s21994_s26 }
 0x783   :  { %6578 = vrot.lane.b32.xlu0 %v22150_v63, %s21995_s27 }
 0x7e6   :  { %v5210_v7 = vpop.xlane.xlu0 %5209 }
 0x7e7   :  { %21884 = vrcp.f32 %v5210_v7 }
 0x7f2   :  { %v5213_v8 = vpop.xlane.xlu0 %5212 }
 0x7f3   :  { %21886 = vrcp.f32 %v5213_v8 }
 0x7f4   :  { %v21885_v9 = vpop.eup %21884 }
 0x7f5   :  { %v5215_v10 = vmul.f32 %v21885_v9, %v21881_v62  ;;  %v6651_v62 = vsub.f32 %v6580_v54, %v6650_v58 }
 0x7f6   :  { %v5671_v11 = vpop.permute.xlu0 %5670 }
 0x7f7   :  { %v5707_v15 = vand.u32 4294901760, %v5671_v11  ;;  %v5222_v17 = vsel %vm624_vm2, %v5215_v10, 0  ;;  %v6652_v1 = vand.u32 4294901760, %v6651_v62 }
 0x7f8   :  { %v5290_v18 = vand.u32 4294901760, %v5222_v17 }
 0x7f9   :  { %v22516_v19 = vsub.f32 %v5671_v11, %v5707_v15 }
 0x7fa   :  { %v5291_v21 = vsub.f32 %v5222_v17, %v5290_v18  ;;  %20636 = vmatmul.mubr.f32.vlgmr.msra.gmra.mxu1 %v5290_v18  ;;  %v6579_v33 = vpop.permute.xlu0 %6578 }
 0x7fb   :  { %v5785_v22 = vand.u32 4294901760, %v22516_v19  ;;  %20644 = vmatpush3.msra.mxu1 %v5255_v60  ;;  %20645 = vmatprep.mubr.msk.f32.mxu1 %vm21986_vm1, %v21985_v51  ;;  %v6582_v39 = vsel %vm624_vm2, %v6579_v33, 0 }
 0x7fc   :  { %20653 = vmatprep.subr.mxu1 %v21985_v51  ;;  %v5292_v23 = vand.u32 4294901760, %v5291_v21  ;;  %v22553_v44 = vand.u32 4294901760, %v6582_v39 }
 0x7fd   :  { %v5786_v25 = vsub.f32 %v22516_v19, %v5785_v22 }
 0x7fe   :  { %20646 = vmatmul.mubr.f32.vlgmr.msra.gmra.mxu1 %v5292_v23  ;;  %v5293_v26 = vsub.f32 %v5291_v21, %v5292_v23  ;;  %v22563_v49 = vsub.f32 %v6582_v39, %v22553_v44 }
 0x7ff   :  { %v5787_v27 = vand.u32 4294901760, %v5786_v25  ;;  %20654 = vmatpush3.msra.mxu1 %v5255_v60  ;;  %20655 = vmatprep.mubr.msk.f32.mxu1 %vm21986_vm1, %v21985_v51  ;;  %v6200_v60 = vand.u32 4294901760, %v6199_v57 }
 0x800   :  { %v21887_v28 = vpop.eup %21886  ;;  %20663 = vmatprep.subr.mxu1 %v21985_v51  ;;  %v5294_v29 = vand.u32 4294901760, %v5293_v26  ;;  %v6693_v56 = vand.u32 4294901760, %v22563_v49 }
 0x801   :  { %v5217_v31 = vmul.f32 %v21887_v28, %v21883_v5 }
 0x802   :  { %20631 = vmatmul.mubr.f32.vlgmr.msra.gmra.mxu0 %v5294_v29  ;;  %20656 = vmatmul.mubr.f32.vlgmr.msra.gmra.mxu1 %v5290_v18  ;;  %v6694_v59 = vsub.f32 %v22563_v49, %v6693_v56 }
 0x803   :  { %20639 = vmatpush3.msra.mxu0 %v22503_v0  ;;  %20664 = vmatpush3.msra.mxu1 %v5787_v27  ;;  %v5674_v35 = vsel %vm624_vm2, %v5217_v31, 0 }
 0x804   :  { %20640 = vmatprep.mubr.msk.f32.mxu0 %vm21986_vm1, %v21985_v51  ;;  %20648 = vmatprep.subr.mxu0 %v21985_v51  ;;  %v5742_v36 = vand.u32 4294901760, %v5674_v35  ;;  %v6695_v0 = vand.u32 4294901760, %v6694_v59 }
 0x805   :  { %20665 = vmatprep.mubr.msk.f32.mxu1 %vm21986_vm1, %v21985_v51  ;;  %20673 = vmatprep.subr.mxu1 %v21985_v51 }
 0x806   :  { %20641 = vmatmul.mubr.f32.vlgmr.msra.gmra.mxu0 %v5291_v21  ;;  %v5743_v40 = vsub.f32 %v5674_v35, %v5742_v36  ;;  %20666 = vmatmul.mubr.f32.vlgmr.msra.gmra.mxu1 %v5742_v36 }
 0x807   :  { %20649 = vmatpush3.msra.mxu0 %v5333_v2  ;;  %20674 = vmatpush3.msra.mxu1 %v5707_v15  ;;  %v6653_v2 = vsub.f32 %v6651_v62, %v6652_v1 }
 0x808   :  { %20650 = vmatprep.mubr.msk.f32.mxu0 %vm21986_vm1, %v21985_v51  ;;  %20658 = vmatprep.subr.mxu0 %v21985_v51  ;;  %v5744_v42 = vand.u32 4294901760, %v5743_v40 }
 0x809   :  { %20675 = vmatprep.mubr.msk.f32.mxu1 %vm21986_vm1, %v21985_v51  ;;  %20683 = vmatprep.subr.mxu1 %v21985_v51  ;;  %v6654_v3 = vand.u32 4294901760, %v6653_v2 }
 0x80a   :  { %20651 = vmatmul.mubr.f32.vlgmr.msra.gmra.mxu0 %v5290_v18  ;;  %20676 = vmatmul.mubr.f32.vlgmr.msra.gmra.mxu1 %v5744_v42  ;;  %v5745_v45 = vsub.f32 %v5743_v40, %v5744_v42 }
 0x80b   :  { %20659 = vmatpush3.msra.mxu0 %v5707_v15  ;;  %20684 = vmatpush3.msra.mxu1 %v5707_v15 }
 0x80c   :  { %20660 = vmatprep.mubr.msk.f32.mxu0 %vm21986_vm1, %v21985_v51  ;;  %20668 = vmatprep.subr.mxu0 %v21985_v51  ;;  %v5746_v47 = vand.u32 4294901760, %v5745_v45 }
 0x80d   :  { %20685 = vmatprep.mubr.msk.f32.mxu1 %vm21986_vm1, %v21985_v51  ;;  %20693 = vmatprep.subr.mxu1 %v21985_v51 }
 0x80e   :  { %20661 = vmatmul.mubr.f32.vlgmr.msra.gmra.mxu0 %v5746_v47  ;;  %20686 = vmatmul.mubr.f32.vlgmr.msra.gmra.mxu1 %v5742_v36 }
 0x80f   :  { %20669 = vmatpush3.msra.mxu0 %v22516_v19  ;;  %20694 = vmatpush3.xpose.msra.mxu1 %v6241_v48 }
 0x810   :  { %20670 = vmatprep.mubr.msk.f32.mxu0 %vm21986_vm1, %v21985_v51  ;;  %20678 = vmatprep.subr.mxu0 %v21985_v51 }
 0x811   :  { %20695 = vmatprep.mubr.msk.f32.mxu1 %vm21986_vm1, %v21985_v51  ;;  %20703 = vmatprep.subr.mxu1 %v21985_v51 }
 0x812   :  { %20671 = vmatmul.mubr.f32.vlgmr.msra.gmra.mxu0 %v5743_v40  ;;  %20696 = vmatmul.mubr.f32.vlgmr.msra.gmra.mxu1 %v22545_v41 }
 0x813   :  { %20679 = vmatpush3.msra.mxu0 %v5785_v22  ;;  %20704 = vmatpush3.xpose.msra.mxu1 %v22523_v24 }
 0x814   :  { %20680 = vmatprep.mubr.msk.f32.mxu0 %vm21986_vm1, %v21985_v51  ;;  %20688 = vmatprep.subr.mxu0 %v21985_v51 }
 0x815   :  { %20705 = vmatprep.mubr.msk.f32.mxu1 %vm21986_vm1, %v21985_v51  ;;  %20713 = vmatprep.subr.mxu1 %v21985_v51 }
 0x816   :  { %20681 = vmatmul.mubr.f32.vlgmr.msra.gmra.mxu0 %v5742_v36  ;;  %20706 = vmatmul.mubr.f32.vlgmr.msra.gmra.mxu1 %v6198_v53 }
 0x817   :  { %20689 = vmatpush3.xpose.msra.mxu0 %v22523_v24  ;;  %20714 = vmatpush3.xpose.msra.mxu1 %v22523_v24 }
 0x818   :  { %20690 = vmatprep.mubr.msk.f32.mxu0 %vm21986_vm1, %v21985_v51  ;;  %20698 = vmatprep.subr.mxu0 %v21985_v51 }
 0x819   :  { %20715 = vmatprep.mubr.msk.f32.mxu1 %vm21986_vm1, %v21985_v51  ;;  %20723 = vmatprep.subr.mxu1 %v21985_v51 }
 0x81a   :  { %20691 = vmatmul.mubr.f32.vlgmr.msra.gmra.mxu0 %v6200_v60  ;;  %20716 = vmatmul.mubr.f32.vlgmr.msra.gmra.mxu1 %v22545_v41 }
 0x81b   :  { %20699 = vmatpush3.xpose.msra.mxu0 %v22532_v30  ;;  %20724 = vmatpush3.xpose.msra.mxu1 %v6695_v0 }
 0x81c   :  { %20700 = vmatprep.mubr.msk.f32.mxu0 %vm21986_vm1, %v21985_v51  ;;  %20708 = vmatprep.subr.mxu0 %v21985_v51 }
 0x81d   :  { %20725 = vmatprep.mubr.msk.f32.mxu1 %vm21986_vm1, %v21985_v51  ;;  %20733 = vmatprep.subr.mxu1 %v21985_v51 }
 0x81e   :  { %20701 = vmatmul.mubr.f32.vlgmr.msra.gmra.mxu0 %v6197_v46  ;;  %20726 = vmatmul.mubr.f32.vlgmr.msra.gmra.mxu1 %v6650_v58 }
 0x81f   :  { %20709 = vmatpush3.xpose.msra.mxu0 %v6239_v37  ;;  %20734 = vmatpush3.xpose.msra.mxu1 %v22553_v44 }
 0x820   :  { %20710 = vmatprep.mubr.msk.f32.mxu0 %vm21986_vm1, %v21985_v51  ;;  %20718 = vmatprep.subr.mxu0 %v21985_v51 }
 0x821   :  { %20735 = vmatprep.mubr.msk.f32.mxu1 %vm21986_vm1, %v21985_v51  ;;  %20743 = vmatprep.subr.mxu1 %v21985_v51 }
 0x822   :  { %20711 = vmatmul.mubr.f32.vlgmr.msra.gmra.mxu0 %v22545_v41  ;;  %20736 = vmatmul.mubr.f32.vlgmr.msra.gmra.mxu1 %v6652_v1 }
 0x823   :  { %20719 = vmatpush3.xpose.msra.mxu0 %v22553_v44  ;;  %20744 = vmatpush3.xpose.msra.mxu1 %v22553_v44 }
 0x824   :  { %20720 = vmatprep.mubr.msk.f32.mxu0 %vm21986_vm1, %v21985_v51  ;;  %20728 = vmatprep.subr.mxu0 %v21985_v51 }
 0x825   :  { %20745 = vmatprep.mubr.msk.f32.mxu1 %vm21986_vm1, %v21985_v51  ;;  %20753 = vmatprep.subr.mxu1 %v21985_v51 }
 0x826   :  { %20721 = vmatmul.mubr.f32.vlgmr.msra.gmra.mxu0 %v6654_v3  ;;  %20746 = vmatmul.mubr.f32.vlgmr.msra.gmra.mxu1 %v6650_v58 }
 0x827   :  { %20729 = vmatpush3.xpose.msra.mxu0 %v22563_v49  ;;  %20730 = vmatprep.mubr.msk.f32.mxu0 %vm21986_vm1, %v21985_v51 }
 0x828   :  { %20738 = vmatprep.subr.mxu0 %v21985_v51  ;;  %20755 = vmatprep.mubr.msk.f32.mxu1 %vm21986_vm1, %v21985_v51 }
 0x82a   :  { %20731 = vmatmul.mubr.f32.vlgmr.msra.gmra.mxu0 %v6651_v62 }
 0x82b   :  { %20739 = vmatpush3.xpose.msra.mxu0 %v6693_v56  ;;  %20740 = vmatprep.mubr.msk.f32.mxu0 %vm21986_vm1, %v21985_v51 }
 0x82c   :  { %20748 = vmatprep.subr.mxu0 %v21985_v51 }
 0x82e   :  { %20741 = vmatmul.mubr.f32.vlgmr.msra.gmra.mxu0 %v6650_v58 }
 0x82f   :  { %20750 = vmatprep.mubr.msk.f32.mxu0 %vm21986_vm1, %v21985_v51 }
 0x8ba   :  { %v5372_v4 = vpop.f32.mrf.mxu1 }
 0x8bc   :  { %v20637_v5 = vpop.f32.mrf.mxu1 }
 0x8be   :  { %v5520_v6 = vpop.f32.mrf.mxu1 }
 0x8c0   :  { %v20647_v7 = vpop.f32.mrf.mxu1 }
 0x8c2   :  { %v5296_v8 = vpop.f32.mrf.mxu0  ;;  %v5666_v9 = vpop.f32.mrf.mxu1 }
 0x8c3   :  { %v5373_v10 = vadd.f32 %v5372_v4, %v5296_v8 }
 0x8c4   :  { %v20632_v11 = vpop.f32.mrf.mxu0  ;;  %v20657_v12 = vpop.f32.mrf.mxu1 }
 0x8c6   :  { %v5446_v15 = vpop.f32.mrf.mxu0  ;;  %v5824_v17 = vpop.f32.mrf.mxu1 }
 0x8c7   :  { %v5447_v18 = vadd.f32 %v5446_v15, %v5373_v10 }
 0x8c8   :  { %v20642_v19 = vpop.f32.mrf.mxu0  ;;  %v20667_v20 = vpop.f32.mrf.mxu1 }
 0x8c9   :  { %v5521_v21 = vadd.f32 %v5520_v6, %v5447_v18 }
 0x8ca   :  { %v5594_v22 = vpop.f32.mrf.mxu0  ;;  %v5972_v23 = vpop.f32.mrf.mxu1 }
 0x8cb   :  { %v5595_v24 = vadd.f32 %v5594_v22, %v5521_v21 }
 0x8cc   :  { %v20652_v25 = vpop.f32.mrf.mxu0  ;;  %v20677_v26 = vpop.f32.mrf.mxu1 }
 0x8cd   :  { %v22633_v27 = vadd.f32 %v5666_v9, %v5595_v24 }
 0x8ce   :  { %v5748_v28 = vpop.f32.mrf.mxu0  ;;  %v6118_v29 = vpop.f32.mrf.mxu1 }
 0x8cf   :  { %v5825_v32 = vadd.f32 %v5824_v17, %v5748_v28 }
 0x8d0   :  { %v20662_v30 = vpop.f32.mrf.mxu0  ;;  %v20687_v31 = vpop.f32.mrf.mxu1 }
 0x8d2   :  { %v5898_v33 = vpop.f32.mrf.mxu0  ;;  %v6278_v35 = vpop.f32.mrf.mxu1 }
 0x8d3   :  { %v5899_v36 = vadd.f32 %v5898_v33, %v5825_v32 }
 0x8d4   :  { %v20672_v37 = vpop.f32.mrf.mxu0  ;;  %v20697_v38 = vpop.f32.mrf.mxu1 }
 0x8d5   :  { %v5973_v39 = vadd.f32 %v5972_v23, %v5899_v36 }
 0x8d6   :  { %v6046_v40 = vpop.f32.mrf.mxu0  ;;  %v6426_v41 = vpop.f32.mrf.mxu1 }
 0x8d7   :  { %v6047_v42 = vadd.f32 %v6046_v40, %v5973_v39 }
 0x8d8   :  { %v20682_v43 = vpop.f32.mrf.mxu0  ;;  %v20707_v44 = vpop.f32.mrf.mxu1 }
 0x8d9   :  { %v6119_v45 = vadd.f32 %v6118_v29, %v6047_v42 }
 0x8da   :  { %v6202_v46 = vpop.f32.mrf.mxu0  ;;  %v6572_v47 = vpop.f32.mrf.mxu1 }
 0x8db   :  { %v6279_v50 = vadd.f32 %v6278_v35, %v6202_v46 }
 0x8dc   :  { %v20692_v48 = vpop.f32.mrf.mxu0  ;;  %v20717_v49 = vpop.f32.mrf.mxu1 }
 0x8de   :  { %v6352_v53 = vpop.f32.mrf.mxu0  ;;  %v6732_v54 = vpop.f32.mrf.mxu1 }
 0x8df   :  { %v6353_v56 = vadd.f32 %v6352_v53, %v6279_v50 }
 0x8e0   :  { %v20702_v57 = vpop.f32.mrf.mxu0  ;;  %v20727_v58 = vpop.f32.mrf.mxu1 }
 0x8e1   :  { %v6427_v59 = vadd.f32 %v6426_v41, %v6353_v56 }
 0x8e2   :  { %v6500_v60 = vpop.f32.mrf.mxu0  ;;  %v6880_v62 = vpop.f32.mrf.mxu1 }
 0x8e3   :  { %v6501_v0 = vadd.f32 %v6500_v60, %v6427_v59 }
 0x8e4   :  { %v20712_v1 = vpop.f32.mrf.mxu0  ;;  %v20737_v2 = vpop.f32.mrf.mxu1 }
 0x8e5   :  { %v6573_v3 = vadd.f32 %v6572_v47, %v6501_v0 }
 0x8e6   :  { %v6656_v4 = vpop.f32.mrf.mxu0  ;;  %v7026_v5 = vpop.f32.mrf.mxu1 }
 0x8e7   :  { %v7030_v6 = vsel %vm624_vm2, %v6573_v3, -inf  ;;  %v6733_v9 = vadd.f32 %v6732_v54, %v6656_v4 }
 0x8e8   :  { %v20747_v7 = vpop.f32.mrf.mxu1  ;;  %7031 = vmax.xlane.f32.xlu0 %v7030_v6  ;;  %v20722_v8 = vpop.f32.mrf.mxu0  ;;  %v66_v6 = vld [vmem:[%s24213_s3 + $0x10] sm:$0xff] }
 0x8ea   :  { %v6806_v10 = vpop.f32.mrf.mxu0 }
 0x8eb   :  { %v6807_v11 = vadd.f32 %v6806_v10, %v6733_v9  ;;  %v22693_v10 = vand.u32 4294901760, %v66_v6 }
 0x8ec   :  { %v20732_v12 = vpop.f32.mrf.mxu0 }
 0x8ed   :  { %v6881_v15 = vadd.f32 %v6880_v62, %v6807_v11  ;;  %v65_v11 = vld [vmem:[%s24213_s3 + $0x8] sm:$0xff] }
 0x8ee   :  { %v6954_v17 = vpop.f32.mrf.mxu0 }
 0x8ef   :  { %v6955_v18 = vadd.f32 %v6954_v17, %v6881_v15 }
 0x8f0   :  { %v20742_v19 = vpop.f32.mrf.mxu0 }
 0x8f1   :  { %v7027_v20 = vadd.f32 %v7026_v5, %v6955_v18  ;;  %v22704_v18 = vsub.f32 %v66_v6, %v22693_v10  ;;  %v22706_v19 = vand.u32 4294901760, %v65_v11 }
 0x8f3   :  { %v7033_v21 = vsel %vm624_vm2, %v7027_v20, -inf }
 0x8f4   :  { %7034 = vmax.xlane.f32.xlu1 %v7033_v21  ;;  %v64_v21 = vld [vmem:[%s24213_s3] sm:$0xff] }
 0x905   :  { %7052 = vrot.lane.b32.xlu1 %v22146_v61, %s21997_s29 }
 0x909   :  { %7958 = vrot.lane.b32.xlu1 %v22489_v55, %s21984_s25 }
 0x90d   :  { %7960 = vrot.lane.b32.xlu1 %v22491_v16, %s21984_s25 }
 0x911   :  { %7968 = vrot.lane.b32.xlu1 %v6119_v45, %s24225_s30 }
 0x971   :  { %v7032_v22 = vpop.xlane.xlu0 %7031 }
 0x972   :  { %v7036_v23 = vsub.f32 %v6573_v3, %v7032_v22  ;;  %v67_v3 = vld [vmem:[%s24213_s3 + $0x18] sm:$0xff] }
 0x973   :  { %v22685_v5 = vand.u32 4294901760, %v67_v3 }
 0x974   :  { %v7038_v24 = vmul.f32 1.442695, %v7036_v23 }
 0x975   :  { %v22691_v9 = vsub.f32 %v67_v3, %v22685_v5 }
 0x976   :  { %21888 = vpow2.f32 %v7038_v24 }
 0x977   :  { %v22701_v17 = vand.u32 4294901760, %v22691_v9 }
 0x979   :  { %v8111_v24 = vsub.f32 %v22691_v9, %v22701_v17 }
 0x97d   :  { %v7035_v25 = vpop.xlane.xlu1 %7034 }
 0x97e   :  { %v7037_v26 = vsub.f32 %v7027_v20, %v7035_v25  ;;  %v22716_v25 = vand.u32 4294901760, %v22704_v18 }
 0x980   :  { %v7040_v28 = vmul.f32 1.442695, %v7037_v26  ;;  %v22719_v26 = vsub.f32 %v65_v11, %v22706_v19 }
 0x981   :  { %v7053_v29 = vpop.permute.xlu1 %7052 }
 0x982   :  { %21890 = vpow2.f32 %v7040_v28  ;;  %v7089_v30 = vand.u32 4294901760, %v7053_v29  ;;  %v22721_v28 = vand.u32 4294901760, %v64_v21 }
 0x983   :  { %v21889_v61 = vpop.eup %21888 }
 0x984   :  { %v7166_v31 = vsub.f32 %v7053_v29, %v7089_v30  ;;  %20749 = vmatpush3.msra.mxu0 %v7089_v30  ;;  %v7042_v55 = vsel %vm624_vm2, %v21889_v61, 0.0 }
 0x985   :  { %7043 = vadd.xlane.f32.xlu0 %v7042_v55  ;;  %20758 = vmatprep.subr.mxu0 %v21985_v51  ;;  %v8118_v55 = vsub.f32 %v22704_v18, %v22716_v25 }
 0x986   :  { %v7167_v16 = vand.u32 4294901760, %v7166_v31 }
 0x988   :  { %v7168_v32 = vsub.f32 %v7166_v31, %v7167_v16 }
 0x98a   :  { %v7169_v33 = vand.u32 4294901760, %v7168_v32  ;;  %v22731_v32 = vsub.f32 %v64_v21, %v22721_v28 }
 0x98c   :  { %20754 = vmatpush3.msra.mxu1 %v7169_v33 }
 0x98d   :  { %20763 = vmatprep.subr.mxu1 %v21985_v51 }
 0x98f   :  { %v21891_v35 = vpop.eup %21890 }
 0x990   :  { %v7045_v36 = vsel %vm624_vm2, %v21891_v35, 0.0 }
 0x991   :  { %7046 = vadd.xlane.f32.xlu0 %v7045_v36 }
 0x9a7   :  { %7504 = vrot.lane.b32.xlu0 %v22150_v63, %s21997_s29 }
 0x9ab   :  { %7966 = vrot.lane.b32.xlu0 %v22633_v27, %s24225_s30 }
 0xa0e   :  { %v7044_v37 = vpop.xlane.xlu0 %7043 }
 0xa0f   :  { %21892 = vrcp.f32 %v7044_v37  ;;  %v8119_v37 = vand.u32 4294901760, %v8118_v55 }
 0xa1a   :  { %v7047_v38 = vpop.xlane.xlu0 %7046 }
 0xa1b   :  { %21894 = vrcp.f32 %v7047_v38 }
 0xa1c   :  { %v21893_v39 = vpop.eup %21892 }
 0xa1d   :  { %v7049_v40 = vmul.f32 %v21893_v39, %v21889_v61  ;;  %v22738_v39 = vand.u32 4294901760, %v22731_v32 }
 0xa1e   :  { %v7505_v41 = vpop.permute.xlu0 %7504 }
 0xa1f   :  { %v7541_v42 = vand.u32 4294901760, %v7505_v41  ;;  %v7056_v43 = vsel %vm624_vm2, %v7049_v40, 0 }
 0xa20   :  { %v7124_v44 = vand.u32 4294901760, %v7056_v43 }
 0xa21   :  { %v7618_v45 = vsub.f32 %v7505_v41, %v7541_v42 }
 0xa22   :  { %v7125_v46 = vsub.f32 %v7056_v43, %v7124_v44  ;;  %20756 = vmatmul.mubr.f32.vlgmr.msra.gmra.mxu1 %v7124_v44 }
 0xa23   :  { %v7619_v47 = vand.u32 4294901760, %v7618_v45  ;;  %20764 = vmatpush3.msra.mxu1 %v7089_v30  ;;  %20765 = vmatprep.mubr.msk.f32.mxu1 %vm21986_vm1, %v21985_v51 }
 0xa24   :  { %20773 = vmatprep.subr.mxu1 %v21985_v51  ;;  %v7126_v63 = vand.u32 4294901760, %v7125_v46 }
 0xa25   :  { %v7620_v27 = vsub.f32 %v7618_v45, %v7619_v47 }
 0xa26   :  { %20766 = vmatmul.mubr.f32.vlgmr.msra.gmra.mxu1 %v7126_v63  ;;  %v7127_v48 = vsub.f32 %v7125_v46, %v7126_v63 }
 0xa27   :  { %v7621_v49 = vand.u32 4294901760, %v7620_v27  ;;  %20774 = vmatpush3.msra.mxu1 %v7089_v30  ;;  %20775 = vmatprep.mubr.msk.f32.mxu1 %vm21986_vm1, %v21985_v51 }
 0xa28   :  { %v21895_v50 = vpop.eup %21894  ;;  %20783 = vmatprep.subr.mxu1 %v21985_v51  ;;  %v7128_v53 = vand.u32 4294901760, %v7127_v48 }
 0xa29   :  { %v7051_v54 = vmul.f32 %v21895_v50, %v21891_v35 }
 0xa2a   :  { %20751 = vmatmul.mubr.f32.vlgmr.msra.gmra.mxu0 %v7128_v53  ;;  %20776 = vmatmul.mubr.f32.vlgmr.msra.gmra.mxu1 %v7124_v44 }
 0xa2b   :  { %20759 = vmatpush3.msra.mxu0 %v7166_v31  ;;  %20784 = vmatpush3.msra.mxu1 %v7621_v49  ;;  %v7508_v56 = vsel %vm624_vm2, %v7051_v54, 0  ;;  %v8112_v31 = vand.u32 4294901760, %v8111_v24 }
 0xa2c   :  { %20760 = vmatprep.mubr.msk.f32.mxu0 %vm21986_vm1, %v21985_v51  ;;  %20768 = vmatprep.subr.mxu0 %v21985_v51  ;;  %v7576_v57 = vand.u32 4294901760, %v7508_v56 }
 0xa2d   :  { %20785 = vmatprep.mubr.msk.f32.mxu1 %vm21986_vm1, %v21985_v51  ;;  %20793 = vmatprep.subr.mxu1 %v21985_v51 }
 0xa2e   :  { %20761 = vmatmul.mubr.f32.vlgmr.msra.gmra.mxu0 %v7125_v46  ;;  %v7577_v58 = vsub.f32 %v7508_v56, %v7576_v57  ;;  %20786 = vmatmul.mubr.f32.vlgmr.msra.gmra.mxu1 %v7576_v57 }
 0xa2f   :  { %20769 = vmatpush3.msra.mxu0 %v7167_v16  ;;  %20794 = vmatpush3.msra.mxu1 %v7541_v42  ;;  %v22728_v16 = vand.u32 4294901760, %v22719_v26 }
 0xa30   :  { %20770 = vmatprep.mubr.msk.f32.mxu0 %vm21986_vm1, %v21985_v51  ;;  %20778 = vmatprep.subr.mxu0 %v21985_v51  ;;  %v7578_v59 = vand.u32 4294901760, %v7577_v58 }
 0xa31   :  { %20795 = vmatprep.mubr.msk.f32.mxu1 %vm21986_vm1, %v21985_v51  ;;  %20803 = vmatprep.subr.mxu1 %v21985_v51  ;;  %v8125_v38 = vsub.f32 %v22719_v26, %v22728_v16 }
 0xa32   :  { %20771 = vmatmul.mubr.f32.vlgmr.msra.gmra.mxu0 %v7124_v44  ;;  %20796 = vmatmul.mubr.f32.vlgmr.msra.gmra.mxu1 %v7578_v59  ;;  %v7579_v60 = vsub.f32 %v7577_v58, %v7578_v59  ;;  %v8132_v44 = vsub.f32 %v22731_v32, %v22738_v39 }
 0xa33   :  { %20779 = vmatpush3.msra.mxu0 %v7541_v42  ;;  %20804 = vmatpush3.msra.mxu1 %v7541_v42  ;;  %v8126_v43 = vand.u32 4294901760, %v8125_v38 }
 0xa34   :  { %20780 = vmatprep.mubr.msk.f32.mxu0 %vm21986_vm1, %v21985_v51  ;;  %20788 = vmatprep.subr.mxu0 %v21985_v51  ;;  %v7580_v62 = vand.u32 4294901760, %v7579_v60  ;;  %v8133_v63 = vand.u32 4294901760, %v8132_v44 }
 0xa35   :  { %20805 = vmatprep.mubr.msk.f32.mxu1 %vm21986_vm1, %v21985_v51  ;;  %20819 = vmatprep.subr.mxu1 %v8112_v31 }
 0xa36   :  { %20781 = vmatmul.mubr.f32.vlgmr.msra.gmra.mxu0 %v7580_v62  ;;  %20806 = vmatmul.mubr.f32.vlgmr.msra.gmra.mxu1 %v7576_v57  ;;  %v7959_v62 = vpop.permute.xlu1 %7958 }
 0xa37   :  { %20789 = vmatpush3.msra.mxu0 %v7618_v45  ;;  %20790 = vmatprep.mubr.msk.f32.mxu0 %vm21986_vm1, %v21985_v51 }
 0xa38   :  { %20798 = vmatprep.subr.mxu0 %v21985_v51  ;;  %20820 = vmatpush3.msra.mxu1 %v8112_v31 }
 0xa39   :  { %20821 = vmatprep.subr.mxu1 %v8119_v37 }
 0xa3a   :  { %20791 = vmatmul.mubr.f32.vlgmr.msra.gmra.mxu0 %v7577_v58  ;;  %20822 = vmatpush3.msra.mxu1 %v8119_v37  ;;  %v7961_v6 = vpop.permute.xlu1 %7960 }
 0xa3b   :  { %20799 = vmatpush3.msra.mxu0 %v7619_v47  ;;  %20800 = vmatprep.mubr.msk.f32.mxu0 %vm21986_vm1, %v21985_v51  ;;  %v7981_v21 = vsel %vm624_vm2, %v22348_v52, %v7961_v6 }
 0xa3c   :  { %20808 = vmatprep.subr.mxu0 %v22685_v5  ;;  %20823 = vmatprep.subr.mxu1 %v8126_v43 }
 0xa3d   :  { %20824 = vmatpush3.msra.mxu1 %v8126_v43 }
 0xa3e   :  { %20801 = vmatmul.mubr.f32.vlgmr.msra.gmra.mxu0 %v7576_v57  ;;  %20825 = vmatprep.subr.mxu1 %v8133_v63 }
 0xa3f   :  { %20809 = vmatpush3.msra.mxu0 %v22685_v5  ;;  %20826 = vmatpush3.msra.mxu1 %v8133_v63 }
 0xa40   :  { %20810 = vmatprep.subr.mxu0 %v22693_v10  ;;  %20841 = vmatprep.subr.mxu1 %v22685_v5 }
 0xa41   :  { %20811 = vmatpush3.msra.mxu0 %v22693_v10 }
 0xa42   :  { %20812 = vmatprep.subr.mxu0 %v22706_v19 }
 0xa43   :  { %20813 = vmatpush3.msra.mxu0 %v22706_v19 }
 0xa44   :  { %20814 = vmatprep.subr.mxu0 %v22721_v28 }
 0xa45   :  { %20815 = vmatpush3.msra.mxu0 %v22721_v28 }
 0xa46   :  { %20830 = vmatprep.subr.mxu0 %v22691_v9 }
 0xae2   :  { %v7206_v0 = vpop.f32.mrf.mxu1 }
 0xae4   :  { %v20757_v1 = vpop.f32.mrf.mxu1 }
 0xae5   :  { %v7980_v1 = vsel %vm624_vm2, %v22346_v34, %v7959_v62 }
 0xae6   :  { %v7354_v2 = vpop.f32.mrf.mxu1 }
 0xae8   :  { %v20767_v4 = vpop.f32.mrf.mxu1 }
 0xaea   :  { %v7130_v7 = vpop.f32.mrf.mxu0  ;;  %v7500_v8 = vpop.f32.mrf.mxu1 }
 0xaeb   :  { %v7207_v20 = vadd.f32 %v7206_v0, %v7130_v7  ;;  %v7967_v0 = vpop.permute.xlu0 %7966 }
 0xaec   :  { %v20752_v12 = vpop.f32.mrf.mxu0  ;;  %v20777_v15 = vpop.f32.mrf.mxu1 }
 0xaed   :  { %v7969_v15 = vpop.permute.xlu1 %7968 }
 0xaee   :  { %v7280_v22 = vpop.f32.mrf.mxu0  ;;  %v7658_v23 = vpop.f32.mrf.mxu1  ;;  %v7984_v34 = vsel %vm7982_vm4, %v7981_v21, %v7969_v15 }
 0xaef   :  { %v7281_v29 = vadd.f32 %v7280_v22, %v7207_v20 }
 0xaf0   :  { %v20762_v30 = vpop.f32.mrf.mxu0  ;;  %v20787_v61 = vpop.f32.mrf.mxu1 }
 0xaf1   :  { %v7355_v33 = vadd.f32 %v7354_v2, %v7281_v29  ;;  %v7983_v2 = vsel %vm7982_vm4, %v7980_v1, %v7967_v0 }
 0xaf2   :  { %v7428_v35 = vpop.f32.mrf.mxu0  ;;  %v7806_v36 = vpop.f32.mrf.mxu1 }
 0xaf3   :  { %v7429_v40 = vadd.f32 %v7428_v35, %v7355_v33 }
 0xaf4   :  { %v20772_v41 = vpop.f32.mrf.mxu0  ;;  %v20797_v42 = vpop.f32.mrf.mxu1 }
 0xaf5   :  { %v7501_v45 = vadd.f32 %v7500_v8, %v7429_v40 }
 0xaf6   :  { %v7582_v46 = vpop.f32.mrf.mxu0  ;;  %v7952_v47 = vpop.f32.mrf.mxu1 }
 0xaf7   :  { %7974 = vrot.lane.b32.xlu0 %v7501_v45, %s24223_s14  ;;  %v7659_v49 = vadd.f32 %v7658_v23, %v7582_v46 }
 0xaf8   :  { %v20782_v27 = vpop.f32.mrf.mxu0  ;;  %v20807_v48 = vpop.f32.mrf.mxu1 }
 0xafa   :  { %v7732_v50 = vpop.f32.mrf.mxu0 }
 0xafb   :  { %v7733_v53 = vadd.f32 %v7732_v50, %v7659_v49 }
 0xafc   :  { %v20792_v54 = vpop.f32.mrf.mxu0 }
 0xafd   :  { %v7807_v56 = vadd.f32 %v7806_v36, %v7733_v53 }
 0xafe   :  { %v7880_v57 = vpop.f32.mrf.mxu0 }
 0xaff   :  { %v7881_v58 = vadd.f32 %v7880_v57, %v7807_v56 }
 0xb00   :  { %v20802_v59 = vpop.f32.mrf.mxu0 }
 0xb01   :  { %v7953_v60 = vadd.f32 %v7952_v47, %v7881_v58  ;;  %v71_v58 = vld [vmem:[%s24214_s4 + $0x18] sm:$0xff]  ;;  %v70_v59 = vld [vmem:[%s24214_s4 + $0x10] sm:$0xff] }
 0xb02   :  { %v22809_v62 = vand.u32 4294901760, %v71_v58  ;;  %v22811_v0 = vand.u32 4294901760, %v70_v59 }
 0xb03   :  { %7976 = vrot.lane.b32.xlu1 %v7953_v60, %s24223_s14  ;;  %v69_v60 = vld [vmem:[%s24214_s4 + $0x8] sm:$0xff] }
 0xb04   :  { %v22813_v1 = vand.u32 4294901760, %v69_v60 }
 0xb69   :  { %v7975_v3 = vpop.permute.xlu0 %7974 }
 0xb6a   :  { %v7986_v4 = vsel %vm7985_vm3, %v7983_v2, %v7975_v3  ;;  %v22816_v2 = vsub.f32 %v71_v58, %v22809_v62  ;;  %v22819_v3 = vsub.f32 %v70_v59, %v22811_v0  ;;  %v79_v59 = vld [vmem:[%s24216_s6 + $0x30] sm:$0xff] }
 0xb6b   :  { %v7989_v7 = vsel %vm86_vm0, %v7986_v4, 0  ;;  %v22822_v4 = vsub.f32 %v69_v60, %v22813_v1 }
 0xb6c   :  { %v8063_v8 = vand.u32 4294901760, %v7989_v7  ;;  %v22827_v6 = vand.u32 4294901760, %v22816_v2 }
 0xb6e   :  { %v8064_v11 = vsub.f32 %v7989_v7, %v8063_v8  ;;  %20827 = vmatprep.mubr.f32.mxu1 %v8063_v8  ;;  %v22830_v7 = vand.u32 4294901760, %v22819_v3 }
 0xb70   :  { %v8065_v12 = vand.u32 4294901760, %v8064_v11 }
 0xb72   :  { %v8066_v20 = vsub.f32 %v8064_v11, %v8065_v12 }
 0xb74   :  { %v8067_v22 = vand.u32 4294901760, %v8066_v20  ;;  %v68_v20 = vld [vmem:[%s24214_s4] sm:$0xff] }
 0xb75   :  { %v7977_v23 = vpop.permute.xlu1 %7976  ;;  %v22847_v21 = vand.u32 4294901760, %v68_v20 }
 0xb76   :  { %v7987_v24 = vsel %vm7985_vm3, %v7984_v34, %v7977_v23  ;;  %20816 = vmatprep.mubr.f32.mxu0 %v8067_v22 }
 0xb77   :  { %v7992_v29 = vsel %vm86_vm0, %v7987_v24, 0  ;;  %v22851_v23 = vsub.f32 %v68_v20, %v22847_v21 }
 0xb78   :  { %v8073_v30 = vand.u32 4294901760, %v7992_v29 }
 0xb7a   :  { %v8074_v61 = vsub.f32 %v7992_v29, %v8073_v30  ;;  %20828 = vmatmul.mubr.f32.vlgmr.msra.gmra.mxu1 %v8073_v30  ;;  %v22856_v29 = vand.u32 4294901760, %v22851_v23 }
 0xb7b   :  { %20842 = vmatpush3.msra.mxu1 %v22685_v5  ;;  %20849 = vmatprep.mubr.f32.mxu1 %v8065_v12  ;;  %v8717_v12 = vsub.f32 %v22819_v3, %v22830_v7 }
 0xb7c   :  { %20843 = vmatprep.subr.mxu1 %v22693_v10  ;;  %v8075_v31 = vand.u32 4294901760, %v8074_v61 }
 0xb7d   :  { %20844 = vmatpush3.msra.mxu1 %v22693_v10  ;;  %v8718_v34 = vand.u32 4294901760, %v8717_v12  ;;  %v76_v12 = vld [vmem:[%s24216_s6 + $0x18] sm:$0xff] }
 0xb7e   :  { %20845 = vmatprep.subr.mxu1 %v22706_v19  ;;  %v8076_v52 = vsub.f32 %v8074_v61, %v8075_v31 }
 0xb7f   :  { %20846 = vmatpush3.msra.mxu1 %v22706_v19 }
 0xb80   :  { %20847 = vmatprep.subr.mxu1 %v22721_v28  ;;  %v8077_v55 = vand.u32 4294901760, %v8076_v52 }
 0xb81   :  { %20848 = vmatpush3.msra.mxu1 %v22721_v28 }
 0xb82   :  { %20850 = vmatmul.mubr.f32.vlgmr.msra.gmra.mxu1 %v8075_v31  ;;  %20863 = vmatprep.subr.mxu1 %v22685_v5 }
 0xb83   :  { %20817 = vmatmul.mubr.f32.vlgmr.msra.gmra.mxu0 %v8077_v55  ;;  %20864 = vmatpush3.msra.mxu1 %v22685_v5 }
 0xb84   :  { %20831 = vmatpush3.msra.mxu0 %v22691_v9  ;;  %20871 = vmatprep.mubr.f32.mxu1 %v8063_v8 }
 0xb85   :  { %20832 = vmatprep.subr.mxu0 %v22704_v18  ;;  %20838 = vmatprep.mubr.f32.mxu0 %v8064_v11  ;;  %v8710_v11 = vsub.f32 %v22816_v2, %v22827_v6 }
 0xb86   :  { %20865 = vmatprep.subr.mxu1 %v22693_v10  ;;  %20833 = vmatpush3.msra.mxu0 %v22704_v18 }
 0xb87   :  { %20866 = vmatpush3.msra.mxu1 %v22693_v10  ;;  %20834 = vmatprep.subr.mxu0 %v22719_v26  ;;  %v8711_v22 = vand.u32 4294901760, %v8710_v11 }
 0xb88   :  { %20867 = vmatprep.subr.mxu1 %v22706_v19  ;;  %20835 = vmatpush3.msra.mxu0 %v22719_v26 }
 0xb89   :  { %20868 = vmatpush3.msra.mxu1 %v22706_v19  ;;  %20836 = vmatprep.subr.mxu0 %v22731_v32 }
 0xb8a   :  { %20869 = vmatprep.subr.mxu1 %v22721_v28  ;;  %20837 = vmatpush3.msra.mxu0 %v22731_v32 }
 0xb8b   :  { %20870 = vmatpush3.msra.mxu1 %v22721_v28  ;;  %20839 = vmatmul.mubr.f32.vlgmr.msra.gmra.mxu0 %v8074_v61 }
 0xb8c   :  { %20852 = vmatprep.subr.mxu0 %v22701_v17  ;;  %20872 = vmatmul.mubr.f32.vlgmr.msra.gmra.mxu1 %v8073_v30 }
 0xb8d   :  { %20853 = vmatpush3.msra.mxu0 %v22701_v17  ;;  %20860 = vmatprep.mubr.f32.mxu0 %v8063_v8  ;;  %v22833_v8 = vand.u32 4294901760, %v22822_v4 }
 0xb8e   :  { %20854 = vmatprep.subr.mxu0 %v22716_v25  ;;  %20885 = vmatprep.subr.mxu1 %v8711_v22 }
 0xb8f   :  { %20855 = vmatpush3.msra.mxu0 %v22716_v25  ;;  %v8724_v15 = vsub.f32 %v22822_v4, %v22833_v8  ;;  %20886 = vmatpush3.msra.mxu1 %v8711_v22 }
 0xb90   :  { %20856 = vmatprep.subr.mxu0 %v22728_v16  ;;  %20887 = vmatprep.subr.mxu1 %v8718_v34 }
 0xb91   :  { %20857 = vmatpush3.msra.mxu0 %v22728_v16  ;;  %v8725_v24 = vand.u32 4294901760, %v8724_v15  ;;  %20888 = vmatpush3.msra.mxu1 %v8718_v34  ;;  %v22963_v34 = vand.u32 4294901760, %v76_v12 }
 0xb92   :  { %20858 = vmatprep.subr.mxu0 %v22738_v39 }
 0xb93   :  { %20859 = vmatpush3.msra.mxu0 %v22738_v39  ;;  %20889 = vmatprep.subr.mxu1 %v8725_v24 }
 0xb94   :  { %20861 = vmatmul.mubr.f32.vlgmr.msra.gmra.mxu0 %v8073_v30  ;;  %20874 = vmatprep.subr.mxu0 %v22809_v62  ;;  %v8731_v30 = vsub.f32 %v22851_v23, %v22856_v29 }
 0xb95   :  { %20875 = vmatpush3.msra.mxu0 %v22809_v62  ;;  %20890 = vmatpush3.msra.mxu1 %v8725_v24 }
 0xb96   :  { %20876 = vmatprep.subr.mxu0 %v22811_v0  ;;  %v8732_v61 = vand.u32 4294901760, %v8731_v30 }
 0xb97   :  { %20877 = vmatpush3.msra.mxu0 %v22811_v0 }
 0xb98   :  { %20878 = vmatprep.subr.mxu0 %v22813_v1  ;;  %20891 = vmatprep.subr.mxu1 %v8732_v61 }
 0xb99   :  { %20879 = vmatpush3.msra.mxu0 %v22813_v1  ;;  %20892 = vmatpush3.msra.mxu1 %v8732_v61 }
 0xb9a   :  { %20880 = vmatprep.subr.mxu0 %v22847_v21  ;;  %20907 = vmatprep.subr.mxu1 %v22809_v62 }
 0xb9b   :  { %20881 = vmatpush3.msra.mxu0 %v22847_v21 }
 0xb9c   :  { %20896 = vmatprep.subr.mxu0 %v22816_v2 }
 0xc3a   :  { %v20829_v9 = vpop.f32.mrf.mxu1 }
 0xc3c   :  { %v8170_v19 = vpop.f32.mrf.mxu1 }
 0xc42   :  { %v20851_v26 = vpop.f32.mrf.mxu1 }
 0xc43   :  { %v20818_v5 = vpop.f32.mrf.mxu0 }
 0xc44   :  { %v8177_v17 = vadd.f32 %v20829_v9, %v20818_v5  ;;  %v8340_v35 = vpop.f32.mrf.mxu1 }
 0xc45   :  { %v8069_v10 = vpop.f32.mrf.mxu0 }
 0xc46   :  { %v8171_v32 = vadd.f32 %v8170_v19, %v8069_v10 }
 0xc4b   :  { %v20840_v18 = vpop.f32.mrf.mxu0 }
 0xc4c   :  { %v8264_v33 = vadd.f32 %v20840_v18, %v8177_v17  ;;  %v20873_v37 = vpop.f32.mrf.mxu1 }
 0xc4d   :  { %v8256_v28 = vpop.f32.mrf.mxu0 }
 0xc4e   :  { %v8257_v25 = vadd.f32 %v8256_v28, %v8171_v32  ;;  %v8349_v36 = vadd.f32 %v20851_v26, %v8264_v33  ;;  %v8512_v43 = vpop.f32.mrf.mxu1 }
 0xc50   :  { %v8341_v40 = vadd.f32 %v8340_v35, %v8257_v25 }
 0xc54   :  { %v20862_v16 = vpop.f32.mrf.mxu0 }
 0xc55   :  { %v8438_v38 = vadd.f32 %v20862_v16, %v8349_v36 }
 0xc56   :  { %v8431_v41 = vpop.f32.mrf.mxu0 }
 0xc57   :  { %v8519_v39 = vadd.f32 %v20873_v37, %v8438_v38  ;;  %v8432_v42 = vadd.f32 %v8431_v41, %v8341_v40  ;;  %v19502_v37 = vld [vmem:[%s24218_s8] ss:$0 sm:$0xff] }
 0xc58   :  { %v19503_v40 = vld [vmem:[%s24219_s9] ss:$0 sm:$0xff] }
 0xc59   :  { %v8513_v44 = vadd.f32 %v8512_v43, %v8432_v42  ;;  %v8523_v45 = vadd.f32 %v8519_v39, %v22097_v14 }
 0xc5b   :  { %v8527_v46 = vsel %vm86_vm0, %v8523_v45, 0.0  ;;  %v8522_v47 = vadd.f32 %v8513_v44, %v22095_v13 }
 0xc5c   :  { %8528 = vadd.xlane.f32.xlu1 %v8527_v46 }
 0xc5d   :  { %v8524_v63 = vsel %vm86_vm0, %v8522_v47, 0.0 }
 0xc5e   :  { %8525 = vadd.xlane.f32.xlu0 %v8524_v63 }
 0xce5   :  { %v8529_v27 = vpop.xlane.xlu1 %8528 }
 0xce6   :  { %v8532_v48 = vmul.f32 0.03125, %v8529_v27 }
 0xce7   :  { %v8526_v49 = vpop.xlane.xlu0 %8525 }
 0xce8   :  { %v8531_v50 = vmul.f32 0.03125, %v8526_v49  ;;  %v22790_v53 = vsub.f32 %v8523_v45, %v8532_v48 }
 0xcea   :  { %v22792_v54 = vsub.f32 %v8522_v47, %v8531_v50  ;;  %v8536_v13 = vmul.f32 %v22790_v53, %v22790_v53  ;;  %v8552_v39 = vmul.f32 %v19502_v37, %v22790_v53 }
 0xcec   :  { %v8535_v56 = vmul.f32 %v22792_v54, %v22792_v54  ;;  %v8540_v57 = vsel %vm86_vm0, %v8536_v13, 0.0  ;;  %v8551_v16 = vmul.f32 %v19502_v37, %v22792_v54 }
 0xcee   :  { %v8537_v14 = vsel %vm86_vm0, %v8535_v56, 0.0 }
 0xcef   :  { %8538 = vadd.xlane.f32.xlu0 %v8537_v14 }
 0xcf3   :  { %8541 = vadd.xlane.f32.xlu0 %v8540_v57  ;;  %v80_v57 = vld [vmem:[%s24216_s6 + $0x38] sm:$0xff] }
 0xcf4   :  { %v22911_v58 = vand.u32 4294901760, %v80_v57 }
 0xcf6   :  { %v22917_v60 = vsub.f32 %v80_v57, %v22911_v58 }
 0xd78   :  { %v8539_v31 = vpop.xlane.xlu0 %8538 }
 0xd79   :  { %v8543_v52 = vmul.f32 0.032258064, %v8539_v31  ;;  %v22977_v31 = vsub.f32 %v76_v12, %v22963_v34 }
 0xd7b   :  { %21896 = vrsqrt.f32 %v8543_v52  ;;  %vm8555_vm5 = vcmp.eq.f32.partialorder %v8543_v52, inf  ;;  %v8558_v18 = vand.u32 2147483648, %v8543_v52  ;;  %vm8557_vm6 = vcmp.eq.f32.partialorder %v8543_v52, 0.0 }
 0xd7c   :  { %v8542_v55 = vpop.xlane.xlu0 %8541 }
 0xd7d   :  { %v8544_v5 = vmul.f32 0.032258064, %v8542_v55 }
 0xd7f   :  { %21898 = vrsqrt.f32 %v8544_v5  ;;  %vm8562_vm7 = vcmp.eq.f32.partialorder %v8544_v5, inf  ;;  %v8565_v33 = vand.u32 2147483648, %v8544_v5  ;;  %vm8564_vm8 = vcmp.eq.f32.partialorder %v8544_v5, 0.0 }
 0xd88   :  { %v21897_v9 = vpop.eup %21896 }
 0xd89   :  { %v8554_v10 = vmul.f32 %v21897_v9, %v8543_v52 }
 0xd8b   :  { %v8556_v19 = vsel %vm8555_vm5, %v8543_v52, %v8554_v10  ;;  %v74_v52 = vld [vmem:[%s24216_s6 + $0x8] sm:$0xff] }
 0xd8c   :  { %v21899_v17 = vpop.eup %21898  ;;  %v8559_v26 = vsel %vm8557_vm6, %v8558_v18, %v8556_v19  ;;  %v22988_v10 = vand.u32 4294901760, %v74_v52  ;;  %v22992_v18 = vand.u32 4294901760, %v22977_v31  ;;  %v73_v19 = vld [vmem:[%s24216_s6] sm:$0xff] }
 0xd8d   :  { %v8567_v28 = vadd.f32 1e-06, %v8559_v26  ;;  %v8561_v32 = vmul.f32 %v21899_v17, %v8544_v5 }
 0xd8f   :  { %21900 = vrcp.f32 %v8567_v28  ;;  %v8563_v25 = vsel %vm8562_vm7, %v8544_v5, %v8561_v32  ;;  %v23002_v28 = vsub.f32 %v74_v52, %v22988_v10  ;;  %v23004_v32 = vand.u32 4294901760, %v73_v19 }
 0xd90   :  { %v8566_v35 = vsel %vm8564_vm8, %v8565_v33, %v8563_v25  ;;  %v9277_v33 = vsub.f32 %v22977_v31, %v22992_v18 }
 0xd91   :  { %v8568_v36 = vadd.f32 1e-06, %v8566_v35  ;;  %v23013_v35 = vand.u32 4294901760, %v23002_v28 }
 0xd92   :  { %v9278_v37 = vand.u32 4294901760, %v9277_v33 }
 0xd93   :  { %21902 = vrcp.f32 %v8568_v36  ;;  %v23016_v36 = vsub.f32 %v73_v19, %v23004_v32 }
 0xd9c   :  { %v21901_v38 = vpop.eup %21900 }
 0xd9d   :  { %v8570_v41 = vmul.f32 %v21901_v38, %v8551_v16  ;;  %v9291_v38 = vsub.f32 %v23002_v28, %v23013_v35 }
 0xd9f   :  { %v22870_v42 = vadd.f32 %v19503_v40, %v8570_v41  ;;  %v9292_v41 = vand.u32 4294901760, %v9291_v38 }
 0xda0   :  { %v21903_v43 = vpop.eup %21902 }
 0xda1   :  { %v8588_v44 = vsel %vm86_vm0, %v22870_v42, 0  ;;  %v8572_v45 = vmul.f32 %v21903_v43, %v8552_v39 }
 0xda2   :  { %v8662_v46 = vand.u32 4294901760, %v8588_v44 }
 0xda3   :  { %v22874_v47 = vadd.f32 %v19503_v40, %v8572_v45  ;;  %v23023_v40 = vand.u32 4294901760, %v23016_v36  ;;  %v19504_v45 = vld [vmem:[%s24215_s5] ss:$0 sm:$0xff] }
 0xda4   :  { %20893 = vmatprep.mubr.f32.mxu1 %v8662_v46  ;;  %v8663_v63 = vsub.f32 %v8588_v44, %v8662_v46 }
 0xda5   :  { %v8591_v27 = vsel %vm86_vm0, %v22874_v47, 0  ;;  %v9298_v39 = vsub.f32 %v23016_v36, %v23023_v40 }
 0xda6   :  { %v8672_v48 = vand.u32 4294901760, %v8591_v27  ;;  %v8664_v49 = vand.u32 4294901760, %v8663_v63 }
 0xda7   :  { %v9299_v43 = vand.u32 4294901760, %v9298_v39 }
 0xda8   :  { %v8673_v50 = vsub.f32 %v8591_v27, %v8672_v48  ;;  %20894 = vmatmul.mubr.f32.vlgmr.msra.gmra.mxu1 %v8672_v48  ;;  %v8665_v53 = vsub.f32 %v8663_v63, %v8664_v49 }
 0xda9   :  { %20908 = vmatpush3.msra.mxu1 %v22809_v62  ;;  %20915 = vmatprep.mubr.f32.mxu1 %v8664_v49 }
 0xdaa   :  { %20909 = vmatprep.subr.mxu1 %v22811_v0  ;;  %v8666_v54 = vand.u32 4294901760, %v8665_v53  ;;  %v8674_v56 = vand.u32 4294901760, %v8673_v50 }
 0xdab   :  { %20910 = vmatpush3.msra.mxu1 %v22811_v0 }
 0xdac   :  { %20911 = vmatprep.subr.mxu1 %v22813_v1  ;;  %20882 = vmatprep.mubr.f32.mxu0 %v8666_v54  ;;  %v8675_v14 = vsub.f32 %v8673_v50, %v8674_v56 }
 0xdad   :  { %20912 = vmatpush3.msra.mxu1 %v22813_v1 }
 0xdae   :  { %20913 = vmatprep.subr.mxu1 %v22847_v21  ;;  %v8676_v13 = vand.u32 4294901760, %v8675_v14 }
 0xdaf   :  { %20914 = vmatpush3.msra.mxu1 %v22847_v21 }
 0xdb0   :  { %20916 = vmatmul.mubr.f32.vlgmr.msra.gmra.mxu1 %v8674_v56  ;;  %20929 = vmatprep.subr.mxu1 %v22809_v62 }
 0xdb1   :  { %20883 = vmatmul.mubr.f32.vlgmr.msra.gmra.mxu0 %v8676_v13  ;;  %20930 = vmatpush3.msra.mxu1 %v22809_v62  ;;  %v22919_v62 = vand.u32 4294901760, %v79_v59 }
 0xdb2   :  { %20897 = vmatpush3.msra.mxu0 %v22816_v2  ;;  %20937 = vmatprep.mubr.f32.mxu1 %v8662_v46 }
 0xdb3   :  { %20898 = vmatprep.subr.mxu0 %v22819_v3  ;;  %20904 = vmatprep.mubr.f32.mxu0 %v8663_v63  ;;  %v22930_v2 = vsub.f32 %v79_v59, %v22919_v62 }
 0xdb4   :  { %20931 = vmatprep.subr.mxu1 %v22811_v0  ;;  %20899 = vmatpush3.msra.mxu0 %v22819_v3 }
 0xdb5   :  { %20932 = vmatpush3.msra.mxu1 %v22811_v0  ;;  %20900 = vmatprep.subr.mxu0 %v22822_v4  ;;  %v78_v0 = vld [vmem:[%s24216_s6 + $0x28] sm:$0xff] }
 0xdb6   :  { %20933 = vmatprep.subr.mxu1 %v22813_v1  ;;  %20901 = vmatpush3.msra.mxu0 %v22822_v4  ;;  %v22932_v3 = vand.u32 4294901760, %v78_v0  ;;  %v77_v4 = vld [vmem:[%s24216_s6 + $0x20] sm:$0xff] }
 0xdb7   :  { %20934 = vmatpush3.msra.mxu1 %v22813_v1  ;;  %20902 = vmatprep.subr.mxu0 %v22851_v23  ;;  %v22927_v1 = vand.u32 4294901760, %v22917_v60  ;;  %v22947_v11 = vand.u32 4294901760, %v77_v4 }
 0xdb8   :  { %20935 = vmatprep.subr.mxu1 %v22847_v21  ;;  %20903 = vmatpush3.msra.mxu0 %v22851_v23  ;;  %v75_v23 = vld [vmem:[%s24216_s6 + $0x10] sm:$0xff] }
 0xdb9   :  { %20936 = vmatpush3.msra.mxu1 %v22847_v21  ;;  %20905 = vmatmul.mubr.f32.vlgmr.msra.gmra.mxu0 %v8673_v50  ;;  %v22960_v22 = vsub.f32 %v77_v4, %v22947_v11  ;;  %v22974_v61 = vand.u32 4294901760, %v75_v23 }
 0xdba   :  { %20918 = vmatprep.subr.mxu0 %v22827_v6  ;;  %20938 = vmatmul.mubr.f32.vlgmr.msra.gmra.mxu1 %v8672_v48 }
 0xdbb   :  { %20919 = vmatpush3.msra.mxu0 %v22827_v6  ;;  %20926 = vmatprep.mubr.f32.mxu0 %v8662_v46  ;;  %v9249_v6 = vsub.f32 %v22917_v60, %v22927_v1  ;;  %v22972_v30 = vand.u32 4294901760, %v22960_v22  ;;  %v22986_v9 = vsub.f32 %v75_v23, %v22974_v61 }
 0xdbc   :  { %20920 = vmatprep.subr.mxu0 %v22830_v7 }
 0xdbd   :  { %20921 = vmatpush3.msra.mxu0 %v22830_v7  ;;  %v22942_v7 = vand.u32 4294901760, %v22930_v2  ;;  %v9250_v15 = vand.u32 4294901760, %v9249_v6  ;;  %v9270_v5 = vsub.f32 %v22960_v22, %v22972_v30  ;;  %v22999_v26 = vand.u32 4294901760, %v22986_v9 }
 0xdbe   :  { %20922 = vmatprep.subr.mxu0 %v22833_v8 }
 0xdbf   :  { %20923 = vmatpush3.msra.mxu0 %v22833_v8  ;;  %v22945_v8 = vsub.f32 %v78_v0, %v22932_v3  ;;  %v9256_v20 = vsub.f32 %v22930_v2, %v22942_v7  ;;  %20959 = vmatprep.subr.mxu1 %v9250_v15  ;;  %v9271_v17 = vand.u32 4294901760, %v9270_v5  ;;  %v9284_v25 = vsub.f32 %v22986_v9, %v22999_v26 }
 0xdc0   :  { %20924 = vmatprep.subr.mxu0 %v22856_v29  ;;  %20960 = vmatpush3.msra.mxu1 %v9250_v15 }
 0xdc1   :  { %20925 = vmatpush3.msra.mxu0 %v22856_v29  ;;  %v22957_v21 = vand.u32 4294901760, %v22945_v8  ;;  %v9257_v24 = vand.u32 4294901760, %v9256_v20  ;;  %v9285_v16 = vand.u32 4294901760, %v9284_v25 }
 0xdc2   :  { %20927 = vmatmul.mubr.f32.vlgmr.msra.gmra.mxu0 %v8672_v48  ;;  %20940 = vmatprep.subr.mxu0 %v22911_v58 }
 0xdc3   :  { %20941 = vmatpush3.msra.mxu0 %v22911_v58  ;;  %v9263_v29 = vsub.f32 %v22945_v8, %v22957_v21  ;;  %20961 = vmatprep.subr.mxu1 %v9257_v24 }
 0xdc4   :  { %20942 = vmatprep.subr.mxu0 %v22919_v62  ;;  %20962 = vmatpush3.msra.mxu1 %v9257_v24 }
 0xdc5   :  { %20943 = vmatpush3.msra.mxu0 %v22919_v62  ;;  %v9264_v55 = vand.u32 4294901760, %v9263_v29 }
 0xdc6   :  { %20944 = vmatprep.subr.mxu0 %v22932_v3 }
 0xdc7   :  { %20945 = vmatpush3.msra.mxu0 %v22932_v3  ;;  %20963 = vmatprep.subr.mxu1 %v9264_v55 }
 0xdc8   :  { %20946 = vmatprep.subr.mxu0 %v22947_v11  ;;  %20964 = vmatpush3.msra.mxu1 %v9264_v55 }
 0xdc9   :  { %20947 = vmatpush3.msra.mxu0 %v22947_v11  ;;  %20965 = vmatprep.subr.mxu1 %v9271_v17 }
 0xdca   :  { %20948 = vmatprep.subr.mxu0 %v22963_v34  ;;  %20966 = vmatpush3.msra.mxu1 %v9271_v17 }
 0xdcb   :  { %20949 = vmatpush3.msra.mxu0 %v22963_v34  ;;  %20967 = vmatprep.subr.mxu1 %v9278_v37 }
 0xdcc   :  { %20950 = vmatprep.subr.mxu0 %v22974_v61  ;;  %20968 = vmatpush3.msra.mxu1 %v9278_v37 }
 0xdcd   :  { %20951 = vmatpush3.msra.mxu0 %v22974_v61  ;;  %20969 = vmatprep.subr.mxu1 %v9285_v16 }
 0xdce   :  { %20952 = vmatprep.subr.mxu0 %v22988_v10  ;;  %20970 = vmatpush3.msra.mxu1 %v9285_v16 }
 0xdcf   :  { %20953 = vmatpush3.msra.mxu0 %v22988_v10  ;;  %20971 = vmatprep.subr.mxu1 %v9292_v41 }
 0xdd0   :  { %20954 = vmatprep.subr.mxu0 %v23004_v32  ;;  %20972 = vmatpush3.msra.mxu1 %v9292_v41 }
 0xdd1   :  { %20955 = vmatpush3.msra.mxu0 %v23004_v32  ;;  %20973 = vmatprep.subr.mxu1 %v9299_v43 }
 0xdd2   :  { %20978 = vmatprep.subr.mxu0 %v22917_v60  ;;  %20974 = vmatpush3.msra.mxu1 %v9299_v43 }
 0xdd3   :  { %20997 = vmatprep.subr.mxu1 %v22911_v58 }
 0xe68   :  { %v20895_v46 = vpop.f32.mrf.mxu1 }
 0xe6a   :  { %v8769_v50 = vpop.f32.mrf.mxu1 }
 0xe70   :  { %v20917_v54 = vpop.f32.mrf.mxu1 }
 0xe71   :  { %v20884_v44 = vpop.f32.mrf.mxu0 }
 0xe72   :  { %v8679_v27 = vadd.f32 %v20884_v44, %v19504_v45  ;;  %v8939_v59 = vpop.f32.mrf.mxu1 }
 0xe73   :  { %v8668_v63 = vpop.f32.mrf.mxu0 }
 0xe74   :  { %v8669_v48 = vadd.f32 %v19504_v45, %v8668_v63  ;;  %v8776_v53 = vadd.f32 %v20895_v46, %v8679_v27 }
 0xe76   :  { %v8770_v13 = vadd.f32 %v8769_v50, %v8669_v48 }
 0xe79   :  { %v20906_v49 = vpop.f32.mrf.mxu0 }
 0xe7a   :  { %v8863_v14 = vadd.f32 %v20906_v49, %v8776_v53  ;;  %v20939_v4 = vpop.f32.mrf.mxu1 }
 0xe7b   :  { %v8855_v56 = vpop.f32.mrf.mxu0 }
 0xe7c   :  { %v8856_v57 = vadd.f32 %v8855_v56, %v8770_v13  ;;  %v8948_v0 = vadd.f32 %v20917_v54, %v8863_v14  ;;  %v9111_v29 = vpop.f32.mrf.mxu1 }
 0xe7e   :  { %v8940_v15 = vadd.f32 %v8939_v59, %v8856_v57 }
 0xe82   :  { %v20928_v6 = vpop.f32.mrf.mxu0 }
 0xe83   :  { %v9037_v12 = vadd.f32 %v20928_v6, %v8948_v0  ;;  %v19511_v0 = vld [vmem:[%s24212_s2 + $0x38] sm:$0xff]  ;;  %v19509_v6 = vld [vmem:[%s24212_s2 + $0x28] sm:$0xff] }
 0xe84   :  { %v9030_v20 = vpop.f32.mrf.mxu0 }
 0xe85   :  { %v9118_v23 = vadd.f32 %v20939_v4, %v9037_v12  ;;  %v9031_v24 = vadd.f32 %v9030_v20, %v8940_v15  ;;  %v19510_v4 = vld [vmem:[%s24212_s2 + $0x30] sm:$0xff]  ;;  %v23129_v12 = vand.u32 4294901760, %v19511_v0  ;;  %v23133_v20 = vand.u32 4294901760, %v19509_v6 }
 0xe86   :  { %v23131_v15 = vand.u32 4294901760, %v19510_v4 }
 0xe87   :  { %v9122_v52 = vmax.f32 %v9118_v23, 0.0  ;;  %v9112_v55 = vadd.f32 %v9111_v29, %v9031_v24  ;;  %v19508_v23 = vld [vmem:[%s24212_s2 + $0x20] sm:$0xff]  ;;  %v23141_v29 = vsub.f32 %v19511_v0, %v23129_v12 }
 0xe88   :  { %v23138_v24 = vand.u32 4294901760, %v19508_v23 }
 0xe89   :  { %v9134_v5 = vsel %vm9129_vm9, %v9122_v52, 0  ;;  %v9121_v19 = vmax.f32 %v9112_v55, 0.0  ;;  %v23144_v52 = vsub.f32 %v19510_v4, %v23131_v15  ;;  %v23147_v55 = vsub.f32 %v19509_v6, %v23133_v20 }
 0xe8a   :  { %v23034_v17 = vand.u32 4294901760, %v9134_v5 }
 0xe8b   :  { %v9131_v33 = vsel %vm9129_vm9, %v9121_v19, 0  ;;  %v23155_v19 = vand.u32 4294901760, %v23141_v29 }
 0xe8c   :  { %v9220_v25 = vsub.f32 %v9134_v5, %v23034_v17  ;;  %v9209_v37 = vand.u32 4294901760, %v9131_v33  ;;  %v23151_v5 = vsub.f32 %v19508_v23, %v23138_v24 }
 0xe8e   :  { %v9221_v16 = vand.u32 4294901760, %v9220_v25  ;;  %v9210_v38 = vsub.f32 %v9131_v33, %v9209_v37  ;;  %20975 = vmatprep.mubr.f32.mxu1 %v9209_v37  ;;  %v23161_v33 = vand.u32 4294901760, %v23147_v55 }
 0xe8f   :  { %20976 = vmatmul.mubr.f32.vlgmr.msra.gmra.mxu1 %v23034_v17 }
 0xe90   :  { %20998 = vmatpush3.msra.mxu1 %v22911_v58  ;;  %v9211_v41 = vand.u32 4294901760, %v9210_v38  ;;  %v9222_v39 = vsub.f32 %v9220_v25, %v9221_v16 }
 0xe91   :  { %20999 = vmatprep.subr.mxu1 %v22919_v62 }
 0xe92   :  { %21000 = vmatpush3.msra.mxu1 %v22919_v62  ;;  %21013 = vmatprep.mubr.f32.mxu1 %v9211_v41  ;;  %v9212_v43 = vsub.f32 %v9210_v38, %v9211_v41  ;;  %v9223_v45 = vand.u32 4294901760, %v9222_v39 }
 0xe93   :  { %21001 = vmatprep.subr.mxu1 %v22932_v3 }
 0xe94   :  { %21002 = vmatpush3.msra.mxu1 %v22932_v3  ;;  %v9213_v44 = vand.u32 4294901760, %v9212_v43 }
 0xe95   :  { %21003 = vmatprep.subr.mxu1 %v22947_v11 }
 0xe96   :  { %21004 = vmatpush3.msra.mxu1 %v22947_v11  ;;  %20956 = vmatprep.mubr.f32.mxu0 %v9213_v44 }
 0xe97   :  { %21005 = vmatprep.subr.mxu1 %v22963_v34  ;;  %20957 = vmatmul.mubr.f32.vlgmr.msra.gmra.mxu0 %v9223_v45 }
 0xe98   :  { %20979 = vmatpush3.msra.mxu0 %v22917_v60  ;;  %21006 = vmatpush3.msra.mxu1 %v22963_v34  ;;  %v19505_v60 = vld [vmem:[%s24217_s7] ss:$0 sm:$0xff] }
 0xe99   :  { %20980 = vmatprep.subr.mxu0 %v22930_v2  ;;  %20994 = vmatprep.mubr.f32.mxu0 %v9210_v38  ;;  %v9949_v38 = vsub.f32 %v23147_v55, %v23161_v33 }
 0xe9a   :  { %21007 = vmatprep.subr.mxu1 %v22974_v61  ;;  %20981 = vmatpush3.msra.mxu0 %v22930_v2 }
 0xe9b   :  { %21008 = vmatpush3.msra.mxu1 %v22974_v61  ;;  %20982 = vmatprep.subr.mxu0 %v22945_v8  ;;  %v9950_v44 = vand.u32 4294901760, %v9949_v38 }
 0xe9c   :  { %21009 = vmatprep.subr.mxu1 %v22988_v10  ;;  %20983 = vmatpush3.msra.mxu0 %v22945_v8 }
 0xe9d   :  { %21010 = vmatpush3.msra.mxu1 %v22988_v10  ;;  %20984 = vmatprep.subr.mxu0 %v22960_v22 }
 0xe9e   :  { %21011 = vmatprep.subr.mxu1 %v23004_v32  ;;  %20985 = vmatpush3.msra.mxu0 %v22960_v22 }
 0xe9f   :  { %21012 = vmatpush3.msra.mxu1 %v23004_v32  ;;  %20986 = vmatprep.subr.mxu0 %v22977_v31 }
 0xea0   :  { %21014 = vmatmul.mubr.f32.vlgmr.msra.gmra.mxu1 %v9221_v16  ;;  %21035 = vmatprep.subr.mxu1 %v22911_v58 }
 0xea1   :  { %20987 = vmatpush3.msra.mxu0 %v22977_v31  ;;  %21036 = vmatpush3.msra.mxu1 %v22911_v58 }
 0xea2   :  { %21051 = vmatprep.mubr.f32.mxu1 %v9209_v37  ;;  %20988 = vmatprep.subr.mxu0 %v22986_v9 }
 0xea3   :  { %21037 = vmatprep.subr.mxu1 %v22919_v62  ;;  %20989 = vmatpush3.msra.mxu0 %v22986_v9 }
 0xea4   :  { %21038 = vmatpush3.msra.mxu1 %v22919_v62  ;;  %20990 = vmatprep.subr.mxu0 %v23002_v28 }
 0xea5   :  { %21039 = vmatprep.subr.mxu1 %v22932_v3  ;;  %20991 = vmatpush3.msra.mxu0 %v23002_v28 }
 0xea6   :  { %21040 = vmatpush3.msra.mxu1 %v22932_v3  ;;  %20992 = vmatprep.subr.mxu0 %v23016_v36 }
 0xea7   :  { %21041 = vmatprep.subr.mxu1 %v22947_v11  ;;  %20993 = vmatpush3.msra.mxu0 %v23016_v36 }
 0xea8   :  { %21042 = vmatpush3.msra.mxu1 %v22947_v11  ;;  %20995 = vmatmul.mubr.f32.vlgmr.msra.gmra.mxu0 %v9220_v25  ;;  %v23165_v25 = vand.u32 4294901760, %v23151_v5 }
 0xea9   :  { %21016 = vmatprep.subr.mxu0 %v22927_v1  ;;  %21043 = vmatprep.subr.mxu1 %v22963_v34 }
 0xeaa   :  { %21017 = vmatpush3.msra.mxu0 %v22927_v1  ;;  %21032 = vmatprep.mubr.f32.mxu0 %v9209_v37  ;;  %v9935_v37 = vsub.f32 %v23141_v29, %v23155_v19  ;;  %v9956_v43 = vsub.f32 %v23151_v5, %v23165_v25 }
 0xeab   :  { %21044 = vmatpush3.msra.mxu1 %v22963_v34  ;;  %21018 = vmatprep.subr.mxu0 %v22942_v7 }
 0xeac   :  { %21045 = vmatprep.subr.mxu1 %v22974_v61  ;;  %21019 = vmatpush3.msra.mxu0 %v22942_v7  ;;  %v9936_v41 = vand.u32 4294901760, %v9935_v37  ;;  %v9957_v45 = vand.u32 4294901760, %v9956_v43 }
 0xead   :  { %21046 = vmatpush3.msra.mxu1 %v22974_v61  ;;  %21020 = vmatprep.subr.mxu0 %v22957_v21 }
 0xeae   :  { %21047 = vmatprep.subr.mxu1 %v22988_v10  ;;  %21021 = vmatpush3.msra.mxu0 %v22957_v21 }
 0xeaf   :  { %21048 = vmatpush3.msra.mxu1 %v22988_v10  ;;  %21022 = vmatprep.subr.mxu0 %v22972_v30 }
 0xeb0   :  { %21049 = vmatprep.subr.mxu1 %v23004_v32  ;;  %21023 = vmatpush3.msra.mxu0 %v22972_v30 }
 0xeb1   :  { %21050 = vmatpush3.msra.mxu1 %v23004_v32  ;;  %21024 = vmatprep.subr.mxu0 %v22992_v18 }
 0xeb2   :  { %21052 = vmatmul.mubr.f32.vlgmr.msra.gmra.mxu1 %v23034_v17  ;;  %21025 = vmatpush3.msra.mxu0 %v22992_v18 }
 0xeb3   :  { %21026 = vmatprep.subr.mxu0 %v22999_v26  ;;  %21065 = vmatprep.subr.mxu1 %v9936_v41 }
 0xeb4   :  { %21027 = vmatpush3.msra.mxu0 %v22999_v26  ;;  %21066 = vmatpush3.msra.mxu1 %v9936_v41 }
 0xeb5   :  { %21028 = vmatprep.subr.mxu0 %v23013_v35 }
 0xeb6   :  { %21029 = vmatpush3.msra.mxu0 %v23013_v35 }
 0xeb7   :  { %21030 = vmatprep.subr.mxu0 %v23023_v40 }
 0xeb8   :  { %21031 = vmatpush3.msra.mxu0 %v23023_v40 }
 0xeb9   :  { %21033 = vmatmul.mubr.f32.vlgmr.msra.gmra.mxu0 %v23034_v17  ;;  %21054 = vmatprep.subr.mxu0 %v23129_v12  ;;  %v23158_v17 = vand.u32 4294901760, %v23144_v52 }
 0xeba   :  { %21055 = vmatpush3.msra.mxu0 %v23129_v12 }
 0xebb   :  { %21056 = vmatprep.subr.mxu0 %v23131_v15  ;;  %v9942_v16 = vsub.f32 %v23144_v52, %v23158_v17 }
 0xebc   :  { %21057 = vmatpush3.msra.mxu0 %v23131_v15 }
 0xebd   :  { %21058 = vmatprep.subr.mxu0 %v23133_v20  ;;  %v9943_v39 = vand.u32 4294901760, %v9942_v16 }
 0xebe   :  { %21059 = vmatpush3.msra.mxu0 %v23133_v20 }
 0xebf   :  { %21060 = vmatprep.subr.mxu0 %v23138_v24  ;;  %21067 = vmatprep.subr.mxu1 %v9943_v39 }
 0xec0   :  { %21061 = vmatpush3.msra.mxu0 %v23138_v24  ;;  %21068 = vmatpush3.msra.mxu1 %v9943_v39 }
 0xec1   :  { %21076 = vmatprep.subr.mxu0 %v23141_v29  ;;  %21069 = vmatprep.subr.mxu1 %v9950_v44 }
 0xec2   :  { %21070 = vmatpush3.msra.mxu1 %v9950_v44 }
 0xec3   :  { %21071 = vmatprep.subr.mxu1 %v9957_v45 }
 0xec4   :  { %21072 = vmatpush3.msra.mxu1 %v9957_v45 }
 0xec5   :  { %21087 = vmatprep.subr.mxu1 %v23129_v12 }
 0xf4f   :  { %v20977_v62 = vpop.f32.mrf.mxu1 }
 0xf51   :  { %v9336_v8 = vpop.f32.mrf.mxu1 }
 0xf57   :  { %v20958_v58 = vpop.f32.mrf.mxu0 }
 0xf58   :  { %v9226_v2 = vadd.f32 %v20958_v58, %v19505_v60 }
 0xf59   :  { %v9215_v1 = vpop.f32.mrf.mxu0 }
 0xf5a   :  { %v9216_v7 = vadd.f32 %v19505_v60, %v9215_v1  ;;  %v9343_v11 = vadd.f32 %v20977_v62, %v9226_v2 }
 0xf5c   :  { %v9337_v30 = vadd.f32 %v9336_v8, %v9216_v7 }
 0xf60   :  { %v21015_v21 = vpop.f32.mrf.mxu1 }
 0xf62   :  { %v9518_v31 = vpop.f32.mrf.mxu1 }
 0xf68   :  { %v20996_v3 = vpop.f32.mrf.mxu0 }
 0xf69   :  { %v9438_v34 = vadd.f32 %v20996_v3, %v9343_v11 }
 0xf6a   :  { %v9430_v22 = vpop.f32.mrf.mxu0 }
 0xf6b   :  { %v9431_v61 = vadd.f32 %v9430_v22, %v9337_v30  ;;  %v9527_v9 = vadd.f32 %v21015_v21, %v9438_v34 }
 0xf6d   :  { %v9519_v28 = vadd.f32 %v9518_v31, %v9431_v61 }
 0xf72   :  { %v21053_v10 = vpop.f32.mrf.mxu1 }
 0xf74   :  { %v9706_v40 = vpop.f32.mrf.mxu1 }
 0xf79   :  { %v21034_v18 = vpop.f32.mrf.mxu0 }
 0xf7a   :  { %v9628_v26 = vadd.f32 %v21034_v18, %v9527_v9 }
 0xf7b   :  { %v9621_v32 = vpop.f32.mrf.mxu0 }
 0xf7c   :  { %v9713_v35 = vadd.f32 %v21053_v10, %v9628_v26  ;;  %v9622_v36 = vadd.f32 %v9621_v32, %v9519_v28  ;;  %v19506_v10 = vld [vmem:[%s24220_s10] ss:$0 sm:$0xff] }
 0xf7d   :  { %v19507_v28 = vld [vmem:[%s24221_s11] ss:$0 sm:$0xff] }
 0xf7e   :  { %v9707_v46 = vadd.f32 %v9706_v40, %v9622_v36  ;;  %v9717_v63 = vadd.f32 %v9713_v35, %v22874_v47 }
 0xf80   :  { %v9721_v27 = vsel %vm86_vm0, %v9717_v63, 0.0  ;;  %v9716_v48 = vadd.f32 %v9707_v46, %v22870_v42 }
 0xf81   :  { %9722 = vadd.xlane.f32.xlu0 %v9721_v27 }
 0xf82   :  { %v9718_v49 = vsel %vm86_vm0, %v9716_v48, 0.0 }
 0xf83   :  { %9719 = vadd.xlane.f32.xlu1 %v9718_v49 }
0x100a   :  { %v9723_v50 = vpop.xlane.xlu0 %9722 }
0x100b   :  { %v9725_v53 = vmul.f32 0.03125, %v9723_v50 }
0x100c   :  { %v9720_v54 = vpop.xlane.xlu1 %9719 }
0x100d   :  { %v23110_v56 = vsub.f32 %v9717_v63, %v9725_v53  ;;  %v9724_v14 = vmul.f32 0.03125, %v9720_v54 }
0x100f   :  { %v23112_v13 = vsub.f32 %v9716_v48, %v9724_v14  ;;  %v9729_v57 = vmul.f32 %v23110_v56, %v23110_v56  ;;  %v9745_v18 = vmul.f32 %v19506_v10, %v23110_v56 }
0x1011   :  { %v9733_v47 = vsel %vm86_vm0, %v9729_v57, 0.0  ;;  %v9728_v42 = vmul.f32 %v23112_v13, %v23112_v13  ;;  %v9744_v35 = vmul.f32 %v19506_v10, %v23112_v13 }
0x1012   :  { %9734 = vadd.xlane.f32.xlu0 %v9733_v47 }
0x1013   :  { %v9730_v59 = vsel %vm86_vm0, %v9728_v42, 0.0 }
0x1014   :  { %9731 = vadd.xlane.f32.xlu1 %v9730_v59 }
0x109b   :  { %v9735_v58 = vpop.xlane.xlu0 %9734 }
0x109c   :  { %v9737_v60 = vmul.f32 0.032258064, %v9735_v58 }
0x109d   :  { %v9732_v62 = vpop.xlane.xlu1 %9731 }
0x109e   :  { %21904 = vrsqrt.f32 %v9737_v60  ;;  %v9736_v1 = vmul.f32 0.032258064, %v9732_v62  ;;  %vm9755_vm10 = vcmp.eq.f32.partialorder %v9737_v60, inf  ;;  %v9758_v7 = vand.u32 2147483648, %v9737_v60 }
0x109f   :  { %vm9757_vm11 = vcmp.eq.f32.partialorder %v9737_v60, 0.0 }
0x10a0   :  { %21906 = vrsqrt.f32 %v9736_v1  ;;  %vm9748_vm12 = vcmp.eq.f32.partialorder %v9736_v1, inf  ;;  %v9751_v30 = vand.u32 2147483648, %v9736_v1  ;;  %vm9750_vm13 = vcmp.eq.f32.partialorder %v9736_v1, 0.0 }
0x10ab   :  { %v21905_v2 = vpop.eup %21904 }
0x10ac   :  { %v9754_v3 = vmul.f32 %v21905_v2, %v9737_v60 }
0x10ad   :  { %v21907_v8 = vpop.eup %21906 }
0x10ae   :  { %v9756_v11 = vsel %vm9755_vm10, %v9737_v60, %v9754_v3  ;;  %v9747_v22 = vmul.f32 %v21907_v8, %v9736_v1 }
0x10af   :  { %v9759_v21 = vsel %vm9757_vm11, %v9758_v7, %v9756_v11 }
0x10b0   :  { %v9761_v34 = vadd.f32 1e-06, %v9759_v21  ;;  %v9749_v61 = vsel %vm9748_vm12, %v9736_v1, %v9747_v22 }
0x10b1   :  { %v9752_v31 = vsel %vm9750_vm13, %v9751_v30, %v9749_v61 }
0x10b2   :  { %21908 = vrcp.f32 %v9761_v34  ;;  %v9760_v9 = vadd.f32 1e-06, %v9752_v31 }
0x10b4   :  { %21910 = vrcp.f32 %v9760_v9 }
0x10bf   :  { %v21909_v26 = vpop.eup %21908 }
0x10c0   :  { %v9765_v32 = vmul.f32 %v21909_v26, %v9745_v18 }
0x10c1   :  { %v21911_v36 = vpop.eup %21910 }
0x10c2   :  { %v23190_v40 = vadd.f32 %v19507_v28, %v9765_v32  ;;  %v9763_v46 = vmul.f32 %v21911_v36, %v9744_v35 }
0x10c4   :  { %9775 = vst.msk [vmem:[%s24222_s12 + $0x8] sm:$0xff] %vm86_vm0, %v23190_v40  ;;  %v9816_v63 = vsel %vm86_vm0, %v23190_v40, 0  ;;  %v23199_v27 = vadd.f32 %v19507_v28, %v9763_v46 }
0x10c5   :  { %v9897_v48 = vand.u32 4294901760, %v9816_v63 }
0x10c6   :  { %9774 = vst.msk [vmem:[%s24222_s12] sm:$0xff] %vm86_vm0, %v23199_v27  ;;  %v9813_v49 = vsel %vm86_vm0, %v23199_v27, 0 }
0x10c7   :  { %v9898_v50 = vsub.f32 %v9816_v63, %v9897_v48  ;;  %v9887_v53 = vand.u32 4294901760, %v9813_v49 }
0x10c9   :  { %21073 = vmatprep.mubr.f32.mxu1 %v9887_v53  ;;  %v9888_v54 = vsub.f32 %v9813_v49, %v9887_v53  ;;  %v9899_v56 = vand.u32 4294901760, %v9898_v50 }
0x10ca   :  { %21074 = vmatmul.mubr.f32.vlgmr.msra.gmra.mxu1 %v9897_v48 }
0x10cb   :  { %21088 = vmatpush3.msra.mxu1 %v23129_v12  ;;  %v9889_v14 = vand.u32 4294901760, %v9888_v54  ;;  %v9900_v57 = vsub.f32 %v9898_v50, %v9899_v56 }
0x10cc   :  { %21089 = vmatprep.subr.mxu1 %v23131_v15 }
0x10cd   :  { %21090 = vmatpush3.msra.mxu1 %v23131_v15  ;;  %21095 = vmatprep.mubr.f32.mxu1 %v9889_v14  ;;  %v9890_v13 = vsub.f32 %v9888_v54, %v9889_v14  ;;  %v9901_v42 = vand.u32 4294901760, %v9900_v57 }
0x10ce   :  { %21091 = vmatprep.subr.mxu1 %v23133_v20 }
0x10cf   :  { %21092 = vmatpush3.msra.mxu1 %v23133_v20  ;;  %v9891_v47 = vand.u32 4294901760, %v9890_v13 }
0x10d0   :  { %21093 = vmatprep.subr.mxu1 %v23138_v24 }
0x10d1   :  { %21094 = vmatpush3.msra.mxu1 %v23138_v24  ;;  %21062 = vmatprep.mubr.f32.mxu0 %v9891_v47 }
0x10d2   :  { %21096 = vmatmul.mubr.f32.vlgmr.msra.gmra.mxu1 %v9899_v56  ;;  %21109 = vmatprep.subr.mxu1 %v23129_v12 }
0x10d3   :  { %21063 = vmatmul.mubr.f32.vlgmr.msra.gmra.mxu0 %v9901_v42  ;;  %21110 = vmatpush3.msra.mxu1 %v23129_v12 }
0x10d4   :  { %21077 = vmatpush3.msra.mxu0 %v23141_v29  ;;  %21117 = vmatprep.mubr.f32.mxu1 %v9887_v53 }
0x10d5   :  { %21078 = vmatprep.subr.mxu0 %v23144_v52  ;;  %21084 = vmatprep.mubr.f32.mxu0 %v9888_v54 }
0x10d6   :  { %21111 = vmatprep.subr.mxu1 %v23131_v15  ;;  %21079 = vmatpush3.msra.mxu0 %v23144_v52 }
0x10d7   :  { %21112 = vmatpush3.msra.mxu1 %v23131_v15  ;;  %21080 = vmatprep.subr.mxu0 %v23147_v55 }
0x10d8   :  { %21113 = vmatprep.subr.mxu1 %v23133_v20  ;;  %21081 = vmatpush3.msra.mxu0 %v23147_v55 }
0x10d9   :  { %21114 = vmatpush3.msra.mxu1 %v23133_v20  ;;  %21082 = vmatprep.subr.mxu0 %v23151_v5 }
0x10da   :  { %21115 = vmatprep.subr.mxu1 %v23138_v24  ;;  %21083 = vmatpush3.msra.mxu0 %v23151_v5 }
0x10db   :  { %21116 = vmatpush3.msra.mxu1 %v23138_v24  ;;  %21085 = vmatmul.mubr.f32.vlgmr.msra.gmra.mxu0 %v9898_v50 }
0x10dc   :  { %21098 = vmatprep.subr.mxu0 %v23155_v19  ;;  %21118 = vmatmul.mubr.f32.vlgmr.msra.gmra.mxu1 %v9897_v48 }
0x10dd   :  { %21099 = vmatpush3.msra.mxu0 %v23155_v19  ;;  %21106 = vmatprep.mubr.f32.mxu0 %v9887_v53 }
0x10de   :  { %21100 = vmatprep.subr.mxu0 %v23158_v17  ;;  %21125 = vmatprep.subr.mxu1 %v21985_v51 }
0x10df   :  { %21101 = vmatpush3.msra.mxu0 %v23158_v17  ;;  %21127 = vmatprep.mubr.msk.f32.mxu1 %vm21986_vm1, %v21985_v51 }
0x10e0   :  { %21102 = vmatprep.subr.mxu0 %v23161_v33 }
0x10e1   :  { %21103 = vmatpush3.msra.mxu0 %v23161_v33 }
0x10e2   :  { %21104 = vmatprep.subr.mxu0 %v23165_v25 }
0x10e3   :  { %21105 = vmatpush3.msra.mxu0 %v23165_v25 }
0x10e4   :  { %21107 = vmatmul.mubr.f32.vlgmr.msra.gmra.mxu0 %v9897_v48  ;;  %21120 = vmatprep.subr.mxu0 %v21985_v51 }
0x10e5   :  { %21122 = vmatprep.mubr.msk.f32.mxu0 %vm21986_vm1, %v21985_v51 }
0x118a   :  { %v21075_v0 = vpop.f32.mrf.mxu1 }
0x118c   :  { %v9994_v12 = vpop.f32.mrf.mxu1 }
0x1192   :  { %v21097_v20 = vpop.f32.mrf.mxu1 }
0x1193   :  { %v21064_v59 = vpop.f32.mrf.mxu0 }
0x1194   :  { %v10001_v15 = vadd.f32 %v21075_v0, %v21064_v59  ;;  %v10164_v55 = vpop.f32.mrf.mxu1 }
0x1195   :  { %v9893_v4 = vpop.f32.mrf.mxu0 }
0x1196   :  { %v9995_v24 = vadd.f32 %v9994_v12, %v9893_v4 }
0x119b   :  { %v21086_v6 = vpop.f32.mrf.mxu0 }
0x119c   :  { %v10088_v29 = vadd.f32 %v21086_v6, %v10001_v15  ;;  %v21119_v19 = vpop.f32.mrf.mxu1 }
0x119d   :  { %v10080_v23 = vpop.f32.mrf.mxu0 }
0x119e   :  { %v10081_v52 = vadd.f32 %v10080_v23, %v9995_v24  ;;  %v10173_v5 = vadd.f32 %v21097_v20, %v10088_v29  ;;  %v10336_v41 = vpop.f32.mrf.mxu1 }
0x11a0   :  { %v10165_v25 = vadd.f32 %v10164_v55, %v10081_v52 }
0x11a4   :  { %v21108_v17 = vpop.f32.mrf.mxu0 }
0x11a5   :  { %v10262_v33 = vadd.f32 %v21108_v17, %v10173_v5 }
0x11a6   :  { %v10255_v37 = vpop.f32.mrf.mxu0 }
0x11a7   :  { %v23244_v16 = vadd.f32 %v21119_v19, %v10262_v33  ;;  %v10256_v38 = vadd.f32 %v10255_v37, %v10165_v25 }
0x11a9   :  { %v23246_v39 = vadd.f32 %v10336_v41, %v10256_v38  ;;  %10800 = vrot.lane.b32.xlu0 %v23244_v16, %s21987_s1  ;;  %v10802_v60 = vsel %vm624_vm2, %v23244_v16, 0 }
0x11aa   :  { %v10872_v7 = vand.u32 4294901760, %v10802_v60 }
0x11ab   :  { %10347 = vrot.lane.b32.xlu1 %v23246_v39, %s21987_s1  ;;  %v10349_v43 = vsel %vm624_vm2, %v23246_v39, 0  ;;  %s24227_s1 = smov 16  }
0x11ac   :  { %v10419_v44 = vand.u32 4294901760, %v10349_v43  ;;  %v10873_v34 = vsub.f32 %v10802_v60, %v10872_v7 }
0x11ae   :  { %v10420_v45 = vsub.f32 %v10349_v43, %v10419_v44  ;;  %v10874_v9 = vand.u32 4294901760, %v10873_v34 }
0x11b0   :  { %v10421_v58 = vand.u32 4294901760, %v10420_v45  ;;  %v10875_v26 = vsub.f32 %v10873_v34, %v10874_v9 }
0x11b2   :  { %v10422_v3 = vsub.f32 %v10420_v45, %v10421_v58  ;;  %v10876_v32 = vand.u32 4294901760, %v10875_v26 }
0x11b4   :  { %v10423_v22 = vand.u32 4294901760, %v10422_v3 }
0x121b   :  { %v10801_v62 = vpop.permute.xlu0 %10800 }
0x121c   :  { %v10804_v11 = vsel %vm624_vm2, %v10801_v62, 0 }
0x121d   :  { %v10348_v1 = vpop.permute.xlu1 %10347  ;;  %v10837_v30 = vand.u32 4294901760, %v10804_v11 }
0x121e   :  { %v10351_v2 = vsel %vm624_vm2, %v10348_v1, 0 }
0x121f   :  { %v10384_v8 = vand.u32 4294901760, %v10351_v2  ;;  %v10914_v10 = vsub.f32 %v10804_v11, %v10837_v30 }
0x1221   :  { %v10461_v21 = vsub.f32 %v10351_v2, %v10384_v8  ;;  %21121 = vmatpush3.xpose.msra.mxu0 %v10384_v8  ;;  %v10915_v28 = vand.u32 4294901760, %v10914_v10 }
0x1222   :  { %21130 = vmatprep.subr.mxu0 %v21985_v51 }
0x1223   :  { %v10462_v61 = vand.u32 4294901760, %v10461_v21  ;;  %v10916_v35 = vsub.f32 %v10914_v10, %v10915_v28 }
0x1224   :  { %21123 = vmatmul.mubr.f32.vlgmr.msra.gmra.mxu0 %v10423_v22 }
0x1225   :  { %v10463_v31 = vsub.f32 %v10461_v21, %v10462_v61  ;;  %21131 = vmatpush3.xpose.msra.mxu0 %v10461_v21  ;;  %21132 = vmatprep.mubr.msk.f32.mxu0 %vm21986_vm1, %v21985_v51  ;;  %v10917_v36 = vand.u32 4294901760, %v10916_v35 }
0x1226   :  { %21140 = vmatprep.subr.mxu0 %v21985_v51 }
0x1227   :  { %v10464_v18 = vand.u32 4294901760, %v10463_v31 }
0x1228   :  { %21133 = vmatmul.mubr.f32.vlgmr.msra.gmra.mxu0 %v10420_v45 }
0x1229   :  { %21126 = vmatpush3.xpose.msra.mxu1 %v10464_v18  ;;  %21141 = vmatpush3.xpose.msra.mxu0 %v10462_v61 }
0x122a   :  { %21142 = vmatprep.mubr.msk.f32.mxu0 %vm21986_vm1, %v21985_v51  ;;  %21135 = vmatprep.subr.mxu1 %v21985_v51 }
0x122b   :  { %21150 = vmatprep.subr.mxu0 %v21985_v51 }
0x122c   :  { %21128 = vmatmul.mubr.f32.vlgmr.msra.gmra.mxu1 %v10419_v44  ;;  %21143 = vmatmul.mubr.f32.vlgmr.msra.gmra.mxu0 %v10419_v44 }
0x122d   :  { %21136 = vmatpush3.xpose.msra.mxu1 %v10384_v8  ;;  %21151 = vmatpush3.xpose.msra.mxu0 %v10837_v30 }
0x122e   :  { %21137 = vmatprep.mubr.msk.f32.mxu1 %vm21986_vm1, %v21985_v51  ;;  %21152 = vmatprep.mubr.msk.f32.mxu0 %vm21986_vm1, %v21985_v51 }
0x122f   :  { %21145 = vmatprep.subr.mxu1 %v21985_v51  ;;  %21160 = vmatprep.subr.mxu0 %v21985_v51 }
0x1230   :  { %21138 = vmatmul.mubr.f32.vlgmr.msra.gmra.mxu1 %v10421_v58  ;;  %21153 = vmatmul.mubr.f32.vlgmr.msra.gmra.mxu0 %v10876_v32 }
0x1231   :  { %21146 = vmatpush3.xpose.msra.mxu1 %v10384_v8  ;;  %21161 = vmatpush3.xpose.msra.mxu0 %v10914_v10 }
0x1232   :  { %21147 = vmatprep.mubr.msk.f32.mxu1 %vm21986_vm1, %v21985_v51  ;;  %21162 = vmatprep.mubr.msk.f32.mxu0 %vm21986_vm1, %v21985_v51 }
0x1233   :  { %21155 = vmatprep.subr.mxu1 %v21985_v51  ;;  %21170 = vmatprep.subr.mxu0 %v21985_v51 }
0x1234   :  { %21148 = vmatmul.mubr.f32.vlgmr.msra.gmra.mxu1 %v10419_v44  ;;  %21163 = vmatmul.mubr.f32.vlgmr.msra.gmra.mxu0 %v10873_v34 }
0x1235   :  { %21156 = vmatpush3.xpose.msra.mxu1 %v10917_v36  ;;  %21171 = vmatpush3.xpose.msra.mxu0 %v10915_v28 }
0x1236   :  { %21157 = vmatprep.mubr.msk.f32.mxu1 %vm21986_vm1, %v21985_v51  ;;  %21172 = vmatprep.mubr.msk.f32.mxu0 %vm21986_vm1, %v21985_v51 }
0x1237   :  { %21165 = vmatprep.subr.mxu1 %v21985_v51  ;;  %21180 = vmatprep.subr.mxu0 %v21985_v51 }
0x1238   :  { %21158 = vmatmul.mubr.f32.vlgmr.msra.gmra.mxu1 %v10872_v7  ;;  %21173 = vmatmul.mubr.f32.vlgmr.msra.gmra.mxu0 %v10872_v7 }
0x1239   :  { %21166 = vmatpush3.xpose.msra.mxu1 %v10837_v30  ;;  %21167 = vmatprep.mubr.msk.f32.mxu1 %vm21986_vm1, %v21985_v51 }
0x123a   :  { %21175 = vmatprep.subr.mxu1 %v21985_v51  ;;  %21182 = vmatprep.mubr.msk.f32.mxu0 %vm21986_vm1, %v21985_v51 }
0x123c   :  { %21168 = vmatmul.mubr.f32.vlgmr.msra.gmra.mxu1 %v10874_v9 }
0x123d   :  { %21176 = vmatpush3.xpose.msra.mxu1 %v10837_v30  ;;  %21177 = vmatprep.mubr.msk.f32.mxu1 %vm21986_vm1, %v21985_v51 }
0x123e   :  { %21185 = vmatprep.subr.mxu1 %v21985_v51 }
0x1240   :  { %21178 = vmatmul.mubr.f32.vlgmr.msra.gmra.mxu1 %v10872_v7 }
0x1241   :  { %21187 = vmatprep.mubr.msk.f32.mxu1 %vm21986_vm1, %v21985_v51 }
0x12e4   :  { %v10425_v46 = vpop.f32.mrf.mxu0 }
0x12e6   :  { %v21124_v63 = vpop.f32.mrf.mxu0 }
0x12e8   :  { %v10575_v48 = vpop.f32.mrf.mxu0 }
0x12ea   :  { %v21134_v49 = vpop.f32.mrf.mxu0 }
0x12ec   :  { %v10501_v50 = vpop.f32.mrf.mxu1  ;;  %v10723_v53 = vpop.f32.mrf.mxu0 }
0x12ed   :  { %v10502_v54 = vadd.f32 %v10501_v50, %v10425_v46 }
0x12ee   :  { %v21129_v56 = vpop.f32.mrf.mxu1  ;;  %v21144_v14 = vpop.f32.mrf.mxu0 }
0x12ef   :  { %v10576_v13 = vadd.f32 %v10575_v48, %v10502_v54 }
0x12f0   :  { %v10649_v57 = vpop.f32.mrf.mxu1  ;;  %v10878_v47 = vpop.f32.mrf.mxu0 }
0x12f1   :  { %v10650_v42 = vadd.f32 %v10649_v57, %v10576_v13 }
0x12f2   :  { %v21139_v59 = vpop.f32.mrf.mxu1  ;;  %v21154_v0 = vpop.f32.mrf.mxu0 }
0x12f3   :  { %v10724_v4 = vadd.f32 %v10723_v53, %v10650_v42 }
0x12f4   :  { %v10795_v6 = vpop.f32.mrf.mxu1  ;;  %v11028_v12 = vpop.f32.mrf.mxu0 }
0x12f5   :  { %v10796_v15 = vadd.f32 %v10795_v6, %v10724_v4 }
0x12f6   :  { %v21149_v20 = vpop.f32.mrf.mxu1  ;;  %v21164_v23 = vpop.f32.mrf.mxu0 }
0x12f7   :  { %v11252_v24 = vsel %vm624_vm2, %v10796_v15, -inf }
0x12f8   :  { %v10954_v29 = vpop.f32.mrf.mxu1  ;;  %11253 = vmax.xlane.f32.xlu1 %v11252_v24  ;;  %v11176_v52 = vpop.f32.mrf.mxu0 }
0x12f9   :  { %v10955_v55 = vadd.f32 %v10954_v29, %v10878_v47 }
0x12fa   :  { %v21159_v5 = vpop.f32.mrf.mxu1  ;;  %v21174_v19 = vpop.f32.mrf.mxu0 }
0x12fb   :  { %v11029_v17 = vadd.f32 %v11028_v12, %v10955_v55 }
0x12fc   :  { %v11102_v33 = vpop.f32.mrf.mxu1 }
0x12fd   :  { %v11103_v25 = vadd.f32 %v11102_v33, %v11029_v17 }
0x12fe   :  { %v21169_v37 = vpop.f32.mrf.mxu1 }
0x12ff   :  { %v11177_v38 = vadd.f32 %v11176_v52, %v11103_v25 }
0x1300   :  { %v11248_v41 = vpop.f32.mrf.mxu1 }
0x1301   :  { %v11249_v43 = vadd.f32 %v11248_v41, %v11177_v38 }
0x1302   :  { %v21179_v44 = vpop.f32.mrf.mxu1 }
0x1303   :  { %v11255_v45 = vsel %vm624_vm2, %v11249_v43, -inf }
0x1304   :  { %11256 = vmax.xlane.f32.xlu0 %v11255_v45 }
0x1381   :  { %v11254_v58 = vpop.xlane.xlu1 %11253 }
0x1382   :  { %v11258_v60 = vsub.f32 %v10796_v15, %v11254_v58 }
0x1384   :  { %v11260_v62 = vmul.f32 1.442695, %v11258_v60 }
0x1386   :  { %21912 = vpow2.f32 %v11260_v62 }
0x138d   :  { %v11257_v1 = vpop.xlane.xlu0 %11256 }
0x138e   :  { %v11259_v2 = vsub.f32 %v11249_v43, %v11257_v1 }
0x1390   :  { %v11262_v3 = vmul.f32 1.442695, %v11259_v2 }
0x1392   :  { %21914 = vpow2.f32 %v11262_v3 }
0x1393   :  { %v21913_v7 = vpop.eup %21912 }
0x1394   :  { %v11264_v8 = vsel %vm624_vm2, %v21913_v7, 0.0 }
0x1395   :  { %11265 = vadd.xlane.f32.xlu1 %v11264_v8 }
0x139f   :  { %v21915_v11 = vpop.eup %21914 }
0x13a0   :  { %v11267_v21 = vsel %vm624_vm2, %v21915_v11, 0.0 }
0x13a1   :  { %11268 = vadd.xlane.f32.xlu0 %v11267_v21 }
0x13a6   :  { %11274 = vrot.lane.b32.xlu1 %v23246_v39, %s21988_s19 }
0x13aa   :  { %12180 = vrot.lane.b32.xlu1 %v23246_v39, %s21989_s20 }
0x13ae   :  { %12178 = vrot.lane.b32.xlu1 %v23246_v39, %s21990_s21 }
0x13b2   :  { %12632 = vrot.lane.b32.xlu1 %v23244_v16, %s21990_s21 }
0x13b7   :  { %11726 = vrot.lane.b32.xlu0 %v23244_v16, %s21988_s19 }
0x13bb   :  { %12634 = vrot.lane.b32.xlu0 %v23244_v16, %s21989_s20 }
0x141e   :  { %v11266_v22 = vpop.xlane.xlu1 %11265 }
0x141f   :  { %21916 = vrcp.f32 %v11266_v22 }
0x1422   :  { %v11275_v34 = vpop.permute.xlu1 %11274 }
0x1423   :  { %v11311_v30 = vand.u32 4294901760, %v11275_v34 }
0x1425   :  { %v11388_v61 = vsub.f32 %v11275_v34, %v11311_v30  ;;  %21181 = vmatpush3.msra.mxu0 %v11311_v30 }
0x1426   :  { %21190 = vmatprep.subr.mxu0 %v21985_v51  ;;  %v12181_v35 = vpop.permute.xlu1 %12180 }
0x1427   :  { %v11389_v31 = vand.u32 4294901760, %v11388_v61  ;;  %v12184_v49 = vsel %vm624_vm2, %v12181_v35, 0 }
0x1428   :  { %v23320_v56 = vand.u32 4294901760, %v12184_v49 }
0x1429   :  { %v11390_v9 = vsub.f32 %v11388_v61, %v11389_v31 }
0x142a   :  { %v11269_v10 = vpop.xlane.xlu0 %11268  ;;  %v23329_v59 = vsub.f32 %v12184_v49, %v23320_v56  ;;  %v12179_v4 = vpop.permute.xlu1 %12178 }
0x142b   :  { %v11391_v18 = vand.u32 4294901760, %v11390_v9  ;;  %21918 = vrcp.f32 %v11269_v10  ;;  %v12182_v23 = vsel %vm624_vm2, %v12179_v4, 0 }
0x142c   :  { %v21917_v26 = vpop.eup %21916  ;;  %v12295_v20 = vand.u32 4294901760, %v23329_v59  ;;  %v23341_v52 = vand.u32 4294901760, %v12182_v23 }
0x142d   :  { %v11271_v28 = vmul.f32 %v21917_v26, %v21913_v7  ;;  %21186 = vmatpush3.msra.mxu1 %v11391_v18 }
0x142e   :  { %v11727_v32 = vpop.permute.xlu0 %11726  ;;  %21195 = vmatprep.subr.mxu1 %v21985_v51  ;;  %v12296_v5 = vsub.f32 %v23329_v59, %v12295_v20  ;;  %v12253_v33 = vsub.f32 %v12182_v23, %v23341_v52  ;;  %v12633_v41 = vpop.permute.xlu1 %12632 }
0x142f   :  { %v11763_v36 = vand.u32 4294901760, %v11727_v32  ;;  %v11278_v46 = vsel %vm624_vm2, %v11271_v28, 0  ;;  %v12636_v44 = vsel %vm624_vm2, %v12633_v41, 0 }
0x1430   :  { %v11346_v63 = vand.u32 4294901760, %v11278_v46  ;;  %v12297_v37 = vand.u32 4294901760, %v12296_v5  ;;  %v12254_v43 = vand.u32 4294901760, %v12253_v33  ;;  %v12706_v60 = vand.u32 4294901760, %v12636_v44 }
0x1431   :  { %v23313_v48 = vsub.f32 %v11727_v32, %v11763_v36 }
0x1432   :  { %v11347_v50 = vsub.f32 %v11278_v46, %v11346_v63  ;;  %21188 = vmatmul.mubr.f32.vlgmr.msra.gmra.mxu1 %v11346_v63  ;;  %v12635_v6 = vpop.permute.xlu0 %12634  ;;  %v12255_v58 = vsub.f32 %v12253_v33, %v12254_v43  ;;  %v12707_v2 = vsub.f32 %v12636_v44, %v12706_v60 }
0x1433   :  { %v11841_v53 = vand.u32 4294901760, %v23313_v48  ;;  %21196 = vmatpush3.msra.mxu1 %v11311_v30  ;;  %21197 = vmatprep.mubr.msk.f32.mxu1 %vm21986_vm1, %v21985_v51  ;;  %v12638_v24 = vsel %vm624_vm2, %v12635_v6, 0 }
0x1434   :  { %21205 = vmatprep.subr.mxu1 %v21985_v51  ;;  %v11348_v54 = vand.u32 4294901760, %v11347_v50  ;;  %v23349_v19 = vand.u32 4294901760, %v12638_v24  ;;  %v12256_v1 = vand.u32 4294901760, %v12255_v58  ;;  %v12708_v7 = vand.u32 4294901760, %v12707_v2 }
0x1435   :  { %v11842_v14 = vsub.f32 %v23313_v48, %v11841_v53 }
0x1436   :  { %21198 = vmatmul.mubr.f32.vlgmr.msra.gmra.mxu1 %v11348_v54  ;;  %v11349_v13 = vsub.f32 %v11347_v50, %v11348_v54  ;;  %v23359_v38 = vsub.f32 %v12638_v24, %v23349_v19  ;;  %v12709_v8 = vsub.f32 %v12707_v2, %v12708_v7 }
0x1437   :  { %v11843_v57 = vand.u32 4294901760, %v11842_v14  ;;  %21206 = vmatpush3.msra.mxu1 %v11311_v30  ;;  %21207 = vmatprep.mubr.msk.f32.mxu1 %vm21986_vm1, %v21985_v51 }
0x1438   :  { %v21919_v47 = vpop.eup %21918  ;;  %21215 = vmatprep.subr.mxu1 %v21985_v51  ;;  %v11350_v42 = vand.u32 4294901760, %v11349_v13  ;;  %v12749_v45 = vand.u32 4294901760, %v23359_v38 }
0x1439   :  { %v11273_v0 = vmul.f32 %v21919_v47, %v21915_v11  ;;  %v12710_v11 = vand.u32 4294901760, %v12709_v8 }
0x143a   :  { %21183 = vmatmul.mubr.f32.vlgmr.msra.gmra.mxu0 %v11350_v42  ;;  %21208 = vmatmul.mubr.f32.vlgmr.msra.gmra.mxu1 %v11346_v63  ;;  %v12750_v62 = vsub.f32 %v23359_v38, %v12749_v45 }
0x143b   :  { %21191 = vmatpush3.msra.mxu0 %v11388_v61  ;;  %21216 = vmatpush3.msra.mxu1 %v11843_v57  ;;  %v11730_v12 = vsel %vm624_vm2, %v11273_v0, 0 }
0x143c   :  { %21192 = vmatprep.mubr.msk.f32.mxu0 %vm21986_vm1, %v21985_v51  ;;  %21200 = vmatprep.subr.mxu0 %v21985_v51  ;;  %v11798_v15 = vand.u32 4294901760, %v11730_v12  ;;  %v12751_v3 = vand.u32 4294901760, %v12750_v62 }
0x143d   :  { %21217 = vmatprep.mubr.msk.f32.mxu1 %vm21986_vm1, %v21985_v51  ;;  %21225 = vmatprep.subr.mxu1 %v21985_v51 }
0x143e   :  { %21193 = vmatmul.mubr.f32.vlgmr.msra.gmra.mxu0 %v11347_v50  ;;  %v11799_v29 = vsub.f32 %v11730_v12, %v11798_v15  ;;  %21218 = vmatmul.mubr.f32.vlgmr.msra.gmra.mxu1 %v11798_v15 }
0x143f   :  { %21201 = vmatpush3.msra.mxu0 %v11389_v31  ;;  %21226 = vmatpush3.msra.mxu1 %v11763_v36 }
0x1440   :  { %21202 = vmatprep.mubr.msk.f32.mxu0 %vm21986_vm1, %v21985_v51  ;;  %21210 = vmatprep.subr.mxu0 %v21985_v51  ;;  %v11800_v55 = vand.u32 4294901760, %v11799_v29 }
0x1441   :  { %21227 = vmatprep.mubr.msk.f32.mxu1 %vm21986_vm1, %v21985_v51  ;;  %21235 = vmatprep.subr.mxu1 %v21985_v51 }
0x1442   :  { %21203 = vmatmul.mubr.f32.vlgmr.msra.gmra.mxu0 %v11346_v63  ;;  %21228 = vmatmul.mubr.f32.vlgmr.msra.gmra.mxu1 %v11800_v55  ;;  %v11801_v17 = vsub.f32 %v11799_v29, %v11800_v55 }
0x1443   :  { %21211 = vmatpush3.msra.mxu0 %v11763_v36  ;;  %21236 = vmatpush3.msra.mxu1 %v11763_v36 }
0x1444   :  { %21212 = vmatprep.mubr.msk.f32.mxu0 %vm21986_vm1, %v21985_v51  ;;  %21220 = vmatprep.subr.mxu0 %v21985_v51  ;;  %v11802_v25 = vand.u32 4294901760, %v11801_v17 }
0x1445   :  { %21237 = vmatprep.mubr.msk.f32.mxu1 %vm21986_vm1, %v21985_v51  ;;  %21245 = vmatprep.subr.mxu1 %v21985_v51 }
0x1446   :  { %21213 = vmatmul.mubr.f32.vlgmr.msra.gmra.mxu0 %v11802_v25  ;;  %21238 = vmatmul.mubr.f32.vlgmr.msra.gmra.mxu1 %v11798_v15 }
0x1447   :  { %21221 = vmatpush3.msra.mxu0 %v23313_v48  ;;  %21246 = vmatpush3.xpose.msra.mxu1 %v12297_v37 }
0x1448   :  { %21222 = vmatprep.mubr.msk.f32.mxu0 %vm21986_vm1, %v21985_v51  ;;  %21230 = vmatprep.subr.mxu0 %v21985_v51 }
0x1449   :  { %21247 = vmatprep.mubr.msk.f32.mxu1 %vm21986_vm1, %v21985_v51  ;;  %21255 = vmatprep.subr.mxu1 %v21985_v51 }
0x144a   :  { %21223 = vmatmul.mubr.f32.vlgmr.msra.gmra.mxu0 %v11799_v29  ;;  %21248 = vmatmul.mubr.f32.vlgmr.msra.gmra.mxu1 %v23341_v52 }
0x144b   :  { %21231 = vmatpush3.msra.mxu0 %v11841_v53  ;;  %21256 = vmatpush3.xpose.msra.mxu1 %v23320_v56 }
0x144c   :  { %21232 = vmatprep.mubr.msk.f32.mxu0 %vm21986_vm1, %v21985_v51  ;;  %21240 = vmatprep.subr.mxu0 %v21985_v51 }
0x144d   :  { %21257 = vmatprep.mubr.msk.f32.mxu1 %vm21986_vm1, %v21985_v51  ;;  %21265 = vmatprep.subr.mxu1 %v21985_v51 }
0x144e   :  { %21233 = vmatmul.mubr.f32.vlgmr.msra.gmra.mxu0 %v11798_v15  ;;  %21258 = vmatmul.mubr.f32.vlgmr.msra.gmra.mxu1 %v12254_v43 }
0x144f   :  { %21241 = vmatpush3.xpose.msra.mxu0 %v23320_v56  ;;  %21266 = vmatpush3.xpose.msra.mxu1 %v23320_v56 }
0x1450   :  { %21242 = vmatprep.mubr.msk.f32.mxu0 %vm21986_vm1, %v21985_v51  ;;  %21250 = vmatprep.subr.mxu0 %v21985_v51 }
0x1451   :  { %21267 = vmatprep.mubr.msk.f32.mxu1 %vm21986_vm1, %v21985_v51  ;;  %21275 = vmatprep.subr.mxu1 %v21985_v51 }
0x1452   :  { %21243 = vmatmul.mubr.f32.vlgmr.msra.gmra.mxu0 %v12256_v1  ;;  %21268 = vmatmul.mubr.f32.vlgmr.msra.gmra.mxu1 %v23341_v52 }
0x1453   :  { %21251 = vmatpush3.xpose.msra.mxu0 %v23329_v59  ;;  %21276 = vmatpush3.xpose.msra.mxu1 %v12751_v3 }
0x1454   :  { %21252 = vmatprep.mubr.msk.f32.mxu0 %vm21986_vm1, %v21985_v51  ;;  %21260 = vmatprep.subr.mxu0 %v21985_v51 }
0x1455   :  { %21277 = vmatprep.mubr.msk.f32.mxu1 %vm21986_vm1, %v21985_v51  ;;  %21285 = vmatprep.subr.mxu1 %v21985_v51 }
0x1456   :  { %21253 = vmatmul.mubr.f32.vlgmr.msra.gmra.mxu0 %v12253_v33  ;;  %21278 = vmatmul.mubr.f32.vlgmr.msra.gmra.mxu1 %v12706_v60 }
0x1457   :  { %21261 = vmatpush3.xpose.msra.mxu0 %v12295_v20  ;;  %21286 = vmatpush3.xpose.msra.mxu1 %v23349_v19 }
0x1458   :  { %21262 = vmatprep.mubr.msk.f32.mxu0 %vm21986_vm1, %v21985_v51  ;;  %21270 = vmatprep.subr.mxu0 %v21985_v51 }
0x1459   :  { %21287 = vmatprep.mubr.msk.f32.mxu1 %vm21986_vm1, %v21985_v51  ;;  %21295 = vmatprep.subr.mxu1 %v21985_v51 }
0x145a   :  { %21263 = vmatmul.mubr.f32.vlgmr.msra.gmra.mxu0 %v23341_v52  ;;  %21288 = vmatmul.mubr.f32.vlgmr.msra.gmra.mxu1 %v12708_v7 }
0x145b   :  { %21271 = vmatpush3.xpose.msra.mxu0 %v23349_v19  ;;  %21296 = vmatpush3.xpose.msra.mxu1 %v23349_v19 }
0x145c   :  { %21272 = vmatprep.mubr.msk.f32.mxu0 %vm21986_vm1, %v21985_v51  ;;  %21280 = vmatprep.subr.mxu0 %v21985_v51 }
0x145d   :  { %21297 = vmatprep.mubr.msk.f32.mxu1 %vm21986_vm1, %v21985_v51  ;;  %21305 = vmatprep.subr.mxu1 %v21985_v51 }
0x145e   :  { %21273 = vmatmul.mubr.f32.vlgmr.msra.gmra.mxu0 %v12710_v11  ;;  %21298 = vmatmul.mubr.f32.vlgmr.msra.gmra.mxu1 %v12706_v60 }
0x145f   :  { %21281 = vmatpush3.xpose.msra.mxu0 %v23359_v38  ;;  %21282 = vmatprep.mubr.msk.f32.mxu0 %vm21986_vm1, %v21985_v51 }
0x1460   :  { %21290 = vmatprep.subr.mxu0 %v21985_v51  ;;  %21307 = vmatprep.mubr.msk.f32.mxu1 %vm21986_vm1, %v21985_v51 }
0x1462   :  { %21283 = vmatmul.mubr.f32.vlgmr.msra.gmra.mxu0 %v12707_v2 }
0x1463   :  { %21291 = vmatpush3.xpose.msra.mxu0 %v12749_v45  ;;  %21292 = vmatprep.mubr.msk.f32.mxu0 %vm21986_vm1, %v21985_v51 }
0x1464   :  { %21300 = vmatprep.subr.mxu0 %v21985_v51 }
0x1466   :  { %21293 = vmatmul.mubr.f32.vlgmr.msra.gmra.mxu0 %v12706_v60 }
0x1467   :  { %21302 = vmatprep.mubr.msk.f32.mxu0 %vm21986_vm1, %v21985_v51 }
0x14f2   :  { %v11428_v21 = vpop.f32.mrf.mxu1 }
0x14f4   :  { %v21189_v22 = vpop.f32.mrf.mxu1 }
0x14f6   :  { %v11576_v34 = vpop.f32.mrf.mxu1 }
0x14f8   :  { %v21199_v30 = vpop.f32.mrf.mxu1 }
0x14fa   :  { %v11352_v61 = vpop.f32.mrf.mxu0  ;;  %v11722_v31 = vpop.f32.mrf.mxu1 }
0x14fb   :  { %v11429_v9 = vadd.f32 %v11428_v21, %v11352_v61 }
0x14fc   :  { %v21184_v10 = vpop.f32.mrf.mxu0  ;;  %v21209_v18 = vpop.f32.mrf.mxu1 }
0x14fe   :  { %v11502_v26 = vpop.f32.mrf.mxu0  ;;  %v11880_v28 = vpop.f32.mrf.mxu1 }
0x14ff   :  { %v11503_v32 = vadd.f32 %v11502_v26, %v11429_v9 }
0x1500   :  { %v21194_v35 = vpop.f32.mrf.mxu0  ;;  %v21219_v36 = vpop.f32.mrf.mxu1 }
0x1501   :  { %v11577_v46 = vadd.f32 %v11576_v34, %v11503_v32 }
0x1502   :  { %v11650_v63 = vpop.f32.mrf.mxu0  ;;  %v12028_v48 = vpop.f32.mrf.mxu1 }
0x1503   :  { %v11651_v49 = vadd.f32 %v11650_v63, %v11577_v46 }
0x1504   :  { %v21204_v50 = vpop.f32.mrf.mxu0  ;;  %v21229_v53 = vpop.f32.mrf.mxu1 }
0x1505   :  { %v23429_v54 = vadd.f32 %v11722_v31, %v11651_v49 }
0x1506   :  { %v11804_v56 = vpop.f32.mrf.mxu0  ;;  %v12174_v14 = vpop.f32.mrf.mxu1 }
0x1507   :  { %v11881_v13 = vadd.f32 %v11880_v28, %v11804_v56 }
0x1508   :  { %v21214_v57 = vpop.f32.mrf.mxu0  ;;  %v21239_v47 = vpop.f32.mrf.mxu1 }
0x150a   :  { %v11954_v42 = vpop.f32.mrf.mxu0  ;;  %v12334_v59 = vpop.f32.mrf.mxu1 }
0x150b   :  { %v11955_v0 = vadd.f32 %v11954_v42, %v11881_v13 }
0x150c   :  { %v21224_v4 = vpop.f32.mrf.mxu0  ;;  %v21249_v6 = vpop.f32.mrf.mxu1 }
0x150d   :  { %v12029_v12 = vadd.f32 %v12028_v48, %v11955_v0 }
0x150e   :  { %v12102_v15 = vpop.f32.mrf.mxu0  ;;  %v12482_v20 = vpop.f32.mrf.mxu1 }
0x150f   :  { %v12103_v23 = vadd.f32 %v12102_v15, %v12029_v12 }
0x1510   :  { %v21234_v24 = vpop.f32.mrf.mxu0  ;;  %v21259_v29 = vpop.f32.mrf.mxu1 }
0x1511   :  { %v23431_v52 = vadd.f32 %v12174_v14, %v12103_v23 }
0x1512   :  { %v12258_v55 = vpop.f32.mrf.mxu0  ;;  %v12628_v5 = vpop.f32.mrf.mxu1 }
0x1513   :  { %v12335_v33 = vadd.f32 %v12334_v59, %v12258_v55 }
0x1514   :  { %v21244_v19 = vpop.f32.mrf.mxu0  ;;  %v21269_v17 = vpop.f32.mrf.mxu1 }
0x1516   :  { %v12408_v25 = vpop.f32.mrf.mxu0  ;;  %v12788_v37 = vpop.f32.mrf.mxu1 }
0x1517   :  { %v12409_v38 = vadd.f32 %v12408_v25, %v12335_v33 }
0x1518   :  { %v21254_v41 = vpop.f32.mrf.mxu0  ;;  %v21279_v43 = vpop.f32.mrf.mxu1 }
0x1519   :  { %v12483_v44 = vadd.f32 %v12482_v20, %v12409_v38 }
0x151a   :  { %v12556_v45 = vpop.f32.mrf.mxu0  ;;  %v12936_v58 = vpop.f32.mrf.mxu1 }
0x151b   :  { %v12557_v60 = vadd.f32 %v12556_v45, %v12483_v44 }
0x151c   :  { %v21264_v62 = vpop.f32.mrf.mxu0  ;;  %v21289_v1 = vpop.f32.mrf.mxu1 }
0x151d   :  { %v12629_v2 = vadd.f32 %v12628_v5, %v12557_v60 }
0x151e   :  { %v12712_v3 = vpop.f32.mrf.mxu0  ;;  %v13082_v7 = vpop.f32.mrf.mxu1 }
0x151f   :  { %v13086_v8 = vsel %vm624_vm2, %v12629_v2, -inf  ;;  %v12789_v22 = vadd.f32 %v12788_v37, %v12712_v3 }
0x1520   :  { %v21299_v11 = vpop.f32.mrf.mxu1  ;;  %13087 = vmax.xlane.f32.xlu0 %v13086_v8  ;;  %v21274_v21 = vpop.f32.mrf.mxu0 }
0x1522   :  { %v12862_v34 = vpop.f32.mrf.mxu0 }
0x1523   :  { %v12863_v30 = vadd.f32 %v12862_v34, %v12789_v22 }
0x1524   :  { %v21284_v61 = vpop.f32.mrf.mxu0 }
0x1525   :  { %v12937_v31 = vadd.f32 %v12936_v58, %v12863_v30 }
0x1526   :  { %v13010_v9 = vpop.f32.mrf.mxu0 }
0x1527   :  { %v13011_v10 = vadd.f32 %v13010_v9, %v12937_v31 }
0x1528   :  { %v21294_v18 = vpop.f32.mrf.mxu0 }
0x1529   :  { %v13083_v26 = vadd.f32 %v13082_v7, %v13011_v10 }
0x152b   :  { %v13089_v28 = vsel %vm624_vm2, %v13083_v26, -inf }
0x152c   :  { %13090 = vmax.xlane.f32.xlu1 %v13089_v28 }
0x153d   :  { %13108 = vrot.lane.b32.xlu1 %v23246_v39, %s21991_s22 }
0x1541   :  { %14014 = vrot.lane.b32.xlu1 %v23246_v39, %s21992_s23 }
0x1545   :  { %14012 = vrot.lane.b32.xlu1 %v23246_v39, %s21993_s24 }
0x1549   :  { %14466 = vrot.lane.b32.xlu1 %v23244_v16, %s21993_s24 }
0x15a9   :  { %v13088_v32 = vpop.xlane.xlu0 %13087 }
0x15aa   :  { %v13092_v35 = vsub.f32 %v12629_v2, %v13088_v32 }
0x15ac   :  { %v13094_v36 = vmul.f32 1.442695, %v13092_v35 }
0x15ae   :  { %21920 = vpow2.f32 %v13094_v36 }
0x15b5   :  { %v13091_v46 = vpop.xlane.xlu1 %13090 }
0x15b6   :  { %v13093_v63 = vsub.f32 %v13083_v26, %v13091_v46 }
0x15b8   :  { %v13096_v48 = vmul.f32 1.442695, %v13093_v63 }
0x15b9   :  { %v13109_v49 = vpop.permute.xlu1 %13108 }
0x15ba   :  { %21922 = vpow2.f32 %v13096_v48  ;;  %v13145_v50 = vand.u32 4294901760, %v13109_v49 }
0x15bb   :  { %v21921_v53 = vpop.eup %21920 }
0x15bc   :  { %v23443_v56 = vsub.f32 %v13109_v49, %v13145_v50  ;;  %21301 = vmatpush3.msra.mxu0 %v13145_v50  ;;  %v13098_v14 = vsel %vm624_vm2, %v21921_v53, 0.0 }
0x15bd   :  { %13099 = vadd.xlane.f32.xlu0 %v13098_v14  ;;  %21310 = vmatprep.subr.mxu0 %v21985_v51  ;;  %v14015_v20 = vpop.permute.xlu1 %14014 }
0x15be   :  { %v13223_v13 = vand.u32 4294901760, %v23443_v56  ;;  %v14018_v5 = vsel %vm624_vm2, %v14015_v20, 0 }
0x15bf   :  { %v23463_v25 = vand.u32 4294901760, %v14018_v5 }
0x15c0   :  { %v13224_v57 = vsub.f32 %v23443_v56, %v13223_v13 }
0x15c1   :  { %v23472_v45 = vsub.f32 %v14018_v5, %v23463_v25  ;;  %v14013_v60 = vpop.permute.xlu1 %14012 }
0x15c2   :  { %v13225_v47 = vand.u32 4294901760, %v13224_v57  ;;  %v14016_v7 = vsel %vm624_vm2, %v14013_v60, 0 }
0x15c3   :  { %v14129_v3 = vand.u32 4294901760, %v23472_v45  ;;  %v23485_v21 = vand.u32 4294901760, %v14016_v7 }
0x15c4   :  { %21306 = vmatpush3.msra.mxu1 %v13225_v47 }
0x15c5   :  { %21315 = vmatprep.subr.mxu1 %v21985_v51  ;;  %v14130_v34 = vsub.f32 %v23472_v45, %v14129_v3  ;;  %v14087_v31 = vsub.f32 %v14016_v7, %v23485_v21  ;;  %v14467_v26 = vpop.permute.xlu1 %14466 }
0x15c6   :  { %v14470_v32 = vsel %vm624_vm2, %v14467_v26, 0 }
0x15c7   :  { %v21923_v42 = vpop.eup %21922  ;;  %v14131_v10 = vand.u32 4294901760, %v14130_v34  ;;  %v14088_v28 = vand.u32 4294901760, %v14087_v31  ;;  %v14540_v46 = vand.u32 4294901760, %v14470_v32 }
0x15c8   :  { %v13101_v59 = vsel %vm624_vm2, %v21923_v42, 0.0 }
0x15c9   :  { %13102 = vadd.xlane.f32.xlu0 %v13101_v59  ;;  %v14089_v36 = vsub.f32 %v14087_v31, %v14088_v28  ;;  %v14541_v49 = vsub.f32 %v14470_v32, %v14540_v46 }
0x15cb   :  { %v14090_v48 = vand.u32 4294901760, %v14089_v36 }
0x15df   :  { %13560 = vrot.lane.b32.xlu0 %v23244_v16, %s21991_s22 }
0x15e3   :  { %14468 = vrot.lane.b32.xlu0 %v23244_v16, %s21992_s23 }
0x1646   :  { %v13100_v0 = vpop.xlane.xlu0 %13099 }
0x1647   :  { %21924 = vrcp.f32 %v13100_v0 }
0x1652   :  { %v13103_v4 = vpop.xlane.xlu0 %13102 }
0x1653   :  { %21926 = vrcp.f32 %v13103_v4 }
0x1654   :  { %v21925_v6 = vpop.eup %21924 }
0x1655   :  { %v13105_v12 = vmul.f32 %v21925_v6, %v21921_v53  ;;  %v14542_v53 = vand.u32 4294901760, %v14541_v49 }
0x1656   :  { %v13561_v15 = vpop.permute.xlu0 %13560 }
0x1657   :  { %v13597_v23 = vand.u32 4294901760, %v13561_v15  ;;  %v13112_v24 = vsel %vm624_vm2, %v13105_v12, 0 }
0x1658   :  { %v13180_v29 = vand.u32 4294901760, %v13112_v24 }
0x1659   :  { %v23456_v55 = vsub.f32 %v13561_v15, %v13597_v23 }
0x165a   :  { %v13181_v19 = vsub.f32 %v13112_v24, %v13180_v29  ;;  %21308 = vmatmul.mubr.f32.vlgmr.msra.gmra.mxu1 %v13180_v29  ;;  %v14469_v62 = vpop.permute.xlu0 %14468 }
0x165b   :  { %v13675_v17 = vand.u32 4294901760, %v23456_v55  ;;  %21316 = vmatpush3.msra.mxu1 %v13145_v50  ;;  %21317 = vmatprep.mubr.msk.f32.mxu1 %vm21986_vm1, %v21985_v51  ;;  %v14472_v8 = vsel %vm624_vm2, %v14469_v62, 0 }
0x165c   :  { %21325 = vmatprep.subr.mxu1 %v21985_v51  ;;  %v13182_v33 = vand.u32 4294901760, %v13181_v19  ;;  %v23493_v30 = vand.u32 4294901760, %v14472_v8 }
0x165d   :  { %v13676_v37 = vsub.f32 %v23456_v55, %v13675_v17 }
0x165e   :  { %21318 = vmatmul.mubr.f32.vlgmr.msra.gmra.mxu1 %v13182_v33  ;;  %v13183_v38 = vsub.f32 %v13181_v19, %v13182_v33  ;;  %v23503_v18 = vsub.f32 %v14472_v8, %v23493_v30 }
0x165f   :  { %v13677_v41 = vand.u32 4294901760, %v13676_v37  ;;  %21326 = vmatpush3.msra.mxu1 %v13145_v50  ;;  %21327 = vmatprep.mubr.msk.f32.mxu1 %vm21986_vm1, %v21985_v51 }
0x1660   :  { %v21927_v43 = vpop.eup %21926  ;;  %21335 = vmatprep.subr.mxu1 %v21985_v51  ;;  %v13184_v44 = vand.u32 4294901760, %v13183_v38  ;;  %v14583_v35 = vand.u32 4294901760, %v23503_v18 }
0x1661   :  { %v13107_v58 = vmul.f32 %v21927_v43, %v21923_v42 }
0x1662   :  { %21303 = vmatmul.mubr.f32.vlgmr.msra.gmra.mxu0 %v13184_v44  ;;  %21328 = vmatmul.mubr.f32.vlgmr.msra.gmra.mxu1 %v13180_v29  ;;  %v14584_v63 = vsub.f32 %v23503_v18, %v14583_v35 }
0x1663   :  { %21311 = vmatpush3.msra.mxu0 %v23443_v56  ;;  %21336 = vmatpush3.msra.mxu1 %v13677_v41  ;;  %v13564_v1 = vsel %vm624_vm2, %v13107_v58, 0  ;;  %v14543_v56 = vsub.f32 %v14541_v49, %v14542_v53 }
0x1664   :  { %21312 = vmatprep.mubr.msk.f32.mxu0 %vm21986_vm1, %v21985_v51  ;;  %21320 = vmatprep.subr.mxu0 %v21985_v51  ;;  %v13632_v2 = vand.u32 4294901760, %v13564_v1  ;;  %v14585_v50 = vand.u32 4294901760, %v14584_v63 }
0x1665   :  { %21337 = vmatprep.mubr.msk.f32.mxu1 %vm21986_vm1, %v21985_v51  ;;  %21345 = vmatprep.subr.mxu1 %v21985_v51  ;;  %v14544_v14 = vand.u32 4294901760, %v14543_v56 }
0x1666   :  { %21313 = vmatmul.mubr.f32.vlgmr.msra.gmra.mxu0 %v13181_v19  ;;  %v13633_v11 = vsub.f32 %v13564_v1, %v13632_v2  ;;  %21338 = vmatmul.mubr.f32.vlgmr.msra.gmra.mxu1 %v13632_v2 }
0x1667   :  { %21321 = vmatpush3.msra.mxu0 %v13223_v13  ;;  %21346 = vmatpush3.msra.mxu1 %v13597_v23 }
0x1668   :  { %21322 = vmatprep.mubr.msk.f32.mxu0 %vm21986_vm1, %v21985_v51  ;;  %21330 = vmatprep.subr.mxu0 %v21985_v51  ;;  %v13634_v22 = vand.u32 4294901760, %v13633_v11 }
0x1669   :  { %21347 = vmatprep.mubr.msk.f32.mxu1 %vm21986_vm1, %v21985_v51  ;;  %21355 = vmatprep.subr.mxu1 %v21985_v51 }
0x166a   :  { %21323 = vmatmul.mubr.f32.vlgmr.msra.gmra.mxu0 %v13180_v29  ;;  %21348 = vmatmul.mubr.f32.vlgmr.msra.gmra.mxu1 %v13634_v22  ;;  %v13635_v61 = vsub.f32 %v13633_v11, %v13634_v22 }
0x166b   :  { %21331 = vmatpush3.msra.mxu0 %v13597_v23  ;;  %21356 = vmatpush3.msra.mxu1 %v13597_v23 }
0x166c   :  { %21332 = vmatprep.mubr.msk.f32.mxu0 %vm21986_vm1, %v21985_v51  ;;  %21340 = vmatprep.subr.mxu0 %v21985_v51  ;;  %v13636_v9 = vand.u32 4294901760, %v13635_v61 }
0x166d   :  { %21357 = vmatprep.mubr.msk.f32.mxu1 %vm21986_vm1, %v21985_v51  ;;  %21365 = vmatprep.subr.mxu1 %v21985_v51 }
0x166e   :  { %21333 = vmatmul.mubr.f32.vlgmr.msra.gmra.mxu0 %v13636_v9  ;;  %21358 = vmatmul.mubr.f32.vlgmr.msra.gmra.mxu1 %v13632_v2 }
0x166f   :  { %21341 = vmatpush3.msra.mxu0 %v23456_v55  ;;  %21366 = vmatpush3.xpose.msra.mxu1 %v14131_v10 }
0x1670   :  { %21342 = vmatprep.mubr.msk.f32.mxu0 %vm21986_vm1, %v21985_v51  ;;  %21350 = vmatprep.subr.mxu0 %v21985_v51 }
0x1671   :  { %21367 = vmatprep.mubr.msk.f32.mxu1 %vm21986_vm1, %v21985_v51  ;;  %21375 = vmatprep.subr.mxu1 %v21985_v51 }
0x1672   :  { %21343 = vmatmul.mubr.f32.vlgmr.msra.gmra.mxu0 %v13633_v11  ;;  %21368 = vmatmul.mubr.f32.vlgmr.msra.gmra.mxu1 %v23485_v21 }
0x1673   :  { %21351 = vmatpush3.msra.mxu0 %v13675_v17  ;;  %21376 = vmatpush3.xpose.msra.mxu1 %v23463_v25 }
0x1674   :  { %21352 = vmatprep.mubr.msk.f32.mxu0 %vm21986_vm1, %v21985_v51  ;;  %21360 = vmatprep.subr.mxu0 %v21985_v51 }
0x1675   :  { %21377 = vmatprep.mubr.msk.f32.mxu1 %vm21986_vm1, %v21985_v51  ;;  %21385 = vmatprep.subr.mxu1 %v21985_v51 }
0x1676   :  { %21353 = vmatmul.mubr.f32.vlgmr.msra.gmra.mxu0 %v13632_v2  ;;  %21378 = vmatmul.mubr.f32.vlgmr.msra.gmra.mxu1 %v14088_v28 }
0x1677   :  { %21361 = vmatpush3.xpose.msra.mxu0 %v23463_v25  ;;  %21386 = vmatpush3.xpose.msra.mxu1 %v23463_v25 }
0x1678   :  { %21362 = vmatprep.mubr.msk.f32.mxu0 %vm21986_vm1, %v21985_v51  ;;  %21370 = vmatprep.subr.mxu0 %v21985_v51 }
0x1679   :  { %21387 = vmatprep.mubr.msk.f32.mxu1 %vm21986_vm1, %v21985_v51  ;;  %21395 = vmatprep.subr.mxu1 %v21985_v51 }
0x167a   :  { %21363 = vmatmul.mubr.f32.vlgmr.msra.gmra.mxu0 %v14090_v48  ;;  %21388 = vmatmul.mubr.f32.vlgmr.msra.gmra.mxu1 %v23485_v21 }
0x167b   :  { %21371 = vmatpush3.xpose.msra.mxu0 %v23472_v45  ;;  %21396 = vmatpush3.xpose.msra.mxu1 %v14585_v50 }
0x167c   :  { %21372 = vmatprep.mubr.msk.f32.mxu0 %vm21986_vm1, %v21985_v51  ;;  %21380 = vmatprep.subr.mxu0 %v21985_v51 }
0x167d   :  { %21397 = vmatprep.mubr.msk.f32.mxu1 %vm21986_vm1, %v21985_v51  ;;  %21405 = vmatprep.subr.mxu1 %v21985_v51 }
0x167e   :  { %21373 = vmatmul.mubr.f32.vlgmr.msra.gmra.mxu0 %v14087_v31  ;;  %21398 = vmatmul.mubr.f32.vlgmr.msra.gmra.mxu1 %v14540_v46 }
0x167f   :  { %21381 = vmatpush3.xpose.msra.mxu0 %v14129_v3  ;;  %21406 = vmatpush3.xpose.msra.mxu1 %v23493_v30 }
0x1680   :  { %21382 = vmatprep.mubr.msk.f32.mxu0 %vm21986_vm1, %v21985_v51  ;;  %21390 = vmatprep.subr.mxu0 %v21985_v51 }
0x1681   :  { %21407 = vmatprep.mubr.msk.f32.mxu1 %vm21986_vm1, %v21985_v51  ;;  %21415 = vmatprep.subr.mxu1 %v21985_v51 }
0x1682   :  { %21383 = vmatmul.mubr.f32.vlgmr.msra.gmra.mxu0 %v23485_v21  ;;  %21408 = vmatmul.mubr.f32.vlgmr.msra.gmra.mxu1 %v14542_v53 }
0x1683   :  { %21391 = vmatpush3.xpose.msra.mxu0 %v23493_v30  ;;  %21416 = vmatpush3.xpose.msra.mxu1 %v23493_v30 }
0x1684   :  { %21392 = vmatprep.mubr.msk.f32.mxu0 %vm21986_vm1, %v21985_v51  ;;  %21400 = vmatprep.subr.mxu0 %v21985_v51 }
0x1685   :  { %21417 = vmatprep.mubr.msk.f32.mxu1 %vm21986_vm1, %v21985_v51  ;;  %21425 = vmatprep.subr.mxu1 %v21985_v51 }
0x1686   :  { %21393 = vmatmul.mubr.f32.vlgmr.msra.gmra.mxu0 %v14544_v14  ;;  %21418 = vmatmul.mubr.f32.vlgmr.msra.gmra.mxu1 %v14540_v46 }
0x1687   :  { %21401 = vmatpush3.xpose.msra.mxu0 %v23503_v18  ;;  %21402 = vmatprep.mubr.msk.f32.mxu0 %vm21986_vm1, %v21985_v51 }
0x1688   :  { %21410 = vmatprep.subr.mxu0 %v21985_v51  ;;  %21427 = vmatprep.mubr.msk.f32.mxu1 %vm21986_vm1, %v21985_v51 }
0x168a   :  { %21403 = vmatmul.mubr.f32.vlgmr.msra.gmra.mxu0 %v14541_v49 }
0x168b   :  { %21411 = vmatpush3.xpose.msra.mxu0 %v14583_v35  ;;  %21412 = vmatprep.mubr.msk.f32.mxu0 %vm21986_vm1, %v21985_v51 }
0x168c   :  { %21420 = vmatprep.subr.mxu0 %v21985_v51 }
0x168e   :  { %21413 = vmatmul.mubr.f32.vlgmr.msra.gmra.mxu0 %v14540_v46 }
0x168f   :  { %21422 = vmatprep.mubr.msk.f32.mxu0 %vm21986_vm1, %v21985_v51 }
0x171a   :  { %v13262_v13 = vpop.f32.mrf.mxu1 }
0x171c   :  { %v21309_v57 = vpop.f32.mrf.mxu1 }
0x171e   :  { %v13410_v47 = vpop.f32.mrf.mxu1 }
0x1720   :  { %v21319_v42 = vpop.f32.mrf.mxu1 }
0x1722   :  { %v13186_v59 = vpop.f32.mrf.mxu0  ;;  %v13556_v0 = vpop.f32.mrf.mxu1 }
0x1723   :  { %v13263_v4 = vadd.f32 %v13262_v13, %v13186_v59 }
0x1724   :  { %v21304_v6 = vpop.f32.mrf.mxu0  ;;  %v21329_v12 = vpop.f32.mrf.mxu1 }
0x1726   :  { %v13336_v15 = vpop.f32.mrf.mxu0  ;;  %v13714_v20 = vpop.f32.mrf.mxu1 }
0x1727   :  { %v13337_v23 = vadd.f32 %v13336_v15, %v13263_v4 }
0x1728   :  { %v21314_v24 = vpop.f32.mrf.mxu0  ;;  %v21339_v29 = vpop.f32.mrf.mxu1 }
0x1729   :  { %v13411_v55 = vadd.f32 %v13410_v47, %v13337_v23 }
0x172a   :  { %v13484_v5 = vpop.f32.mrf.mxu0  ;;  %v13862_v19 = vpop.f32.mrf.mxu1 }
0x172b   :  { %v13485_v17 = vadd.f32 %v13484_v5, %v13411_v55 }
0x172c   :  { %v21324_v33 = vpop.f32.mrf.mxu0  ;;  %v21349_v25 = vpop.f32.mrf.mxu1 }
0x172d   :  { %v23573_v37 = vadd.f32 %v13556_v0, %v13485_v17 }
0x172e   :  { %v13638_v38 = vpop.f32.mrf.mxu0  ;;  %v14008_v41 = vpop.f32.mrf.mxu1 }
0x172f   :  { %v13715_v43 = vadd.f32 %v13714_v20, %v13638_v38 }
0x1730   :  { %v21334_v44 = vpop.f32.mrf.mxu0  ;;  %v21359_v45 = vpop.f32.mrf.mxu1 }
0x1732   :  { %v13788_v58 = vpop.f32.mrf.mxu0  ;;  %v14168_v60 = vpop.f32.mrf.mxu1 }
0x1733   :  { %v13789_v62 = vadd.f32 %v13788_v58, %v13715_v43 }
0x1734   :  { %v21344_v1 = vpop.f32.mrf.mxu0  ;;  %v21369_v2 = vpop.f32.mrf.mxu1 }
0x1735   :  { %v13863_v3 = vadd.f32 %v13862_v19, %v13789_v62 }
0x1736   :  { %v13936_v7 = vpop.f32.mrf.mxu0  ;;  %v14316_v8 = vpop.f32.mrf.mxu1 }
0x1737   :  { %v13937_v11 = vadd.f32 %v13936_v7, %v13863_v3 }
0x1738   :  { %v21354_v21 = vpop.f32.mrf.mxu0  ;;  %v21379_v22 = vpop.f32.mrf.mxu1 }
0x1739   :  { %v23575_v34 = vadd.f32 %v14008_v41, %v13937_v11 }
0x173a   :  { %v14092_v30 = vpop.f32.mrf.mxu0  ;;  %v14462_v61 = vpop.f32.mrf.mxu1 }
0x173b   :  { %v14169_v10 = vadd.f32 %v14168_v60, %v14092_v30 }
0x173c   :  { %v21364_v31 = vpop.f32.mrf.mxu0  ;;  %v21389_v9 = vpop.f32.mrf.mxu1 }
0x173e   :  { %v14242_v18 = vpop.f32.mrf.mxu0  ;;  %v14622_v26 = vpop.f32.mrf.mxu1 }
0x173f   :  { %v14243_v28 = vadd.f32 %v14242_v18, %v14169_v10 }
0x1740   :  { %v21374_v32 = vpop.f32.mrf.mxu0  ;;  %v21399_v35 = vpop.f32.mrf.mxu1 }
0x1741   :  { %v14317_v36 = vadd.f32 %v14316_v8, %v14243_v28 }
0x1742   :  { %v14390_v46 = vpop.f32.mrf.mxu0  ;;  %v14770_v63 = vpop.f32.mrf.mxu1 }
0x1743   :  { %v14391_v48 = vadd.f32 %v14390_v46, %v14317_v36 }
0x1744   :  { %v21384_v49 = vpop.f32.mrf.mxu0  ;;  %v21409_v50 = vpop.f32.mrf.mxu1 }
0x1745   :  { %v14463_v53 = vadd.f32 %v14462_v61, %v14391_v48 }
0x1746   :  { %v14546_v56 = vpop.f32.mrf.mxu0  ;;  %v14916_v14 = vpop.f32.mrf.mxu1 }
0x1747   :  { %v14920_v13 = vsel %vm624_vm2, %v14463_v53, -inf  ;;  %v14623_v42 = vadd.f32 %v14622_v26, %v14546_v56 }
0x1748   :  { %v21419_v57 = vpop.f32.mrf.mxu1  ;;  %14921 = vmax.xlane.f32.xlu0 %v14920_v13  ;;  %v21394_v47 = vpop.f32.mrf.mxu0 }
0x174a   :  { %v14696_v59 = vpop.f32.mrf.mxu0 }
0x174b   :  { %v14697_v0 = vadd.f32 %v14696_v59, %v14623_v42 }
0x174c   :  { %v21404_v4 = vpop.f32.mrf.mxu0 }
0x174d   :  { %v14771_v6 = vadd.f32 %v14770_v63, %v14697_v0 }
0x174e   :  { %v14844_v12 = vpop.f32.mrf.mxu0 }
0x174f   :  { %v14845_v15 = vadd.f32 %v14844_v12, %v14771_v6 }
0x1750   :  { %v21414_v20 = vpop.f32.mrf.mxu0 }
0x1751   :  { %v14917_v23 = vadd.f32 %v14916_v14, %v14845_v15 }
0x1753   :  { %v14923_v24 = vsel %vm624_vm2, %v14917_v23, -inf }
0x1754   :  { %14924 = vmax.xlane.f32.xlu1 %v14923_v24 }
0x1765   :  { %14942 = vrot.lane.b32.xlu1 %v23246_v39, %s21994_s26 }
0x1769   :  { %15848 = vrot.lane.b32.xlu1 %v23246_v39, %s21995_s27 }
0x176d   :  { %15846 = vrot.lane.b32.xlu1 %v23246_v39, %s21996_s28 }
0x1771   :  { %16300 = vrot.lane.b32.xlu1 %v23244_v16, %s21996_s28 }
0x17d1   :  { %v14922_v29 = vpop.xlane.xlu0 %14921 }
0x17d2   :  { %v14926_v55 = vsub.f32 %v14463_v53, %v14922_v29 }
0x17d4   :  { %v14928_v5 = vmul.f32 1.442695, %v14926_v55 }
0x17d6   :  { %21928 = vpow2.f32 %v14928_v5 }
0x17dd   :  { %v14925_v19 = vpop.xlane.xlu1 %14924 }
0x17de   :  { %v14927_v17 = vsub.f32 %v14917_v23, %v14925_v19 }
0x17e0   :  { %v14930_v33 = vmul.f32 1.442695, %v14927_v17 }
0x17e1   :  { %v14943_v25 = vpop.permute.xlu1 %14942 }
0x17e2   :  { %21930 = vpow2.f32 %v14930_v33  ;;  %v14979_v38 = vand.u32 4294901760, %v14943_v25 }
0x17e3   :  { %v21929_v41 = vpop.eup %21928 }
0x17e4   :  { %v23587_v43 = vsub.f32 %v14943_v25, %v14979_v38  ;;  %21421 = vmatpush3.msra.mxu0 %v14979_v38  ;;  %v14932_v44 = vsel %vm624_vm2, %v21929_v41, 0.0 }
0x17e5   :  { %14933 = vadd.xlane.f32.xlu0 %v14932_v44  ;;  %21430 = vmatprep.subr.mxu0 %v21985_v51  ;;  %v15849_v21 = vpop.permute.xlu1 %15848 }
0x17e6   :  { %v15057_v45 = vand.u32 4294901760, %v23587_v43  ;;  %v15852_v9 = vsel %vm624_vm2, %v15849_v21, 0 }
0x17e7   :  { %v23607_v28 = vand.u32 4294901760, %v15852_v9 }
0x17e8   :  { %v15058_v58 = vsub.f32 %v23587_v43, %v15057_v45 }
0x17e9   :  { %v23616_v48 = vsub.f32 %v15852_v9, %v23607_v28  ;;  %v15847_v50 = vpop.permute.xlu1 %15846 }
0x17ea   :  { %v15059_v60 = vand.u32 4294901760, %v15058_v58  ;;  %v15850_v57 = vsel %vm624_vm2, %v15847_v50, 0 }
0x17eb   :  { %v15963_v13 = vand.u32 4294901760, %v23616_v48  ;;  %v23629_v59 = vand.u32 4294901760, %v15850_v57 }
0x17ec   :  { %21426 = vmatpush3.msra.mxu1 %v15059_v60 }
0x17ed   :  { %21435 = vmatprep.subr.mxu1 %v21985_v51  ;;  %v15964_v4 = vsub.f32 %v23616_v48, %v15963_v13  ;;  %v15921_v15 = vsub.f32 %v15850_v57, %v23629_v59  ;;  %v16301_v29 = vpop.permute.xlu1 %16300 }
0x17ee   :  { %v16304_v5 = vsel %vm624_vm2, %v16301_v29, 0 }
0x17ef   :  { %v21931_v62 = vpop.eup %21930  ;;  %v15965_v23 = vand.u32 4294901760, %v15964_v4  ;;  %v15922_v55 = vand.u32 4294901760, %v15921_v15  ;;  %v16374_v33 = vand.u32 4294901760, %v16304_v5 }
0x17f0   :  { %v14935_v1 = vsel %vm624_vm2, %v21931_v62, 0.0 }
0x17f1   :  { %14936 = vadd.xlane.f32.xlu0 %v14935_v1  ;;  %v15923_v17 = vsub.f32 %v15921_v15, %v15922_v55 }
0x1807   :  { %15394 = vrot.lane.b32.xlu0 %v23244_v16, %s21994_s26 }
0x180b   :  { %16302 = vrot.lane.b32.xlu0 %v23244_v16, %s21995_s27 }
0x186e   :  { %v14934_v2 = vpop.xlane.xlu0 %14933 }
0x186f   :  { %21932 = vrcp.f32 %v14934_v2 }
0x187a   :  { %v14937_v3 = vpop.xlane.xlu0 %14936 }
0x187b   :  { %21934 = vrcp.f32 %v14937_v3 }
0x187c   :  { %v21933_v7 = vpop.eup %21932 }
0x187d   :  { %v14939_v8 = vmul.f32 %v21933_v7, %v21929_v41  ;;  %v16375_v41 = vsub.f32 %v16304_v5, %v16374_v33 }
0x187e   :  { %v15395_v11 = vpop.permute.xlu0 %15394 }
0x187f   :  { %v15431_v22 = vand.u32 4294901760, %v15395_v11  ;;  %v14946_v30 = vsel %vm624_vm2, %v14939_v8, 0  ;;  %v16376_v44 = vand.u32 4294901760, %v16375_v41 }
0x1880   :  { %v15014_v61 = vand.u32 4294901760, %v14946_v30 }
0x1881   :  { %v23600_v31 = vsub.f32 %v15395_v11, %v15431_v22 }
0x1882   :  { %v15015_v10 = vsub.f32 %v14946_v30, %v15014_v61  ;;  %21428 = vmatmul.mubr.f32.vlgmr.msra.gmra.mxu1 %v15014_v61  ;;  %v16303_v53 = vpop.permute.xlu0 %16302 }
0x1883   :  { %v15509_v18 = vand.u32 4294901760, %v23600_v31  ;;  %21436 = vmatpush3.msra.mxu1 %v14979_v38  ;;  %21437 = vmatprep.mubr.msk.f32.mxu1 %vm21986_vm1, %v21985_v51  ;;  %v16306_v47 = vsel %vm624_vm2, %v16303_v53, 0 }
0x1884   :  { %21445 = vmatprep.subr.mxu1 %v21985_v51  ;;  %v15016_v26 = vand.u32 4294901760, %v15015_v10  ;;  %v23637_v6 = vand.u32 4294901760, %v16306_v47 }
0x1885   :  { %v15510_v32 = vsub.f32 %v23600_v31, %v15509_v18 }
0x1886   :  { %21438 = vmatmul.mubr.f32.vlgmr.msra.gmra.mxu1 %v15016_v26  ;;  %v15017_v35 = vsub.f32 %v15015_v10, %v15016_v26  ;;  %v23647_v24 = vsub.f32 %v16306_v47, %v23637_v6 }
0x1887   :  { %v15511_v36 = vand.u32 4294901760, %v15510_v32  ;;  %21446 = vmatpush3.msra.mxu1 %v14979_v38  ;;  %21447 = vmatprep.mubr.msk.f32.mxu1 %vm21986_vm1, %v21985_v51  ;;  %v15924_v38 = vand.u32 4294901760, %v15923_v17 }
0x1888   :  { %v21935_v46 = vpop.eup %21934  ;;  %21455 = vmatprep.subr.mxu1 %v21985_v51  ;;  %v15018_v63 = vand.u32 4294901760, %v15017_v35  ;;  %v16417_v19 = vand.u32 4294901760, %v23647_v24 }
0x1889   :  { %v14941_v49 = vmul.f32 %v21935_v46, %v21931_v62 }
0x188a   :  { %21423 = vmatmul.mubr.f32.vlgmr.msra.gmra.mxu0 %v15018_v63  ;;  %21448 = vmatmul.mubr.f32.vlgmr.msra.gmra.mxu1 %v15014_v61  ;;  %v16418_v25 = vsub.f32 %v23647_v24, %v16417_v19 }
0x188b   :  { %21431 = vmatpush3.msra.mxu0 %v23587_v43  ;;  %21456 = vmatpush3.msra.mxu1 %v15511_v36  ;;  %v15398_v56 = vsel %vm624_vm2, %v14941_v49, 0 }
0x188c   :  { %21432 = vmatprep.mubr.msk.f32.mxu0 %vm21986_vm1, %v21985_v51  ;;  %21440 = vmatprep.subr.mxu0 %v21985_v51  ;;  %v15466_v14 = vand.u32 4294901760, %v15398_v56  ;;  %v16419_v43 = vand.u32 4294901760, %v16418_v25 }
0x188d   :  { %21457 = vmatprep.mubr.msk.f32.mxu1 %vm21986_vm1, %v21985_v51  ;;  %21465 = vmatprep.subr.mxu1 %v21985_v51 }
0x188e   :  { %21433 = vmatmul.mubr.f32.vlgmr.msra.gmra.mxu0 %v15015_v10  ;;  %v15467_v42 = vsub.f32 %v15398_v56, %v15466_v14  ;;  %21458 = vmatmul.mubr.f32.vlgmr.msra.gmra.mxu1 %v15466_v14 }
0x188f   :  { %21441 = vmatpush3.msra.mxu0 %v15057_v45  ;;  %21466 = vmatpush3.msra.mxu1 %v15431_v22  ;;  %v16377_v45 = vsub.f32 %v16375_v41, %v16376_v44 }
0x1890   :  { %21442 = vmatprep.mubr.msk.f32.mxu0 %vm21986_vm1, %v21985_v51  ;;  %21450 = vmatprep.subr.mxu0 %v21985_v51  ;;  %v15468_v0 = vand.u32 4294901760, %v15467_v42 }
0x1891   :  { %21467 = vmatprep.mubr.msk.f32.mxu1 %vm21986_vm1, %v21985_v51  ;;  %21475 = vmatprep.subr.mxu1 %v21985_v51  ;;  %v16378_v58 = vand.u32 4294901760, %v16377_v45 }
0x1892   :  { %21443 = vmatmul.mubr.f32.vlgmr.msra.gmra.mxu0 %v15014_v61  ;;  %21468 = vmatmul.mubr.f32.vlgmr.msra.gmra.mxu1 %v15468_v0  ;;  %v15469_v12 = vsub.f32 %v15467_v42, %v15468_v0 }
0x1893   :  { %21451 = vmatpush3.msra.mxu0 %v15431_v22  ;;  %21476 = vmatpush3.msra.mxu1 %v15431_v22 }
0x1894   :  { %21452 = vmatprep.mubr.msk.f32.mxu0 %vm21986_vm1, %v21985_v51  ;;  %21460 = vmatprep.subr.mxu0 %v21985_v51  ;;  %v15470_v20 = vand.u32 4294901760, %v15469_v12 }
0x1895   :  { %21477 = vmatprep.mubr.msk.f32.mxu1 %vm21986_vm1, %v21985_v51  ;;  %21485 = vmatprep.subr.mxu1 %v21985_v51 }
0x1896   :  { %21453 = vmatmul.mubr.f32.vlgmr.msra.gmra.mxu0 %v15470_v20  ;;  %21478 = vmatmul.mubr.f32.vlgmr.msra.gmra.mxu1 %v15466_v14 }
0x1897   :  { %21461 = vmatpush3.msra.mxu0 %v23600_v31  ;;  %21486 = vmatpush3.xpose.msra.mxu1 %v15965_v23 }
0x1898   :  { %21462 = vmatprep.mubr.msk.f32.mxu0 %vm21986_vm1, %v21985_v51  ;;  %21470 = vmatprep.subr.mxu0 %v21985_v51 }
0x1899   :  { %21487 = vmatprep.mubr.msk.f32.mxu1 %vm21986_vm1, %v21985_v51  ;;  %21495 = vmatprep.subr.mxu1 %v21985_v51 }
0x189a   :  { %21463 = vmatmul.mubr.f32.vlgmr.msra.gmra.mxu0 %v15467_v42  ;;  %21488 = vmatmul.mubr.f32.vlgmr.msra.gmra.mxu1 %v23629_v59 }
0x189b   :  { %21471 = vmatpush3.msra.mxu0 %v15509_v18  ;;  %21496 = vmatpush3.xpose.msra.mxu1 %v23607_v28 }
0x189c   :  { %21472 = vmatprep.mubr.msk.f32.mxu0 %vm21986_vm1, %v21985_v51  ;;  %21480 = vmatprep.subr.mxu0 %v21985_v51 }
0x189d   :  { %21497 = vmatprep.mubr.msk.f32.mxu1 %vm21986_vm1, %v21985_v51  ;;  %21505 = vmatprep.subr.mxu1 %v21985_v51 }
0x189e   :  { %21473 = vmatmul.mubr.f32.vlgmr.msra.gmra.mxu0 %v15466_v14  ;;  %21498 = vmatmul.mubr.f32.vlgmr.msra.gmra.mxu1 %v15922_v55 }
0x189f   :  { %21481 = vmatpush3.xpose.msra.mxu0 %v23607_v28  ;;  %21506 = vmatpush3.xpose.msra.mxu1 %v23607_v28 }
0x18a0   :  { %21482 = vmatprep.mubr.msk.f32.mxu0 %vm21986_vm1, %v21985_v51  ;;  %21490 = vmatprep.subr.mxu0 %v21985_v51 }
0x18a1   :  { %21507 = vmatprep.mubr.msk.f32.mxu1 %vm21986_vm1, %v21985_v51  ;;  %21515 = vmatprep.subr.mxu1 %v21985_v51 }
0x18a2   :  { %21483 = vmatmul.mubr.f32.vlgmr.msra.gmra.mxu0 %v15924_v38  ;;  %21508 = vmatmul.mubr.f32.vlgmr.msra.gmra.mxu1 %v23629_v59 }
0x18a3   :  { %21491 = vmatpush3.xpose.msra.mxu0 %v23616_v48  ;;  %21516 = vmatpush3.xpose.msra.mxu1 %v16419_v43 }
0x18a4   :  { %21492 = vmatprep.mubr.msk.f32.mxu0 %vm21986_vm1, %v21985_v51  ;;  %21500 = vmatprep.subr.mxu0 %v21985_v51 }
0x18a5   :  { %21517 = vmatprep.mubr.msk.f32.mxu1 %vm21986_vm1, %v21985_v51  ;;  %21525 = vmatprep.subr.mxu1 %v21985_v51 }
0x18a6   :  { %21493 = vmatmul.mubr.f32.vlgmr.msra.gmra.mxu0 %v15921_v15  ;;  %21518 = vmatmul.mubr.f32.vlgmr.msra.gmra.mxu1 %v16374_v33 }
0x18a7   :  { %21501 = vmatpush3.xpose.msra.mxu0 %v15963_v13  ;;  %21526 = vmatpush3.xpose.msra.mxu1 %v23637_v6 }
0x18a8   :  { %21502 = vmatprep.mubr.msk.f32.mxu0 %vm21986_vm1, %v21985_v51  ;;  %21510 = vmatprep.subr.mxu0 %v21985_v51 }
0x18a9   :  { %21527 = vmatprep.mubr.msk.f32.mxu1 %vm21986_vm1, %v21985_v51  ;;  %21535 = vmatprep.subr.mxu1 %v21985_v51 }
0x18aa   :  { %21503 = vmatmul.mubr.f32.vlgmr.msra.gmra.mxu0 %v23629_v59  ;;  %21528 = vmatmul.mubr.f32.vlgmr.msra.gmra.mxu1 %v16376_v44 }
0x18ab   :  { %21511 = vmatpush3.xpose.msra.mxu0 %v23637_v6  ;;  %21536 = vmatpush3.xpose.msra.mxu1 %v23637_v6 }
0x18ac   :  { %21512 = vmatprep.mubr.msk.f32.mxu0 %vm21986_vm1, %v21985_v51  ;;  %21520 = vmatprep.subr.mxu0 %v21985_v51 }
0x18ad   :  { %21537 = vmatprep.mubr.msk.f32.mxu1 %vm21986_vm1, %v21985_v51  ;;  %21545 = vmatprep.subr.mxu1 %v21985_v51 }
0x18ae   :  { %21513 = vmatmul.mubr.f32.vlgmr.msra.gmra.mxu0 %v16378_v58  ;;  %21538 = vmatmul.mubr.f32.vlgmr.msra.gmra.mxu1 %v16374_v33 }
0x18af   :  { %21521 = vmatpush3.xpose.msra.mxu0 %v23647_v24  ;;  %21522 = vmatprep.mubr.msk.f32.mxu0 %vm21986_vm1, %v21985_v51 }
0x18b0   :  { %21530 = vmatprep.subr.mxu0 %v21985_v51  ;;  %21547 = vmatprep.mubr.msk.f32.mxu1 %vm21986_vm1, %v21985_v51 }
0x18b2   :  { %21523 = vmatmul.mubr.f32.vlgmr.msra.gmra.mxu0 %v16375_v41 }
0x18b3   :  { %21531 = vmatpush3.xpose.msra.mxu0 %v16417_v19  ;;  %21532 = vmatprep.mubr.msk.f32.mxu0 %vm21986_vm1, %v21985_v51 }
0x18b4   :  { %21540 = vmatprep.subr.mxu0 %v21985_v51 }
0x18b6   :  { %21533 = vmatmul.mubr.f32.vlgmr.msra.gmra.mxu0 %v16374_v33 }
0x18b7   :  { %21542 = vmatprep.mubr.msk.f32.mxu0 %vm21986_vm1, %v21985_v51 }
0x1942   :  { %v15096_v60 = vpop.f32.mrf.mxu1 }
0x1944   :  { %v21429_v62 = vpop.f32.mrf.mxu1 }
0x1946   :  { %v15244_v1 = vpop.f32.mrf.mxu1 }
0x1948   :  { %v21439_v2 = vpop.f32.mrf.mxu1 }
0x194a   :  { %v15020_v3 = vpop.f32.mrf.mxu0  ;;  %v15390_v7 = vpop.f32.mrf.mxu1 }
0x194b   :  { %v15097_v8 = vadd.f32 %v15096_v60, %v15020_v3 }
0x194c   :  { %v21424_v11 = vpop.f32.mrf.mxu0  ;;  %v21449_v21 = vpop.f32.mrf.mxu1 }
0x194e   :  { %v15170_v22 = vpop.f32.mrf.mxu0  ;;  %v15548_v30 = vpop.f32.mrf.mxu1 }
0x194f   :  { %v15171_v61 = vadd.f32 %v15170_v22, %v15097_v8 }
0x1950   :  { %v21434_v31 = vpop.f32.mrf.mxu0  ;;  %v21459_v9 = vpop.f32.mrf.mxu1 }
0x1951   :  { %v15245_v10 = vadd.f32 %v15244_v1, %v15171_v61 }
0x1952   :  { %v15318_v18 = vpop.f32.mrf.mxu0  ;;  %v15696_v26 = vpop.f32.mrf.mxu1 }
0x1953   :  { %v15319_v28 = vadd.f32 %v15318_v18, %v15245_v10 }
0x1954   :  { %v21444_v32 = vpop.f32.mrf.mxu0  ;;  %v21469_v35 = vpop.f32.mrf.mxu1 }
0x1955   :  { %v23717_v36 = vadd.f32 %v15390_v7, %v15319_v28 }
0x1956   :  { %v15472_v46 = vpop.f32.mrf.mxu0  ;;  %v15842_v63 = vpop.f32.mrf.mxu1 }
0x1957   :  { %v15549_v50 = vadd.f32 %v15548_v30, %v15472_v46 }
0x1958   :  { %v21454_v48 = vpop.f32.mrf.mxu0  ;;  %v21479_v49 = vpop.f32.mrf.mxu1 }
0x195a   :  { %v15622_v53 = vpop.f32.mrf.mxu0  ;;  %v16002_v56 = vpop.f32.mrf.mxu1 }
0x195b   :  { %v15623_v14 = vadd.f32 %v15622_v53, %v15549_v50 }
0x195c   :  { %v21464_v13 = vpop.f32.mrf.mxu0  ;;  %v21489_v57 = vpop.f32.mrf.mxu1 }
0x195d   :  { %v15697_v47 = vadd.f32 %v15696_v26, %v15623_v14 }
0x195e   :  { %v15770_v42 = vpop.f32.mrf.mxu0  ;;  %v16150_v59 = vpop.f32.mrf.mxu1 }
0x195f   :  { %v15771_v0 = vadd.f32 %v15770_v42, %v15697_v47 }
0x1960   :  { %v21474_v4 = vpop.f32.mrf.mxu0  ;;  %v21499_v6 = vpop.f32.mrf.mxu1 }
0x1961   :  { %v15843_v12 = vadd.f32 %v15842_v63, %v15771_v0 }
0x1962   :  { %v15926_v15 = vpop.f32.mrf.mxu0  ;;  %v16296_v20 = vpop.f32.mrf.mxu1 }
0x1963   :  { %v16003_v29 = vadd.f32 %v16002_v56, %v15926_v15 }
0x1964   :  { %v21484_v23 = vpop.f32.mrf.mxu0  ;;  %v21509_v24 = vpop.f32.mrf.mxu1 }
0x1966   :  { %v16076_v55 = vpop.f32.mrf.mxu0  ;;  %v16456_v5 = vpop.f32.mrf.mxu1 }
0x1967   :  { %v16077_v19 = vadd.f32 %v16076_v55, %v16003_v29 }
0x1968   :  { %v21494_v17 = vpop.f32.mrf.mxu0  ;;  %v21519_v33 = vpop.f32.mrf.mxu1 }
0x1969   :  { %v16151_v25 = vadd.f32 %v16150_v59, %v16077_v19 }
0x196a   :  { %v16224_v38 = vpop.f32.mrf.mxu0  ;;  %v16604_v41 = vpop.f32.mrf.mxu1 }
0x196b   :  { %v16225_v43 = vadd.f32 %v16224_v38, %v16151_v25 }
0x196c   :  { %v21504_v44 = vpop.f32.mrf.mxu0  ;;  %v21529_v45 = vpop.f32.mrf.mxu1 }
0x196d   :  { %v16297_v58 = vadd.f32 %v16296_v20, %v16225_v43 }
0x196e   :  { %v16380_v60 = vpop.f32.mrf.mxu0  ;;  %v16750_v62 = vpop.f32.mrf.mxu1 }
0x196f   :  { %v16754_v1 = vsel %vm624_vm2, %v16297_v58, -inf  ;;  %v16457_v7 = vadd.f32 %v16456_v5, %v16380_v60 }
0x1970   :  { %v21539_v2 = vpop.f32.mrf.mxu1  ;;  %16755 = vmax.xlane.f32.xlu0 %v16754_v1  ;;  %v21514_v3 = vpop.f32.mrf.mxu0  ;;  %v19514_v1 = vld [vmem:[%s24213_s3 + $0x30] sm:$0xff] }
0x1972   :  { %v16530_v8 = vpop.f32.mrf.mxu0 }
0x1973   :  { %v16531_v11 = vadd.f32 %v16530_v8, %v16457_v7  ;;  %v19513_v8 = vld [vmem:[%s24213_s3 + $0x28] sm:$0xff] }
0x1974   :  { %v21524_v21 = vpop.f32.mrf.mxu0 }
0x1975   :  { %v16605_v22 = vadd.f32 %v16604_v41, %v16531_v11 }
0x1976   :  { %v16678_v30 = vpop.f32.mrf.mxu0 }
0x1977   :  { %v16679_v61 = vadd.f32 %v16678_v30, %v16605_v22 }
0x1978   :  { %v21534_v31 = vpop.f32.mrf.mxu0 }
0x1979   :  { %v16751_v9 = vadd.f32 %v16750_v62, %v16679_v61  ;;  %v23790_v61 = vand.u32 4294901760, %v19513_v8 }
0x197b   :  { %v16757_v10 = vsel %vm624_vm2, %v16751_v9, -inf }
0x197c   :  { %16758 = vmax.xlane.f32.xlu1 %v16757_v10 }
0x198d   :  { %16776 = vrot.lane.b32.xlu1 %v23246_v39, %s21997_s29 }
0x1991   :  { %17682 = vrot.lane.b32.xlu1 %v23573_v37, %s21984_s25 }
0x1995   :  { %17684 = vrot.lane.b32.xlu1 %v23575_v34, %s21984_s25 }
0x1999   :  { %17692 = vrot.lane.b32.xlu1 %v15843_v12, %s24227_s1 }
0x19f9   :  { %v16756_v18 = vpop.xlane.xlu0 %16755 }
0x19fa   :  { %v16760_v26 = vsub.f32 %v16297_v58, %v16756_v18  ;;  %v19515_v58 = vld [vmem:[%s24213_s3 + $0x38] sm:$0xff] }
0x19fb   :  { %v23769_v62 = vand.u32 4294901760, %v19515_v58 }
0x19fc   :  { %v16762_v28 = vmul.f32 1.442695, %v16760_v26 }
0x19fd   :  { %v23775_v7 = vsub.f32 %v19515_v58, %v23769_v62 }
0x19fe   :  { %21936 = vpow2.f32 %v16762_v28 }
0x19ff   :  { %v23785_v22 = vand.u32 4294901760, %v23775_v7 }
0x1a01   :  { %v17833_v26 = vsub.f32 %v23775_v7, %v23785_v22 }
0x1a05   :  { %v16759_v32 = vpop.xlane.xlu1 %16758 }
0x1a06   :  { %v16761_v35 = vsub.f32 %v16751_v9, %v16759_v32  ;;  %v19512_v9 = vld [vmem:[%s24213_s3 + $0x20] sm:$0xff]  ;;  %v23803_v32 = vsub.f32 %v19513_v8, %v23790_v61  ;;  %s24228_s3 = smov 24  }
0x1a08   :  { %v16764_v46 = vmul.f32 1.442695, %v16761_v35  ;;  %v23805_v35 = vand.u32 4294901760, %v19512_v9 }
0x1a09   :  { %v16777_v63 = vpop.permute.xlu1 %16776 }
0x1a0a   :  { %21938 = vpow2.f32 %v16764_v46  ;;  %v16813_v48 = vand.u32 4294901760, %v16777_v63 }
0x1a0b   :  { %v21937_v49 = vpop.eup %21936 }
0x1a0c   :  { %v16890_v39 = vsub.f32 %v16777_v63, %v16813_v48  ;;  %21541 = vmatpush3.msra.mxu0 %v16813_v48  ;;  %v16766_v37 = vsel %vm624_vm2, %v21937_v49, 0.0 }
0x1a0d   :  { %16767 = vadd.xlane.f32.xlu0 %v16766_v37  ;;  %21550 = vmatprep.subr.mxu0 %v21985_v51  ;;  %v23812_v37 = vand.u32 4294901760, %v23803_v32 }
0x1a0e   :  { %v16891_v34 = vand.u32 4294901760, %v16890_v39 }
0x1a10   :  { %v16892_v50 = vsub.f32 %v16890_v39, %v16891_v34 }
0x1a12   :  { %v16893_v53 = vand.u32 4294901760, %v16892_v50 }
0x1a14   :  { %21546 = vmatpush3.msra.mxu1 %v16893_v53 }
0x1a15   :  { %21555 = vmatprep.subr.mxu1 %v21985_v51 }
0x1a17   :  { %v21939_v56 = vpop.eup %21938 }
0x1a18   :  { %v16769_v14 = vsel %vm624_vm2, %v21939_v56, 0.0 }
0x1a19   :  { %16770 = vadd.xlane.f32.xlu0 %v16769_v14 }
0x1a2f   :  { %17228 = vrot.lane.b32.xlu0 %v23244_v16, %s21997_s29 }
0x1a33   :  { %17690 = vrot.lane.b32.xlu0 %v23717_v36, %s24227_s1 }
0x1a96   :  { %v16768_v13 = vpop.xlane.xlu0 %16767 }
0x1a97   :  { %21940 = vrcp.f32 %v16768_v13  ;;  %v17847_v13 = vsub.f32 %v23803_v32, %v23812_v37 }
0x1aa2   :  { %v16771_v57 = vpop.xlane.xlu0 %16770 }
0x1aa3   :  { %21942 = vrcp.f32 %v16771_v57 }
0x1aa4   :  { %v21941_v47 = vpop.eup %21940 }
0x1aa5   :  { %v16773_v42 = vmul.f32 %v21941_v47, %v21937_v49  ;;  %v17834_v49 = vand.u32 4294901760, %v17833_v26 }
0x1aa6   :  { %v17229_v59 = vpop.permute.xlu0 %17228 }
0x1aa7   :  { %v17265_v0 = vand.u32 4294901760, %v17229_v59  ;;  %v16780_v4 = vsel %vm624_vm2, %v16773_v42, 0 }
0x1aa8   :  { %v16848_v6 = vand.u32 4294901760, %v16780_v4 }
0x1aa9   :  { %v17342_v12 = vsub.f32 %v17229_v59, %v17265_v0 }
0x1aaa   :  { %v16849_v15 = vsub.f32 %v16780_v4, %v16848_v6  ;;  %21548 = vmatmul.mubr.f32.vlgmr.msra.gmra.mxu1 %v16848_v6 }
0x1aab   :  { %v17343_v20 = vand.u32 4294901760, %v17342_v12  ;;  %21556 = vmatpush3.msra.mxu1 %v16813_v48  ;;  %21557 = vmatprep.mubr.msk.f32.mxu1 %vm21986_vm1, %v21985_v51 }
0x1aac   :  { %21565 = vmatprep.subr.mxu1 %v21985_v51  ;;  %v16850_v16 = vand.u32 4294901760, %v16849_v15 }
0x1aad   :  { %v17344_v36 = vsub.f32 %v17342_v12, %v17343_v20 }
0x1aae   :  { %21558 = vmatmul.mubr.f32.vlgmr.msra.gmra.mxu1 %v16850_v16  ;;  %v16851_v23 = vsub.f32 %v16849_v15, %v16850_v16 }
0x1aaf   :  { %v17345_v24 = vand.u32 4294901760, %v17344_v36  ;;  %21566 = vmatpush3.msra.mxu1 %v16813_v48  ;;  %21567 = vmatprep.mubr.msk.f32.mxu1 %vm21986_vm1, %v21985_v51 }
0x1ab0   :  { %v21943_v29 = vpop.eup %21942  ;;  %21575 = vmatprep.subr.mxu1 %v21985_v51  ;;  %v16852_v55 = vand.u32 4294901760, %v16851_v23 }
0x1ab1   :  { %v16775_v5 = vmul.f32 %v21943_v29, %v21939_v56 }
0x1ab2   :  { %21543 = vmatmul.mubr.f32.vlgmr.msra.gmra.mxu0 %v16852_v55  ;;  %21568 = vmatmul.mubr.f32.vlgmr.msra.gmra.mxu1 %v16848_v6 }
0x1ab3   :  { %21551 = vmatpush3.msra.mxu0 %v16890_v39  ;;  %21576 = vmatpush3.msra.mxu1 %v17345_v24  ;;  %v17232_v19 = vsel %vm624_vm2, %v16775_v5, 0 }
0x1ab4   :  { %21552 = vmatprep.mubr.msk.f32.mxu0 %vm21986_vm1, %v21985_v51  ;;  %21560 = vmatprep.subr.mxu0 %v21985_v51  ;;  %v17300_v17 = vand.u32 4294901760, %v17232_v19 }
0x1ab5   :  { %21577 = vmatprep.mubr.msk.f32.mxu1 %vm21986_vm1, %v21985_v51  ;;  %21585 = vmatprep.subr.mxu1 %v21985_v51 }
0x1ab6   :  { %21553 = vmatmul.mubr.f32.vlgmr.msra.gmra.mxu0 %v16849_v15  ;;  %v17301_v33 = vsub.f32 %v17232_v19, %v17300_v17  ;;  %21578 = vmatmul.mubr.f32.vlgmr.msra.gmra.mxu1 %v17300_v17 }
0x1ab7   :  { %21561 = vmatpush3.msra.mxu0 %v16891_v34  ;;  %21586 = vmatpush3.msra.mxu1 %v17265_v0  ;;  %v23815_v34 = vsub.f32 %v19512_v9, %v23805_v35 }
0x1ab8   :  { %21562 = vmatprep.mubr.msk.f32.mxu0 %vm21986_vm1, %v21985_v51  ;;  %21570 = vmatprep.subr.mxu0 %v21985_v51  ;;  %v17302_v25 = vand.u32 4294901760, %v17301_v33 }
0x1ab9   :  { %21587 = vmatprep.mubr.msk.f32.mxu1 %vm21986_vm1, %v21985_v51  ;;  %21595 = vmatprep.subr.mxu1 %v21985_v51  ;;  %v23822_v57 = vand.u32 4294901760, %v23815_v34 }
0x1aba   :  { %21563 = vmatmul.mubr.f32.vlgmr.msra.gmra.mxu0 %v16848_v6  ;;  %21588 = vmatmul.mubr.f32.vlgmr.msra.gmra.mxu1 %v17302_v25  ;;  %v17303_v38 = vsub.f32 %v17301_v33, %v17302_v25 }
0x1abb   :  { %21571 = vmatpush3.msra.mxu0 %v17265_v0  ;;  %21596 = vmatpush3.msra.mxu1 %v17265_v0  ;;  %v17848_v0 = vand.u32 4294901760, %v17847_v13  ;;  %v17854_v4 = vsub.f32 %v23815_v34, %v23822_v57 }
0x1abc   :  { %21572 = vmatprep.mubr.msk.f32.mxu0 %vm21986_vm1, %v21985_v51  ;;  %21580 = vmatprep.subr.mxu0 %v21985_v51  ;;  %v17304_v41 = vand.u32 4294901760, %v17303_v38  ;;  %v17683_v38 = vpop.permute.xlu1 %17682 }
0x1abd   :  { %21597 = vmatprep.mubr.msk.f32.mxu1 %vm21986_vm1, %v21985_v51  ;;  %21611 = vmatprep.subr.mxu1 %v17834_v49 }
0x1abe   :  { %21573 = vmatmul.mubr.f32.vlgmr.msra.gmra.mxu0 %v17304_v41  ;;  %21598 = vmatmul.mubr.f32.vlgmr.msra.gmra.mxu1 %v17300_v17  ;;  %v17691_v41 = vpop.permute.xlu0 %17690 }
0x1abf   :  { %21581 = vmatpush3.msra.mxu0 %v17342_v12  ;;  %21582 = vmatprep.mubr.msk.f32.mxu0 %vm21986_vm1, %v21985_v51 }
0x1ac0   :  { %21590 = vmatprep.subr.mxu0 %v21985_v51  ;;  %21612 = vmatpush3.msra.mxu1 %v17834_v49 }
0x1ac2   :  { %21583 = vmatmul.mubr.f32.vlgmr.msra.gmra.mxu0 %v17301_v33 }
0x1ac3   :  { %21591 = vmatpush3.msra.mxu0 %v17343_v20  ;;  %21592 = vmatprep.mubr.msk.f32.mxu0 %vm21986_vm1, %v21985_v51  ;;  %v23777_v51 = vand.u32 4294901760, %v19514_v1  ;;  %v17855_v20 = vand.u32 4294901760, %v17854_v4 }
0x1ac4   :  { %21600 = vmatprep.subr.mxu0 %v23769_v62 }
0x1ac5   :  { %v23788_v30 = vsub.f32 %v19514_v1, %v23777_v51 }
0x1ac6   :  { %21593 = vmatmul.mubr.f32.vlgmr.msra.gmra.mxu0 %v17300_v17 }
0x1ac7   :  { %21601 = vmatpush3.msra.mxu0 %v23769_v62  ;;  %v23800_v28 = vand.u32 4294901760, %v23788_v30 }
0x1ac8   :  { %21602 = vmatprep.subr.mxu0 %v23777_v51 }
0x1ac9   :  { %21603 = vmatpush3.msra.mxu0 %v23777_v51  ;;  %v17840_v39 = vsub.f32 %v23788_v30, %v23800_v28 }
0x1aca   :  { %21604 = vmatprep.subr.mxu0 %v23790_v61 }
0x1acb   :  { %21605 = vmatpush3.msra.mxu0 %v23790_v61  ;;  %v17841_v14 = vand.u32 4294901760, %v17840_v39 }
0x1acc   :  { %21606 = vmatprep.subr.mxu0 %v23805_v35 }
0x1acd   :  { %21607 = vmatpush3.msra.mxu0 %v23805_v35  ;;  %21613 = vmatprep.subr.mxu1 %v17841_v14 }
0x1ace   :  { %21622 = vmatprep.subr.mxu0 %v23775_v7  ;;  %21614 = vmatpush3.msra.mxu1 %v17841_v14 }
0x1acf   :  { %21615 = vmatprep.subr.mxu1 %v17848_v0 }
0x1ad0   :  { %21616 = vmatpush3.msra.mxu1 %v17848_v0 }
0x1ad1   :  { %21617 = vmatprep.subr.mxu1 %v17855_v20 }
0x1ad2   :  { %21618 = vmatpush3.msra.mxu1 %v17855_v20 }
0x1ad3   :  { %21633 = vmatprep.subr.mxu1 %v23769_v62 }
0x1b6a   :  { %v16930_v43 = vpop.f32.mrf.mxu1 }
0x1b6c   :  { %v21549_v44 = vpop.f32.mrf.mxu1 }
0x1b6e   :  { %v17078_v45 = vpop.f32.mrf.mxu1 }
0x1b70   :  { %v21559_v60 = vpop.f32.mrf.mxu1 }
0x1b71   :  { %v17685_v60 = vpop.permute.xlu1 %17684 }
0x1b72   :  { %v16854_v2 = vpop.f32.mrf.mxu0  ;;  %v17224_v3 = vpop.f32.mrf.mxu1 }
0x1b73   :  { %v16931_v31 = vadd.f32 %v16930_v43, %v16854_v2  ;;  %v17704_v43 = vsel %vm624_vm2, %v23429_v54, %v17683_v38 }
0x1b74   :  { %v21544_v11 = vpop.f32.mrf.mxu0  ;;  %v21569_v21 = vpop.f32.mrf.mxu1  ;;  %v17706_v44 = vsel %vm7982_vm4, %v17704_v43, %v17691_v41 }
0x1b75   :  { %v17693_v11 = vpop.permute.xlu1 %17692 }
0x1b76   :  { %v17004_v10 = vpop.f32.mrf.mxu0  ;;  %v17382_v18 = vpop.f32.mrf.mxu1 }
0x1b77   :  { %v17005_v46 = vadd.f32 %v17004_v10, %v16931_v31  ;;  %v17705_v31 = vsel %vm624_vm2, %v23431_v52, %v17685_v60 }
0x1b78   :  { %v21554_v63 = vpop.f32.mrf.mxu0  ;;  %v21579_v48 = vpop.f32.mrf.mxu1  ;;  %v17707_v54 = vsel %vm7982_vm4, %v17705_v31, %v17693_v11  ;;  %v19516_v11 = vld [vmem:[%s24214_s4 + $0x20] sm:$0xff] }
0x1b79   :  { %v17079_v50 = vadd.f32 %v17078_v45, %v17005_v46 }
0x1b7a   :  { %v17152_v53 = vpop.f32.mrf.mxu0  ;;  %v17530_v56 = vpop.f32.mrf.mxu1 }
0x1b7b   :  { %v17153_v47 = vadd.f32 %v17152_v53, %v17079_v50 }
0x1b7c   :  { %v21564_v42 = vpop.f32.mrf.mxu0  ;;  %v21589_v59 = vpop.f32.mrf.mxu1 }
0x1b7d   :  { %v17225_v6 = vadd.f32 %v17224_v3, %v17153_v47 }
0x1b7e   :  { %v17306_v12 = vpop.f32.mrf.mxu0  ;;  %v17676_v15 = vpop.f32.mrf.mxu1 }
0x1b7f   :  { %17698 = vrot.lane.b32.xlu0 %v17225_v6, %s24228_s3  ;;  %v17383_v23 = vadd.f32 %v17382_v18, %v17306_v12 }
0x1b80   :  { %v21574_v16 = vpop.f32.mrf.mxu0  ;;  %v21599_v36 = vpop.f32.mrf.mxu1 }
0x1b82   :  { %v17456_v24 = vpop.f32.mrf.mxu0 }
0x1b83   :  { %v17457_v29 = vadd.f32 %v17456_v24, %v17383_v23 }
0x1b84   :  { %v21584_v55 = vpop.f32.mrf.mxu0 }
0x1b85   :  { %v17531_v5 = vadd.f32 %v17530_v56, %v17457_v29 }
0x1b86   :  { %v17604_v19 = vpop.f32.mrf.mxu0 }
0x1b87   :  { %v17605_v17 = vadd.f32 %v17604_v19, %v17531_v5  ;;  %v19519_v19 = vld [vmem:[%s24214_s4 + $0x38] sm:$0xff] }
0x1b88   :  { %v21594_v33 = vpop.f32.mrf.mxu0 }
0x1b89   :  { %v17677_v25 = vadd.f32 %v17676_v15, %v17605_v17  ;;  %v19518_v17 = vld [vmem:[%s24214_s4 + $0x30] sm:$0xff]  ;;  %v19517_v33 = vld [vmem:[%s24214_s4 + $0x28] sm:$0xff] }
0x1b8a   :  { %v23895_v38 = vand.u32 4294901760, %v19518_v17  ;;  %v23897_v41 = vand.u32 4294901760, %v19517_v33 }
0x1b8b   :  { %17700 = vrot.lane.b32.xlu1 %v17677_v25, %s24228_s3  ;;  %v23893_v25 = vand.u32 4294901760, %v19519_v19 }
0x1b8d   :  { %v23900_v43 = vsub.f32 %v19519_v19, %v23893_v25  ;;  %v19527_v19 = vld [vmem:[%s24216_s6 + $0x70] sm:$0xff] }
0x1bf1   :  { %v17699_v45 = vpop.permute.xlu0 %17698 }
0x1bf2   :  { %v17708_v58 = vsel %vm7985_vm3, %v17706_v44, %v17699_v45  ;;  %v23903_v44 = vsub.f32 %v19518_v17, %v23895_v38  ;;  %v23906_v45 = vsub.f32 %v19517_v33, %v23897_v41  ;;  %v24003_v33 = vand.u32 4294901760, %v19527_v19 }
0x1bf3   :  { %v17711_v1 = vsel %vm86_vm0, %v17708_v58, 0  ;;  %v23911_v58 = vand.u32 4294901760, %v23900_v43 }
0x1bf4   :  { %v17785_v2 = vand.u32 4294901760, %v17711_v1  ;;  %v23914_v60 = vand.u32 4294901760, %v23903_v44 }
0x1bf6   :  { %v17786_v3 = vsub.f32 %v17711_v1, %v17785_v2  ;;  %21619 = vmatprep.mubr.f32.mxu1 %v17785_v2  ;;  %v23917_v1 = vand.u32 4294901760, %v23906_v45 }
0x1bf8   :  { %v17787_v8 = vand.u32 4294901760, %v17786_v3 }
0x1bfa   :  { %v17788_v21 = vsub.f32 %v17786_v3, %v17787_v8 }
0x1bfc   :  { %v17789_v9 = vand.u32 4294901760, %v17788_v21  ;;  %v23931_v21 = vand.u32 4294901760, %v19516_v11 }
0x1bfd   :  { %v17701_v10 = vpop.permute.xlu1 %17700 }
0x1bfe   :  { %v17709_v18 = vsel %vm7985_vm3, %v17707_v54, %v17701_v10  ;;  %21608 = vmatprep.mubr.f32.mxu0 %v17789_v9  ;;  %v23935_v54 = vsub.f32 %v19516_v11, %v23931_v21 }
0x1bff   :  { %v17714_v26 = vsel %vm86_vm0, %v17709_v18, 0 }
0x1c00   :  { %v17795_v46 = vand.u32 4294901760, %v17714_v26  ;;  %v23940_v18 = vand.u32 4294901760, %v23935_v54 }
0x1c02   :  { %v17796_v63 = vsub.f32 %v17714_v26, %v17795_v46  ;;  %21620 = vmatmul.mubr.f32.vlgmr.msra.gmra.mxu1 %v17795_v46  ;;  %v18452_v26 = vsub.f32 %v23935_v54, %v23940_v18 }
0x1c03   :  { %21634 = vmatpush3.msra.mxu1 %v23769_v62  ;;  %21641 = vmatprep.mubr.f32.mxu1 %v17787_v8  ;;  %v18445_v8 = vsub.f32 %v23906_v45, %v23917_v1 }
0x1c04   :  { %v17797_v48 = vand.u32 4294901760, %v17796_v63  ;;  %21635 = vmatprep.subr.mxu1 %v23777_v51 }
0x1c05   :  { %21636 = vmatpush3.msra.mxu1 %v23777_v51  ;;  %v18446_v10 = vand.u32 4294901760, %v18445_v8 }
0x1c06   :  { %v17798_v52 = vsub.f32 %v17796_v63, %v17797_v48  ;;  %21637 = vmatprep.subr.mxu1 %v23790_v61 }
0x1c07   :  { %21638 = vmatpush3.msra.mxu1 %v23790_v61 }
0x1c08   :  { %v17799_v49 = vand.u32 4294901760, %v17798_v52  ;;  %21639 = vmatprep.subr.mxu1 %v23805_v35 }
0x1c09   :  { %21640 = vmatpush3.msra.mxu1 %v23805_v35 }
0x1c0a   :  { %21642 = vmatmul.mubr.f32.vlgmr.msra.gmra.mxu1 %v17797_v48  ;;  %21655 = vmatprep.subr.mxu1 %v23769_v62 }
0x1c0b   :  { %21609 = vmatmul.mubr.f32.vlgmr.msra.gmra.mxu0 %v17799_v49  ;;  %21656 = vmatpush3.msra.mxu1 %v23769_v62 }
0x1c0c   :  { %21623 = vmatpush3.msra.mxu0 %v23775_v7  ;;  %21663 = vmatprep.mubr.f32.mxu1 %v17785_v2 }
0x1c0d   :  { %21624 = vmatprep.subr.mxu0 %v23788_v30  ;;  %21630 = vmatprep.mubr.f32.mxu0 %v17786_v3  ;;  %v18438_v3 = vsub.f32 %v23903_v44, %v23914_v60 }
0x1c0e   :  { %21657 = vmatprep.subr.mxu1 %v23777_v51  ;;  %21625 = vmatpush3.msra.mxu0 %v23788_v30 }
0x1c0f   :  { %21658 = vmatpush3.msra.mxu1 %v23777_v51  ;;  %21626 = vmatprep.subr.mxu0 %v23803_v32  ;;  %v18439_v9 = vand.u32 4294901760, %v18438_v3 }
0x1c10   :  { %21659 = vmatprep.subr.mxu1 %v23790_v61  ;;  %21627 = vmatpush3.msra.mxu0 %v23803_v32 }
0x1c11   :  { %21660 = vmatpush3.msra.mxu1 %v23790_v61  ;;  %21628 = vmatprep.subr.mxu0 %v23815_v34 }
0x1c12   :  { %21661 = vmatprep.subr.mxu1 %v23805_v35  ;;  %21629 = vmatpush3.msra.mxu0 %v23815_v34 }
0x1c13   :  { %21662 = vmatpush3.msra.mxu1 %v23805_v35  ;;  %21631 = vmatmul.mubr.f32.vlgmr.msra.gmra.mxu0 %v17796_v63 }
0x1c14   :  { %21644 = vmatprep.subr.mxu0 %v23785_v22  ;;  %21664 = vmatmul.mubr.f32.vlgmr.msra.gmra.mxu1 %v17795_v46 }
0x1c15   :  { %21645 = vmatpush3.msra.mxu0 %v23785_v22  ;;  %21652 = vmatprep.mubr.f32.mxu0 %v17785_v2  ;;  %v18431_v2 = vsub.f32 %v23900_v43, %v23911_v58 }
0x1c16   :  { %21646 = vmatprep.subr.mxu0 %v23800_v28 }
0x1c17   :  { %21647 = vmatpush3.msra.mxu0 %v23800_v28  ;;  %v18432_v31 = vand.u32 4294901760, %v18431_v2  ;;  %v19524_v2 = vld [vmem:[%s24216_s6 + $0x58] sm:$0xff] }
0x1c18   :  { %21648 = vmatprep.subr.mxu0 %v23812_v37 }
0x1c19   :  { %21649 = vmatpush3.msra.mxu0 %v23812_v37  ;;  %21677 = vmatprep.subr.mxu1 %v18432_v31 }
0x1c1a   :  { %21650 = vmatprep.subr.mxu0 %v23822_v57  ;;  %21678 = vmatpush3.msra.mxu1 %v18432_v31  ;;  %v24047_v31 = vand.u32 4294901760, %v19524_v2 }
0x1c1b   :  { %21651 = vmatpush3.msra.mxu0 %v23822_v57  ;;  %21679 = vmatprep.subr.mxu1 %v18439_v9 }
0x1c1c   :  { %21653 = vmatmul.mubr.f32.vlgmr.msra.gmra.mxu0 %v17795_v46  ;;  %21666 = vmatprep.subr.mxu0 %v23893_v25  ;;  %v18453_v46 = vand.u32 4294901760, %v18452_v26 }
0x1c1d   :  { %21667 = vmatpush3.msra.mxu0 %v23893_v25  ;;  %21680 = vmatpush3.msra.mxu1 %v18439_v9  ;;  %v19523_v9 = vld [vmem:[%s24216_s6 + $0x50] sm:$0xff] }
0x1c1e   :  { %21668 = vmatprep.subr.mxu0 %v23895_v38  ;;  %21681 = vmatprep.subr.mxu1 %v18446_v10  ;;  %v24058_v26 = vand.u32 4294901760, %v19523_v9 }
0x1c1f   :  { %21669 = vmatpush3.msra.mxu0 %v23895_v38  ;;  %21682 = vmatpush3.msra.mxu1 %v18446_v10 }
0x1c20   :  { %21670 = vmatprep.subr.mxu0 %v23897_v41  ;;  %21683 = vmatprep.subr.mxu1 %v18453_v46 }
0x1c21   :  { %21671 = vmatpush3.msra.mxu0 %v23897_v41  ;;  %21684 = vmatpush3.msra.mxu1 %v18453_v46  ;;  %v24061_v46 = vsub.f32 %v19524_v2, %v24047_v31 }
0x1c22   :  { %21672 = vmatprep.subr.mxu0 %v23931_v21  ;;  %21699 = vmatprep.subr.mxu1 %v23893_v25 }
0x1c23   :  { %21673 = vmatpush3.msra.mxu0 %v23931_v21 }
0x1c24   :  { %21688 = vmatprep.subr.mxu0 %v23900_v43 }
0x1cc2   :  { %v21621_v7 = vpop.f32.mrf.mxu1 }
0x1cc4   :  { %v17892_v61 = vpop.f32.mrf.mxu1 }
0x1cca   :  { %v21643_v32 = vpop.f32.mrf.mxu1 }
0x1ccb   :  { %v21610_v62 = vpop.f32.mrf.mxu0 }
0x1ccc   :  { %v17899_v22 = vadd.f32 %v21621_v7, %v21610_v62  ;;  %v18062_v50 = vpop.f32.mrf.mxu1 }
0x1ccd   :  { %v17791_v51 = vpop.f32.mrf.mxu0 }
0x1cce   :  { %v17893_v39 = vadd.f32 %v17892_v61, %v17791_v51 }
0x1cd3   :  { %v21632_v30 = vpop.f32.mrf.mxu0 }
0x1cd4   :  { %v17986_v34 = vadd.f32 %v21632_v30, %v17899_v22  ;;  %v21665_v56 = vpop.f32.mrf.mxu1 }
0x1cd5   :  { %v17978_v35 = vpop.f32.mrf.mxu0 }
0x1cd6   :  { %v17979_v28 = vadd.f32 %v17978_v35, %v17893_v39  ;;  %v18071_v53 = vadd.f32 %v21643_v32, %v17986_v34  ;;  %v18234_v59 = vpop.f32.mrf.mxu1 }
0x1cd8   :  { %v18063_v13 = vadd.f32 %v18062_v50, %v17979_v28 }
0x1cdc   :  { %v21654_v37 = vpop.f32.mrf.mxu0 }
0x1cdd   :  { %v18160_v14 = vadd.f32 %v21654_v37, %v18071_v53  ;;  %v19534_v53 = vld [vmem:[%s24218_s8 + $0x1] ss:$0 sm:$0xff] }
0x1cde   :  { %v18153_v47 = vpop.f32.mrf.mxu0 }
0x1cdf   :  { %v18241_v57 = vadd.f32 %v21665_v56, %v18160_v14  ;;  %v18154_v42 = vadd.f32 %v18153_v47, %v18063_v13  ;;  %v19535_v14 = vld [vmem:[%s24219_s9 + $0x1] ss:$0 sm:$0xff] }
0x1ce1   :  { %v18235_v0 = vadd.f32 %v18234_v59, %v18154_v42  ;;  %v18245_v4 = vadd.f32 %v18241_v57, %v23190_v40 }
0x1ce3   :  { %v18249_v6 = vsel %vm86_vm0, %v18245_v4, 0.0  ;;  %v18244_v12 = vadd.f32 %v18235_v0, %v23199_v27 }
0x1ce4   :  { %18250 = vadd.xlane.f32.xlu1 %v18249_v6 }
0x1ce5   :  { %v18246_v15 = vsel %vm86_vm0, %v18244_v12, 0.0 }
0x1ce6   :  { %18247 = vadd.xlane.f32.xlu0 %v18246_v15 }
0x1d6d   :  { %v18251_v20 = vpop.xlane.xlu1 %18250 }
0x1d6e   :  { %v18253_v16 = vmul.f32 0.03125, %v18251_v20 }
0x1d6f   :  { %v18248_v36 = vpop.xlane.xlu0 %18247 }
0x1d70   :  { %v18252_v23 = vmul.f32 0.03125, %v18248_v36  ;;  %v23874_v24 = vsub.f32 %v18245_v4, %v18253_v16 }
0x1d72   :  { %v23876_v29 = vsub.f32 %v18244_v12, %v18252_v23  ;;  %v18257_v27 = vmul.f32 %v23874_v24, %v23874_v24  ;;  %v18273_v47 = vmul.f32 %v19534_v53, %v23874_v24 }
0x1d74   :  { %v18256_v55 = vmul.f32 %v23876_v29, %v23876_v29  ;;  %v18261_v5 = vsel %vm86_vm0, %v18257_v27, 0.0  ;;  %v18272_v56 = vmul.f32 %v19534_v53, %v23876_v29  ;;  %v19528_v27 = vld [vmem:[%s24216_s6 + $0x78] sm:$0xff] }
0x1d76   :  { %v18258_v40 = vsel %vm86_vm0, %v18256_v55, 0.0 }
0x1d77   :  { %18259 = vadd.xlane.f32.xlu0 %v18258_v40 }
0x1d7b   :  { %18262 = vadd.xlane.f32.xlu0 %v18261_v5  ;;  %v23995_v5 = vand.u32 4294901760, %v19528_v27 }
0x1d7d   :  { %v24001_v17 = vsub.f32 %v19528_v27, %v23995_v5 }
0x1e00   :  { %v18260_v63 = vpop.xlane.xlu0 %18259 }
0x1e01   :  { %v18264_v48 = vmul.f32 0.032258064, %v18260_v63  ;;  %v19522_v63 = vld [vmem:[%s24216_s6 + $0x48] sm:$0xff] }
0x1e03   :  { %21944 = vrsqrt.f32 %v18264_v48  ;;  %vm18276_vm14 = vcmp.eq.f32.partialorder %v18264_v48, inf  ;;  %v18279_v51 = vand.u32 2147483648, %v18264_v48  ;;  %vm18278_vm15 = vcmp.eq.f32.partialorder %v18264_v48, 0.0 }
0x1e04   :  { %v18263_v52 = vpop.xlane.xlu0 %18262 }
0x1e05   :  { %v18265_v49 = vmul.f32 0.032258064, %v18263_v52 }
0x1e07   :  { %21946 = vrsqrt.f32 %v18265_v49  ;;  %vm18283_vm1 = vcmp.eq.f32.partialorder %v18265_v49, inf  ;;  %v18286_v39 = vand.u32 2147483648, %v18265_v49  ;;  %vm18285_vm2 = vcmp.eq.f32.partialorder %v18265_v49, 0.0 }
0x1e10   :  { %v21945_v62 = vpop.eup %21944 }
0x1e11   :  { %v18275_v7 = vmul.f32 %v21945_v62, %v18264_v48  ;;  %v24072_v62 = vand.u32 4294901760, %v19522_v63 }
0x1e13   :  { %v18277_v30 = vsel %vm18276_vm14, %v18264_v48, %v18275_v7  ;;  %v24076_v7 = vand.u32 4294901760, %v24061_v46 }
0x1e14   :  { %v21947_v61 = vpop.eup %21946  ;;  %v18280_v22 = vsel %vm18278_vm15, %v18279_v51, %v18277_v30  ;;  %v19521_v51 = vld [vmem:[%s24216_s6 + $0x40] sm:$0xff] }
0x1e15   :  { %v18288_v32 = vadd.f32 1e-06, %v18280_v22  ;;  %v18282_v35 = vmul.f32 %v21947_v61, %v18265_v49  ;;  %v24086_v22 = vsub.f32 %v19522_v63, %v24072_v62 }
0x1e17   :  { %21948 = vrcp.f32 %v18288_v32  ;;  %v18284_v34 = vsel %vm18283_vm1, %v18265_v49, %v18282_v35  ;;  %v24070_v49 = vsub.f32 %v19523_v9, %v24058_v26  ;;  %v24088_v32 = vand.u32 4294901760, %v19521_v51 }
0x1e18   :  { %v18287_v28 = vsel %vm18285_vm2, %v18286_v39, %v18284_v34  ;;  %v18997_v35 = vsub.f32 %v24061_v46, %v24076_v7  ;;  %v24097_v34 = vand.u32 4294901760, %v24086_v22 }
0x1e19   :  { %v18289_v50 = vadd.f32 1e-06, %v18287_v28  ;;  %v24083_v61 = vand.u32 4294901760, %v24070_v49  ;;  %v24100_v28 = vsub.f32 %v19521_v51, %v24088_v32 }
0x1e1b   :  { %21950 = vrcp.f32 %v18289_v50  ;;  %v19004_v39 = vsub.f32 %v24070_v49, %v24083_v61  ;;  %v18998_v50 = vand.u32 4294901760, %v18997_v35 }
0x1e1d   :  { %v19005_v53 = vand.u32 4294901760, %v19004_v39 }
0x1e24   :  { %v21949_v37 = vpop.eup %21948 }
0x1e25   :  { %v18291_v13 = vmul.f32 %v21949_v37, %v18272_v56  ;;  %v19011_v56 = vsub.f32 %v24086_v22, %v24097_v34  ;;  %v24107_v37 = vand.u32 4294901760, %v24100_v28 }
0x1e27   :  { %v23954_v57 = vadd.f32 %v19535_v14, %v18291_v13  ;;  %v19018_v13 = vsub.f32 %v24100_v28, %v24107_v37 }
0x1e28   :  { %v21951_v42 = vpop.eup %21950 }
0x1e29   :  { %v18293_v59 = vmul.f32 %v21951_v42, %v18273_v47  ;;  %v18309_v0 = vsel %vm86_vm0, %v23954_v57, 0  ;;  %v19019_v47 = vand.u32 4294901760, %v19018_v13 }
0x1e2a   :  { %v18383_v4 = vand.u32 4294901760, %v18309_v0 }
0x1e2b   :  { %v23958_v6 = vadd.f32 %v19535_v14, %v18293_v59  ;;  %v19012_v14 = vand.u32 4294901760, %v19011_v56  ;;  %v19536_v59 = vld [vmem:[%s24215_s5 + $0x1] ss:$0 sm:$0xff] }
0x1e2c   :  { %21685 = vmatprep.mubr.f32.mxu1 %v18383_v4  ;;  %v18384_v12 = vsub.f32 %v18309_v0, %v18383_v4 }
0x1e2d   :  { %v18312_v15 = vsel %vm86_vm0, %v23958_v6, 0 }
0x1e2e   :  { %v18393_v20 = vand.u32 4294901760, %v18312_v15  ;;  %v18385_v16 = vand.u32 4294901760, %v18384_v12 }
0x1e30   :  { %v18394_v36 = vsub.f32 %v18312_v15, %v18393_v20  ;;  %21686 = vmatmul.mubr.f32.vlgmr.msra.gmra.mxu1 %v18393_v20  ;;  %v18386_v23 = vsub.f32 %v18384_v12, %v18385_v16 }
0x1e31   :  { %21700 = vmatpush3.msra.mxu1 %v23893_v25  ;;  %21707 = vmatprep.mubr.f32.mxu1 %v18385_v16 }
0x1e32   :  { %21701 = vmatprep.subr.mxu1 %v23895_v38  ;;  %v18387_v24 = vand.u32 4294901760, %v18386_v23  ;;  %v18395_v29 = vand.u32 4294901760, %v18394_v36 }
0x1e33   :  { %21702 = vmatpush3.msra.mxu1 %v23895_v38 }
0x1e34   :  { %21703 = vmatprep.subr.mxu1 %v23897_v41  ;;  %21674 = vmatprep.mubr.f32.mxu0 %v18387_v24  ;;  %v18396_v55 = vsub.f32 %v18394_v36, %v18395_v29 }
0x1e35   :  { %21704 = vmatpush3.msra.mxu1 %v23897_v41 }
0x1e36   :  { %21705 = vmatprep.subr.mxu1 %v23931_v21  ;;  %v18397_v40 = vand.u32 4294901760, %v18396_v55 }
0x1e37   :  { %21706 = vmatpush3.msra.mxu1 %v23931_v21 }
0x1e38   :  { %21708 = vmatmul.mubr.f32.vlgmr.msra.gmra.mxu1 %v18395_v29  ;;  %21721 = vmatprep.subr.mxu1 %v23893_v25 }
0x1e39   :  { %21675 = vmatmul.mubr.f32.vlgmr.msra.gmra.mxu0 %v18397_v40  ;;  %21722 = vmatpush3.msra.mxu1 %v23893_v25  ;;  %v19526_v25 = vld [vmem:[%s24216_s6 + $0x68] sm:$0xff] }
0x1e3a   :  { %21689 = vmatpush3.msra.mxu0 %v23900_v43  ;;  %21729 = vmatprep.mubr.f32.mxu1 %v18383_v4  ;;  %v24016_v43 = vand.u32 4294901760, %v19526_v25 }
0x1e3b   :  { %21690 = vmatprep.subr.mxu0 %v23903_v44  ;;  %21696 = vmatprep.mubr.f32.mxu0 %v18384_v12 }
0x1e3c   :  { %21723 = vmatprep.subr.mxu1 %v23895_v38  ;;  %21691 = vmatpush3.msra.mxu0 %v23903_v44  ;;  %v19525_v44 = vld [vmem:[%s24216_s6 + $0x60] sm:$0xff] }
0x1e3d   :  { %21724 = vmatpush3.msra.mxu1 %v23895_v38  ;;  %21692 = vmatprep.subr.mxu0 %v23906_v45  ;;  %v24011_v38 = vand.u32 4294901760, %v24001_v17 }
0x1e3e   :  { %21725 = vmatprep.subr.mxu1 %v23897_v41  ;;  %21693 = vmatpush3.msra.mxu0 %v23906_v45 }
0x1e3f   :  { %21726 = vmatpush3.msra.mxu1 %v23897_v41  ;;  %21694 = vmatprep.subr.mxu0 %v23935_v54  ;;  %v24014_v41 = vsub.f32 %v19527_v19, %v24003_v33  ;;  %v18969_v45 = vsub.f32 %v24001_v17, %v24011_v38 }
0x1e40   :  { %21727 = vmatprep.subr.mxu1 %v23931_v21  ;;  %21695 = vmatpush3.msra.mxu0 %v23935_v54 }
0x1e41   :  { %21728 = vmatpush3.msra.mxu1 %v23931_v21  ;;  %21697 = vmatmul.mubr.f32.vlgmr.msra.gmra.mxu0 %v18394_v36  ;;  %v18970_v3 = vand.u32 4294901760, %v18969_v45 }
0x1e42   :  { %21710 = vmatprep.subr.mxu0 %v23911_v58  ;;  %21730 = vmatmul.mubr.f32.vlgmr.msra.gmra.mxu1 %v18393_v20 }
0x1e43   :  { %21711 = vmatpush3.msra.mxu0 %v23911_v58  ;;  %21718 = vmatprep.mubr.f32.mxu0 %v18383_v4  ;;  %v24026_v58 = vand.u32 4294901760, %v24014_v41 }
0x1e44   :  { %21712 = vmatprep.subr.mxu0 %v23914_v60  ;;  %21751 = vmatprep.subr.mxu1 %v18970_v3 }
0x1e45   :  { %21713 = vmatpush3.msra.mxu0 %v23914_v60  ;;  %v24029_v60 = vsub.f32 %v19526_v25, %v24016_v43  ;;  %v18976_v8 = vsub.f32 %v24014_v41, %v24026_v58  ;;  %21752 = vmatpush3.msra.mxu1 %v18970_v3 }
0x1e46   :  { %21714 = vmatprep.subr.mxu0 %v23917_v1 }
0x1e47   :  { %21715 = vmatpush3.msra.mxu0 %v23917_v1  ;;  %v24031_v1 = vand.u32 4294901760, %v19525_v44  ;;  %v24041_v11 = vand.u32 4294901760, %v24029_v60  ;;  %v18977_v54 = vand.u32 4294901760, %v18976_v8 }
0x1e48   :  { %21716 = vmatprep.subr.mxu0 %v23940_v18 }
0x1e49   :  { %21717 = vmatpush3.msra.mxu0 %v23940_v18  ;;  %v24044_v21 = vsub.f32 %v19525_v44, %v24031_v1  ;;  %v18983_v10 = vsub.f32 %v24029_v60, %v24041_v11  ;;  %21753 = vmatprep.subr.mxu1 %v18977_v54 }
0x1e4a   :  { %21719 = vmatmul.mubr.f32.vlgmr.msra.gmra.mxu0 %v18393_v20  ;;  %21732 = vmatprep.subr.mxu0 %v23995_v5 }
0x1e4b   :  { %21733 = vmatpush3.msra.mxu0 %v23995_v5  ;;  %v24056_v18 = vand.u32 4294901760, %v24044_v21  ;;  %v18984_v48 = vand.u32 4294901760, %v18983_v10  ;;  %21754 = vmatpush3.msra.mxu1 %v18977_v54 }
0x1e4c   :  { %21734 = vmatprep.subr.mxu0 %v24003_v33 }
0x1e4d   :  { %21735 = vmatpush3.msra.mxu0 %v24003_v33  ;;  %v18990_v52 = vsub.f32 %v24044_v21, %v24056_v18  ;;  %21755 = vmatprep.subr.mxu1 %v18984_v48 }
0x1e4e   :  { %21736 = vmatprep.subr.mxu0 %v24016_v43  ;;  %21756 = vmatpush3.msra.mxu1 %v18984_v48 }
0x1e4f   :  { %21737 = vmatpush3.msra.mxu0 %v24016_v43  ;;  %v18991_v30 = vand.u32 4294901760, %v18990_v52 }
0x1e50   :  { %21738 = vmatprep.subr.mxu0 %v24031_v1 }
0x1e51   :  { %21739 = vmatpush3.msra.mxu0 %v24031_v1  ;;  %21757 = vmatprep.subr.mxu1 %v18991_v30 }
0x1e52   :  { %21740 = vmatprep.subr.mxu0 %v24047_v31  ;;  %21758 = vmatpush3.msra.mxu1 %v18991_v30 }
0x1e53   :  { %21741 = vmatpush3.msra.mxu0 %v24047_v31  ;;  %21759 = vmatprep.subr.mxu1 %v18998_v50 }
0x1e54   :  { %21742 = vmatprep.subr.mxu0 %v24058_v26  ;;  %21760 = vmatpush3.msra.mxu1 %v18998_v50 }
0x1e55   :  { %21743 = vmatpush3.msra.mxu0 %v24058_v26  ;;  %21761 = vmatprep.subr.mxu1 %v19005_v53 }
0x1e56   :  { %21744 = vmatprep.subr.mxu0 %v24072_v62  ;;  %21762 = vmatpush3.msra.mxu1 %v19005_v53 }
0x1e57   :  { %21745 = vmatpush3.msra.mxu0 %v24072_v62  ;;  %21763 = vmatprep.subr.mxu1 %v19012_v14 }
0x1e58   :  { %21746 = vmatprep.subr.mxu0 %v24088_v32  ;;  %21764 = vmatpush3.msra.mxu1 %v19012_v14 }
0x1e59   :  { %21747 = vmatpush3.msra.mxu0 %v24088_v32  ;;  %21765 = vmatprep.subr.mxu1 %v19019_v47 }
0x1e5a   :  { %21770 = vmatprep.subr.mxu0 %v24001_v17  ;;  %21766 = vmatpush3.msra.mxu1 %v19019_v47 }
0x1e5b   :  { %21789 = vmatprep.subr.mxu1 %v23995_v5 }
0x1ef0   :  { %v21687_v0 = vpop.f32.mrf.mxu1 }
0x1ef2   :  { %v18490_v16 = vpop.f32.mrf.mxu1 }
0x1ef8   :  { %v21709_v23 = vpop.f32.mrf.mxu1 }
0x1ef9   :  { %v21676_v42 = vpop.f32.mrf.mxu0 }
0x1efa   :  { %v18400_v12 = vadd.f32 %v21676_v42, %v19536_v59  ;;  %v18660_v27 = vpop.f32.mrf.mxu1 }
0x1efb   :  { %v18389_v4 = vpop.f32.mrf.mxu0 }
0x1efc   :  { %v18390_v15 = vadd.f32 %v19536_v59, %v18389_v4  ;;  %v18497_v36 = vadd.f32 %v21687_v0, %v18400_v12 }
0x1efe   :  { %v18491_v55 = vadd.f32 %v18490_v16, %v18390_v15 }
0x1f01   :  { %v21698_v20 = vpop.f32.mrf.mxu0 }
0x1f02   :  { %v18584_v29 = vadd.f32 %v21698_v20, %v18497_v36  ;;  %v21731_v25 = vpop.f32.mrf.mxu1 }
0x1f03   :  { %v18576_v24 = vpop.f32.mrf.mxu0 }
0x1f04   :  { %v18577_v40 = vadd.f32 %v18576_v24, %v18491_v55  ;;  %v18669_v19 = vadd.f32 %v21709_v23, %v18584_v29  ;;  %v18832_v54 = vpop.f32.mrf.mxu1 }
0x1f06   :  { %v18661_v2 = vadd.f32 %v18660_v27, %v18577_v40 }
0x1f0a   :  { %v21720_v44 = vpop.f32.mrf.mxu0 }
0x1f0b   :  { %v18758_v45 = vadd.f32 %v21720_v44, %v18669_v19 }
0x1f0c   :  { %v18751_v3 = vpop.f32.mrf.mxu0 }
0x1f0d   :  { %v18839_v8 = vadd.f32 %v21731_v25, %v18758_v45  ;;  %v18752_v9 = vadd.f32 %v18751_v3, %v18661_v2 }
0x1f0f   :  { %v18843_v10 = vmax.f32 %v18839_v8, 0.0  ;;  %v18833_v63 = vadd.f32 %v18832_v54, %v18752_v9 }
0x1f11   :  { %v18854_v48 = vsel %vm9129_vm9, %v18843_v10, 0  ;;  %v18842_v52 = vmax.f32 %v18833_v63, 0.0 }
0x1f12   :  { %v24118_v51 = vand.u32 4294901760, %v18854_v48 }
0x1f13   :  { %v18851_v30 = vsel %vm9129_vm9, %v18842_v52, 0 }
0x1f14   :  { %v18940_v35 = vsub.f32 %v18854_v48, %v24118_v51  ;;  %v18929_v39 = vand.u32 4294901760, %v18851_v30 }
0x1f16   :  { %v18941_v50 = vand.u32 4294901760, %v18940_v35  ;;  %v18930_v53 = vsub.f32 %v18851_v30, %v18929_v39  ;;  %21767 = vmatprep.mubr.f32.mxu1 %v18929_v39 }
0x1f17   :  { %21768 = vmatmul.mubr.f32.vlgmr.msra.gmra.mxu1 %v24118_v51 }
0x1f18   :  { %21790 = vmatpush3.msra.mxu1 %v23995_v5  ;;  %v18931_v56 = vand.u32 4294901760, %v18930_v53  ;;  %v18942_v14 = vsub.f32 %v18940_v35, %v18941_v50 }
0x1f19   :  { %21791 = vmatprep.subr.mxu1 %v24003_v33 }
0x1f1a   :  { %21792 = vmatpush3.msra.mxu1 %v24003_v33  ;;  %21805 = vmatprep.mubr.f32.mxu1 %v18931_v56  ;;  %v18932_v13 = vsub.f32 %v18930_v53, %v18931_v56  ;;  %v18943_v42 = vand.u32 4294901760, %v18942_v14 }
0x1f1b   :  { %21793 = vmatprep.subr.mxu1 %v24016_v43 }
0x1f1c   :  { %21794 = vmatpush3.msra.mxu1 %v24016_v43  ;;  %v18933_v47 = vand.u32 4294901760, %v18932_v13 }
0x1f1d   :  { %21795 = vmatprep.subr.mxu1 %v24031_v1 }
0x1f1e   :  { %21796 = vmatpush3.msra.mxu1 %v24031_v1  ;;  %21748 = vmatprep.mubr.f32.mxu0 %v18933_v47 }
0x1f1f   :  { %21797 = vmatprep.subr.mxu1 %v24047_v31  ;;  %21749 = vmatmul.mubr.f32.vlgmr.msra.gmra.mxu0 %v18943_v42 }
0x1f20   :  { %21771 = vmatpush3.msra.mxu0 %v24001_v17  ;;  %21798 = vmatpush3.msra.mxu1 %v24047_v31  ;;  %v19537_v17 = vld [vmem:[%s24217_s7 + $0x1] ss:$0 sm:$0xff] }
0x1f21   :  { %21772 = vmatprep.subr.mxu0 %v24014_v41  ;;  %21786 = vmatprep.mubr.f32.mxu0 %v18930_v53  ;;  %v19539_v53 = vld [vmem:[%s24221_s11 + $0x1] ss:$0 sm:$0xff] }
0x1f22   :  { %21799 = vmatprep.subr.mxu1 %v24058_v26  ;;  %21773 = vmatpush3.msra.mxu0 %v24014_v41 }
0x1f23   :  { %21800 = vmatpush3.msra.mxu1 %v24058_v26  ;;  %21774 = vmatprep.subr.mxu0 %v24029_v60 }
0x1f24   :  { %21801 = vmatprep.subr.mxu1 %v24072_v62  ;;  %21775 = vmatpush3.msra.mxu0 %v24029_v60 }
0x1f25   :  { %21802 = vmatpush3.msra.mxu1 %v24072_v62  ;;  %21776 = vmatprep.subr.mxu0 %v24044_v21 }
0x1f26   :  { %21803 = vmatprep.subr.mxu1 %v24088_v32  ;;  %21777 = vmatpush3.msra.mxu0 %v24044_v21 }
0x1f27   :  { %21804 = vmatpush3.msra.mxu1 %v24088_v32  ;;  %21778 = vmatprep.subr.mxu0 %v24061_v46 }
0x1f28   :  { %21806 = vmatmul.mubr.f32.vlgmr.msra.gmra.mxu1 %v18941_v50  ;;  %21827 = vmatprep.subr.mxu1 %v23995_v5 }
0x1f29   :  { %21779 = vmatpush3.msra.mxu0 %v24061_v46  ;;  %21828 = vmatpush3.msra.mxu1 %v23995_v5 }
0x1f2a   :  { %21843 = vmatprep.mubr.f32.mxu1 %v18929_v39  ;;  %21780 = vmatprep.subr.mxu0 %v24070_v49 }
0x1f2b   :  { %21829 = vmatprep.subr.mxu1 %v24003_v33  ;;  %21781 = vmatpush3.msra.mxu0 %v24070_v49 }
0x1f2c   :  { %21830 = vmatpush3.msra.mxu1 %v24003_v33  ;;  %21782 = vmatprep.subr.mxu0 %v24086_v22 }
0x1f2d   :  { %21831 = vmatprep.subr.mxu1 %v24016_v43  ;;  %21783 = vmatpush3.msra.mxu0 %v24086_v22 }
0x1f2e   :  { %21832 = vmatpush3.msra.mxu1 %v24016_v43  ;;  %21784 = vmatprep.subr.mxu0 %v24100_v28 }
0x1f2f   :  { %21833 = vmatprep.subr.mxu1 %v24031_v1  ;;  %21785 = vmatpush3.msra.mxu0 %v24100_v28 }
0x1f30   :  { %21834 = vmatpush3.msra.mxu1 %v24031_v1  ;;  %21787 = vmatmul.mubr.f32.vlgmr.msra.gmra.mxu0 %v18940_v35  ;;  %v19538_v35 = vld [vmem:[%s24220_s10 + $0x1] ss:$0 sm:$0xff] }
0x1f31   :  { %21808 = vmatprep.subr.mxu0 %v24011_v38  ;;  %21835 = vmatprep.subr.mxu1 %v24047_v31 }
0x1f32   :  { %21809 = vmatpush3.msra.mxu0 %v24011_v38  ;;  %21824 = vmatprep.mubr.f32.mxu0 %v18929_v39 }
0x1f33   :  { %21836 = vmatpush3.msra.mxu1 %v24047_v31  ;;  %21810 = vmatprep.subr.mxu0 %v24026_v58 }
0x1f34   :  { %21837 = vmatprep.subr.mxu1 %v24058_v26  ;;  %21811 = vmatpush3.msra.mxu0 %v24026_v58 }
0x1f35   :  { %21838 = vmatpush3.msra.mxu1 %v24058_v26  ;;  %21812 = vmatprep.subr.mxu0 %v24041_v11 }
0x1f36   :  { %21839 = vmatprep.subr.mxu1 %v24072_v62  ;;  %21813 = vmatpush3.msra.mxu0 %v24041_v11 }
0x1f37   :  { %21840 = vmatpush3.msra.mxu1 %v24072_v62  ;;  %21814 = vmatprep.subr.mxu0 %v24056_v18 }
0x1f38   :  { %21841 = vmatprep.subr.mxu1 %v24088_v32  ;;  %21815 = vmatpush3.msra.mxu0 %v24056_v18 }
0x1f39   :  { %21842 = vmatpush3.msra.mxu1 %v24088_v32  ;;  %21816 = vmatprep.subr.mxu0 %v24076_v7 }
0x1f3a   :  { %21844 = vmatmul.mubr.f32.vlgmr.msra.gmra.mxu1 %v24118_v51  ;;  %21817 = vmatpush3.msra.mxu0 %v24076_v7 }
0x1f3b   :  { %21818 = vmatprep.subr.mxu0 %v24083_v61 }
0x1f3c   :  { %21819 = vmatpush3.msra.mxu0 %v24083_v61 }
0x1f3d   :  { %21820 = vmatprep.subr.mxu0 %v24097_v34 }
0x1f3e   :  { %21821 = vmatpush3.msra.mxu0 %v24097_v34 }
0x1f3f   :  { %21822 = vmatprep.subr.mxu0 %v24107_v37 }
0x1f40   :  { %21823 = vmatpush3.msra.mxu0 %v24107_v37 }
0x1f41   :  { %21825 = vmatmul.mubr.f32.vlgmr.msra.gmra.mxu0 %v24118_v51 }
0x1fd7   :  { %v21769_v33 = vpop.f32.mrf.mxu1 }
0x1fd9   :  { %v19056_v60 = vpop.f32.mrf.mxu1 }
0x1fdf   :  { %v21750_v5 = vpop.f32.mrf.mxu0 }
0x1fe0   :  { %v18946_v41 = vadd.f32 %v21750_v5, %v19537_v17 }
0x1fe1   :  { %v18935_v38 = vpop.f32.mrf.mxu0 }
0x1fe2   :  { %v18936_v58 = vadd.f32 %v19537_v17, %v18935_v38  ;;  %v19063_v1 = vadd.f32 %v21769_v33, %v18946_v41 }
0x1fe4   :  { %v19057_v18 = vadd.f32 %v19056_v60, %v18936_v58 }
0x1fe8   :  { %v21807_v11 = vpop.f32.mrf.mxu1 }
0x1fea   :  { %v19238_v46 = vpop.f32.mrf.mxu1 }
0x1ff0   :  { %v21788_v43 = vpop.f32.mrf.mxu0 }
0x1ff1   :  { %v19158_v31 = vadd.f32 %v21788_v43, %v19063_v1 }
0x1ff2   :  { %v19150_v21 = vpop.f32.mrf.mxu0 }
0x1ff3   :  { %v19151_v26 = vadd.f32 %v19150_v21, %v19057_v18  ;;  %v19247_v49 = vadd.f32 %v21807_v11, %v19158_v31 }
0x1ff5   :  { %v19239_v22 = vadd.f32 %v19238_v46, %v19151_v26 }
0x1ffa   :  { %v21845_v62 = vpop.f32.mrf.mxu1 }
0x1ffc   :  { %v19426_v37 = vpop.f32.mrf.mxu1 }
0x2001   :  { %v21826_v7 = vpop.f32.mrf.mxu0 }
0x2002   :  { %v19348_v61 = vadd.f32 %v21826_v7, %v19247_v49 }
0x2003   :  { %v19341_v32 = vpop.f32.mrf.mxu0 }
0x2004   :  { %v19433_v34 = vadd.f32 %v21845_v62, %v19348_v61  ;;  %v19342_v28 = vadd.f32 %v19341_v32, %v19239_v22 }
0x2006   :  { %v19427_v59 = vadd.f32 %v19426_v37, %v19342_v28  ;;  %v19437_v0 = vadd.f32 %v19433_v34, %v23958_v6 }
0x2008   :  { %v19441_v4 = vsel %vm86_vm0, %v19437_v0, 0.0  ;;  %v19436_v12 = vadd.f32 %v19427_v59, %v23954_v57 }
0x2009   :  { %19442 = vadd.xlane.f32.xlu0 %v19441_v4 }
0x200a   :  { %v19438_v15 = vsel %vm86_vm0, %v19436_v12, 0.0 }
0x200b   :  { %19439 = vadd.xlane.f32.xlu1 %v19438_v15 }
0x2092   :  { %v19443_v20 = vpop.xlane.xlu0 %19442 }
0x2093   :  { %v19445_v16 = vmul.f32 0.03125, %v19443_v20 }
0x2094   :  { %v19440_v36 = vpop.xlane.xlu1 %19439 }
0x2095   :  { %v19447_v23 = vsub.f32 %v19437_v0, %v19445_v16  ;;  %v19444_v24 = vmul.f32 0.03125, %v19440_v36 }
0x2097   :  { %v19446_v29 = vsub.f32 %v19436_v12, %v19444_v24  ;;  %v19449_v55 = vmul.f32 %v19447_v23, %v19447_v23  ;;  %v19465_v39 = vmul.f32 %v19538_v35, %v19447_v23 }
0x2099   :  { %v19453_v40 = vsel %vm86_vm0, %v19449_v55, 0.0  ;;  %v19448_v27 = vmul.f32 %v19446_v29, %v19446_v29  ;;  %v19464_v14 = vmul.f32 %v19538_v35, %v19446_v29 }
0x209a   :  { %19454 = vadd.xlane.f32.xlu0 %v19453_v40 }
0x209b   :  { %v19450_v6 = vsel %vm86_vm0, %v19448_v27, 0.0 }
0x209c   :  { %19451 = vadd.xlane.f32.xlu1 %v19450_v6 }
0x2123   :  { %v19455_v19 = vpop.xlane.xlu0 %19454 }
0x2124   :  { %v19457_v57 = vmul.f32 0.032258064, %v19455_v19 }
0x2125   :  { %v19452_v25 = vpop.xlane.xlu1 %19451 }
0x2126   :  { %21952 = vrsqrt.f32 %v19457_v57  ;;  %v19456_v44 = vmul.f32 0.032258064, %v19452_v25  ;;  %vm19475_vm3 = vcmp.eq.f32.partialorder %v19457_v57, inf  ;;  %v19478_v3 = vand.u32 2147483648, %v19457_v57 }
0x2127   :  { %vm19477_vm4 = vcmp.eq.f32.partialorder %v19457_v57, 0.0 }
0x2128   :  { %21954 = vrsqrt.f32 %v19456_v44  ;;  %vm19468_vm5 = vcmp.eq.f32.partialorder %v19456_v44, inf  ;;  %v19471_v48 = vand.u32 2147483648, %v19456_v44  ;;  %vm19470_vm6 = vcmp.eq.f32.partialorder %v19456_v44, 0.0 }
0x2133   :  { %v21953_v45 = vpop.eup %21952 }
0x2134   :  { %v19474_v2 = vmul.f32 %v21953_v45, %v19457_v57 }
0x2135   :  { %v21955_v8 = vpop.eup %21954 }
0x2136   :  { %v19476_v9 = vsel %vm19475_vm3, %v19457_v57, %v19474_v2  ;;  %v19467_v10 = vmul.f32 %v21955_v8, %v19456_v44 }
0x2137   :  { %v19479_v54 = vsel %vm19477_vm4, %v19478_v3, %v19476_v9 }
0x2138   :  { %v19481_v63 = vadd.f32 1e-06, %v19479_v54  ;;  %v19469_v52 = vsel %vm19468_vm5, %v19456_v44, %v19467_v10 }
0x2139   :  { %v19472_v51 = vsel %vm19470_vm6, %v19471_v48, %v19469_v52 }
0x213a   :  { %21956 = vrcp.f32 %v19481_v63  ;;  %v19480_v30 = vadd.f32 1e-06, %v19472_v51 }
0x213c   :  { %21958 = vrcp.f32 %v19480_v30 }
0x2147   :  { %v21957_v50 = vpop.eup %21956 }
0x2148   :  { %v19485_v56 = vmul.f32 %v21957_v50, %v19465_v39 }
0x2149   :  { %v21959_v13 = vpop.eup %21958 }
0x214a   :  { %v19493_v47 = vadd.f32 %v19539_v53, %v19485_v56  ;;  %v19483_v42 = vmul.f32 %v21959_v13, %v19464_v14 }
0x214c   :  { %19541 = vst.msk [vmem:[%s24222_s12 + $0x18] sm:$0xff] %vm86_vm0, %v19493_v47  ;;  %v19492_v5 = vadd.f32 %v19539_v53, %v19483_v42 }
0x214e   :  { %19540 = vst.msk [vmem:[%s24222_s12 + $0x10] sm:$0xff] %vm86_vm0, %v19492_v5 }
0x214f   :  { %19501 = vsyncpa [#allocation3], 1 }

</bundles_post_ra>
